<compile_context>
chip_gen: v5e
topology: v5e:2x2
jax: 0.10.0
libtpu: 0.0.40
codegen_flags: <defaults>
</compile_context>

<pallas_src>
import jax
import jax.numpy as jnp
from jax import lax
from jax.experimental import pallas as pl
from jax.experimental.pallas import tpu as pltpu


def fusion_kernel(q_ref, i_ref, w_ref, b_ref, o_ref):
    # q_ref/i_ref: (TB, D) bf16 activations.
    # w_ref: (2, L, D, D) bf16  -- [0]=question weights, [1]=image weights,
    #                             pre-transposed so the kernel does x @ W.
    # b_ref: (2, L, D) f32 biases.
    # o_ref: (TB, D) output (input dtype).
    num_layers = w_ref.shape[1]
    tb = q_ref.shape[0]
    d_out = w_ref.shape[3]

    x_q = q_ref[...].astype(jnp.bfloat16)
    x_i = i_ref[...].astype(jnp.bfloat16)
    acc = jnp.zeros((tb, d_out), jnp.float32)

    def layer(l, x_q, x_i, acc):
        # bf16 operands feed the MXU natively; accumulate in f32.
        z_q = jnp.dot(x_q, w_ref[0, l], preferred_element_type=jnp.float32)
        z_i = jnp.dot(x_i, w_ref[1, l], preferred_element_type=jnp.float32)
        # (1, D) bias rows broadcast over the batch (sublane) dim; bias-add,
        # tanh, product and accumulation stay on the f32 VPU/EUP path.
        t_q = jnp.tanh(z_q + b_ref[0, pl.ds(l, 1), :])
        t_i = jnp.tanh(z_i + b_ref[1, pl.ds(l, 1), :])
        acc = acc + t_q * t_i
        # Next layer's MXU operands are bf16 anyway.
        return t_q.astype(jnp.bfloat16), t_i.astype(jnp.bfloat16), acc

    if num_layers <= 4:
        # Short, static trip count: full unroll keeps the LLO scheduler's view.
        for l in range(num_layers):
            x_q, x_i, acc = layer(l, x_q, x_i, acc)
    else:
        # Larger L: rolled loop bounds live ranges (avoids vreg spills).
        def body(l, carry):
            return layer(l, *carry)
        x_q, x_i, acc = lax.fori_loop(0, num_layers, body, (x_q, x_i, acc))

    o_ref[...] = jnp.tanh(acc).astype(o_ref.dtype)


def _default_batch_tile(B: int) -> int:
    # Bigger tiles keep the 256-deep MXU pass fed (M=128 under-fills it on
    # v6e/v7x) and amortize the fixed per-grid-step overhead.  Small batches
    # run as one grid step; we do NOT force >=2 steps just to occupy both v7x
    # TensorCores, since each core would then DMA its own copy of the weights.
    for tb in (512, 256):
        if B % tb == 0 and B >= tb:
            return tb
    return B


def fusion_forward(ques_emb, img_emb, wq, bq, wi, bi, *, batch_tile=None):
    """ques_emb/img_emb: (B, D); wq/wi: (L, D_in, D_out); bq/bi: (L, D_out).

    Weights are pre-transposed to (in, out) so the kernel does x @ W on the
    MXU with no in-kernel transpose.
    """
    B, D_in = ques_emb.shape
    L, _, D_out = wq.shape
    assert D_in == D_out, "chained layers require input_dim == out_dim"
    # Hard (8, 128) BlockSpec requirement on the last two dims; D multiple of
    # 256 additionally gives full MXU passes and unmasked lane stores.
    assert D_in % 128 == 0 and D_out % 128 == 0, (
        "input_dim / out_dim must be multiples of 128 (pad upstream)")

    tb = batch_tile or _default_batch_tile(B)
    assert B % tb == 0, "no masking path: batch tile must divide batch"
    assert tb == B or tb % 8 == 0, "batch tile must be a multiple of 8"

    out_dtype = ques_emb.dtype

    # bf16 activation I/O (matmul operands are bf16 anyway -> no extra
    # precision loss) halves activation HBM traffic on every generation.
    q_c = ques_emb.astype(jnp.bfloat16)
    i_c = img_emb.astype(jnp.bfloat16)
    # Stack question/image weights + biases so the pipeline issues a single
    # weight DMA and a single bias DMA per entry instead of two of each.
    w = jnp.stack([wq, wi], axis=0).astype(jnp.bfloat16)   # (2, L, D, D)
    b = jnp.stack([bq, bi], axis=0).astype(jnp.float32)    # (2, L, D)

    grid = (B // tb,)
    act_spec = pl.BlockSpec((tb, D_in), lambda g: (g, 0))
    out_spec = pl.BlockSpec((tb, D_out), lambda g: (g, 0))
    # Constant index_map -> block never changes across the grid, so it is
    # DMA'd once and stays resident (no per-step re-copy).
    w_spec = pl.BlockSpec((2, L, D_in, D_out), lambda g: (0, 0, 0, 0))
    b_spec = pl.BlockSpec((2, L, D_out), lambda g: (0, 0, 0))

    out_itemsize = jnp.dtype(out_dtype).itemsize
    w_bytes = 2 * L * D_in * D_out * 2            # stacked bf16 weights
    bias_bytes = 2 * L * D_out * 4                # stacked f32 biases
    needed = int(
        2 * (w_bytes + bias_bytes)                # default double-buffering
        + 2 * 2 * tb * D_in * 2                   # q, i bf16 tiles, 2 buffers
        + 2 * tb * D_out * out_itemsize           # out tile, 2 buffers
        + 4 * tb * D_out * 4                      # f32 temporaries (z/t/acc)
        + (4 << 20)                               # Mosaic internal scratch
    )
    # Generation-aware scoped-VMEM limit: ~85% of physical capacity
    # (v5e/v6e: 128 MiB, v7x: 64 MiB), with a conservative fallback.
    try:
        cap = int(getattr(pltpu.get_tpu_info(), "vmem_capacity_bytes",
                          64 << 20))
    except Exception:
        cap = 64 << 20
    vmem_limit = min(max(needed, 32 << 20), int(0.85 * cap))

    cost = pl.CostEstimate(
        flops=4 * L * B * D_in * D_out,               # 2 matmuls/layer
        transcendentals=(2 * L + 1) * B * D_out,      # tanh per layer/branch + final
        bytes_accessed=(2 * B * D_in * 2              # bf16 activations in
                        + B * D_out * out_itemsize    # output
                        + w_bytes + bias_bytes),
    )

    return pl.pallas_call(
        fusion_kernel,
        out_shape=jax.ShapeDtypeStruct((B, D_out), out_dtype),
        grid_spec=pltpu.PrefetchScalarGridSpec(
            num_scalar_prefetch=0,
            grid=grid,
            in_specs=[act_spec, act_spec, w_spec, b_spec],
            out_specs=out_spec,
        ),
        compiler_params=pltpu.CompilerParams(
            dimension_semantics=("parallel",),
            vmem_limit_bytes=vmem_limit,
        ),
        cost_estimate=cost,
    )(q_c, i_c, w, b)


def reference_forward(ques_emb, img_emb, wq, bq, wi, bi):
    """Pure-JAX f32 reference mirroring the PyTorch forward (eval mode)."""
    x_q = ques_emb.astype(jnp.float32)
    x_i = img_emb.astype(jnp.float32)
    res = []
    for l in range(wq.shape[0]):
        x_q = jnp.tanh(x_q @ wq[l] + bq[l])
        x_i = jnp.tanh(x_i @ wi[l] + bi[l])
        res.append(x_q * x_i)
    out = jnp.tanh(jnp.stack(res, axis=0).sum(axis=0))
    return out.astype(ques_emb.dtype)


if __name__ == "__main__":
    # Small shapes consistent with the module (chaining needs in==out dim).
    # batch=256 -> default tile of 256 rows, single 'parallel' grid step.
    batch = 256
    input_dim = out_dim = 256
    num_layers = 2

    key = jax.random.PRNGKey(0)
    k_q, k_i, k_wq, k_bq, k_wi, k_bi = jax.random.split(key, 6)

    ques_emb = jax.random.normal(k_q, (batch, input_dim), dtype=jnp.float32)
    img_emb = jax.random.normal(k_i, (batch, input_dim), dtype=jnp.float32)

    # Deterministic nn.Linear-style init: U(-1/sqrt(in), 1/sqrt(in)).
    # Weights stored pre-transposed as (L, in, out) so kernel does x @ W.
    bound = 1.0 / (input_dim ** 0.5)
    wq = jax.random.uniform(k_wq, (num_layers, input_dim, out_dim),
                            minval=-bound, maxval=bound, dtype=jnp.float32)
    bq = jax.random.uniform(k_bq, (num_layers, out_dim),
                            minval=-bound, maxval=bound, dtype=jnp.float32)
    wi = jax.random.uniform(k_wi, (num_layers, input_dim, out_dim),
                            minval=-bound, maxval=bound, dtype=jnp.float32)
    bi = jax.random.uniform(k_bi, (num_layers, out_dim),
                            minval=-bound, maxval=bound, dtype=jnp.float32)

    out = fusion_forward(ques_emb, img_emb, wq, bq, wi, bi)
    out = jax.block_until_ready(out)

    ref = reference_forward(ques_emb, img_emb, wq, bq, wi, bi)
    assert out.shape == (batch, out_dim)
    # bf16 MXU operands / bf16 activation I/O -> loosened tolerance vs the
    # f32 reference.
    assert jnp.allclose(out, ref, atol=3e-2, rtol=3e-2), (
        float(jnp.max(jnp.abs(out - ref))))

    print("KERNEL_OK")
</pallas_src>

<mosaic_0001>
module attributes {stable_mosaic.version = 11 : i64} {
  func.func @fusion_kernel(%arg0: i32, %arg1: memref<256x256xbf16, #tpu.memory_space<vmem>>, %arg2: memref<256x256xbf16, #tpu.memory_space<vmem>>, %arg3: memref<2x2x256x256xbf16, #tpu.memory_space<vmem>>, %arg4: memref<2x2x256xf32, #tpu.memory_space<vmem>>, %arg5: memref<256x256xf32, #tpu.memory_space<vmem>>) attributes {dimension_semantics = [#tpu.dimension_semantics<parallel>], iteration_bounds = array<i64: 1>, scalar_prefetch = 0 : i64, scratch_operands = 0 : i64, tpu.core_type = #tpu.core_type<tc>, window_params = [{transform_indices = @transform_0, window_bounds = array<i64: 256, 256>}, {transform_indices = @transform_1, window_bounds = array<i64: 256, 256>}, {pipeline_mode = #tpu.pipeline_mode<synchronous>, transform_indices = @transform_2, window_bounds = array<i64: 2, 2, 256, 256>}, {pipeline_mode = #tpu.pipeline_mode<synchronous>, transform_indices = @transform_3, window_bounds = array<i64: 2, 2, 256>}, {transform_indices = @transform_4, window_bounds = array<i64: 256, 256>}]} {
    %c0 = arith.constant 0 : index
    %c0_0 = arith.constant 0 : index
    %0 = vector.load %arg1[%c0, %c0_0] : memref<256x256xbf16, #tpu.memory_space<vmem>>, vector<256x256xbf16>
    %c0_1 = arith.constant 0 : index
    %c0_2 = arith.constant 0 : index
    %1 = vector.load %arg2[%c0_1, %c0_2] : memref<256x256xbf16, #tpu.memory_space<vmem>>, vector<256x256xbf16>
    %cst = arith.constant 0.000000e+00 : f32
    %2 = vector.broadcast %cst : f32 to vector<256x256xf32>
    %c0_3 = arith.constant 0 : index
    %c0_4 = arith.constant 0 : index
    %c0_5 = arith.constant 0 : index
    %c0_6 = arith.constant 0 : index
    %3 = vector.load %arg3[%c0_3, %c0_4, %c0_5, %c0_6] : memref<2x2x256x256xbf16, #tpu.memory_space<vmem>>, vector<1x1x256x256xbf16>
    %4 = vector.shape_cast %3 : vector<1x1x256x256xbf16> to vector<256x256xbf16>
    %cst_7 = arith.constant dense<0.000000e+00> : vector<256x256xf32>
    %5 = tpu.matmul %0, %4, %cst_7 {dimension_numbers = #tpu.dot_dimension_numbers<[1], [0], [0], [1], [0, 0, 1, 1], [], []>} : vector<256x256xbf16>, vector<256x256xbf16>, vector<256x256xf32> -> vector<256x256xf32>
    %c1 = arith.constant 1 : index
    %c0_8 = arith.constant 0 : index
    %c0_9 = arith.constant 0 : index
    %c0_10 = arith.constant 0 : index
    %6 = vector.load %arg3[%c1, %c0_8, %c0_9, %c0_10] : memref<2x2x256x256xbf16, #tpu.memory_space<vmem>>, vector<1x1x256x256xbf16>
    %7 = vector.shape_cast %6 : vector<1x1x256x256xbf16> to vector<256x256xbf16>
    %cst_11 = arith.constant dense<0.000000e+00> : vector<256x256xf32>
    %8 = tpu.matmul %1, %7, %cst_11 {dimension_numbers = #tpu.dot_dimension_numbers<[1], [0], [0], [1], [0, 0, 1, 1], [], []>} : vector<256x256xbf16>, vector<256x256xbf16>, vector<256x256xf32> -> vector<256x256xf32>
    %c0_12 = arith.constant 0 : index
    %c0_13 = arith.constant 0 : index
    %c0_14 = arith.constant 0 : index
    %9 = vector.load %arg4[%c0_12, %c0_13, %c0_14] : memref<2x2x256xf32, #tpu.memory_space<vmem>>, vector<1x1x256xf32>
    %10 = vector.shape_cast %9 : vector<1x1x256xf32> to vector<1x256xf32>
    %11 = vector.broadcast %10 : vector<1x256xf32> to vector<256x256xf32>
    %12 = arith.addf %5, %11 : vector<256x256xf32>
    %13 = math.tanh %12 : vector<256x256xf32>
    %c1_15 = arith.constant 1 : index
    %c0_16 = arith.constant 0 : index
    %c0_17 = arith.constant 0 : index
    %14 = vector.load %arg4[%c1_15, %c0_16, %c0_17] : memref<2x2x256xf32, #tpu.memory_space<vmem>>, vector<1x1x256xf32>
    %15 = vector.shape_cast %14 : vector<1x1x256xf32> to vector<1x256xf32>
    %16 = vector.broadcast %15 : vector<1x256xf32> to vector<256x256xf32>
    %17 = arith.addf %8, %16 : vector<256x256xf32>
    %18 = math.tanh %17 : vector<256x256xf32>
    %19 = arith.mulf %13, %18 : vector<256x256xf32>
    %20 = arith.addf %2, %19 : vector<256x256xf32>
    %21 = arith.truncf %13 : vector<256x256xf32> to vector<256x256xbf16>
    %22 = arith.truncf %18 : vector<256x256xf32> to vector<256x256xbf16>
    %c0_18 = arith.constant 0 : index
    %c1_19 = arith.constant 1 : index
    %c0_20 = arith.constant 0 : index
    %c0_21 = arith.constant 0 : index
    %23 = vector.load %arg3[%c0_18, %c1_19, %c0_20, %c0_21] : memref<2x2x256x256xbf16, #tpu.memory_space<vmem>>, vector<1x1x256x256xbf16>
    %24 = vector.shape_cast %23 : vector<1x1x256x256xbf16> to vector<256x256xbf16>
    %cst_22 = arith.constant dense<0.000000e+00> : vector<256x256xf32>
    %25 = tpu.matmul %21, %24, %cst_22 {dimension_numbers = #tpu.dot_dimension_numbers<[1], [0], [0], [1], [0, 0, 1, 1], [], []>} : vector<256x256xbf16>, vector<256x256xbf16>, vector<256x256xf32> -> vector<256x256xf32>
    %c1_23 = arith.constant 1 : index
    %c1_24 = arith.constant 1 : index
    %c0_25 = arith.constant 0 : index
    %c0_26 = arith.constant 0 : index
    %26 = vector.load %arg3[%c1_23, %c1_24, %c0_25, %c0_26] : memref<2x2x256x256xbf16, #tpu.memory_space<vmem>>, vector<1x1x256x256xbf16>
    %27 = vector.shape_cast %26 : vector<1x1x256x256xbf16> to vector<256x256xbf16>
    %cst_27 = arith.constant dense<0.000000e+00> : vector<256x256xf32>
    %28 = tpu.matmul %22, %27, %cst_27 {dimension_numbers = #tpu.dot_dimension_numbers<[1], [0], [0], [1], [0, 0, 1, 1], [], []>} : vector<256x256xbf16>, vector<256x256xbf16>, vector<256x256xf32> -> vector<256x256xf32>
    %c0_28 = arith.constant 0 : index
    %c1_29 = arith.constant 1 : index
    %c0_30 = arith.constant 0 : index
    %29 = vector.load %arg4[%c0_28, %c1_29, %c0_30] : memref<2x2x256xf32, #tpu.memory_space<vmem>>, vector<1x1x256xf32>
    %30 = vector.shape_cast %29 : vector<1x1x256xf32> to vector<1x256xf32>
    %31 = vector.broadcast %30 : vector<1x256xf32> to vector<256x256xf32>
    %32 = arith.addf %25, %31 : vector<256x256xf32>
    %33 = math.tanh %32 : vector<256x256xf32>
    %c1_31 = arith.constant 1 : index
    %c1_32 = arith.constant 1 : index
    %c0_33 = arith.constant 0 : index
    %34 = vector.load %arg4[%c1_31, %c1_32, %c0_33] : memref<2x2x256xf32, #tpu.memory_space<vmem>>, vector<1x1x256xf32>
    %35 = vector.shape_cast %34 : vector<1x1x256xf32> to vector<1x256xf32>
    %36 = vector.broadcast %35 : vector<1x256xf32> to vector<256x256xf32>
    %37 = arith.addf %28, %36 : vector<256x256xf32>
    %38 = math.tanh %37 : vector<256x256xf32>
    %39 = arith.mulf %33, %38 : vector<256x256xf32>
    %40 = arith.addf %20, %39 : vector<256x256xf32>
    %41 = math.tanh %40 : vector<256x256xf32>
    %c0_34 = arith.constant 0 : index
    %c0_35 = arith.constant 0 : index
    %42 = vector.load %arg5[%c0_34, %c0_35] : memref<256x256xf32, #tpu.memory_space<vmem>>, vector<256x256xf32>
    tpu.vector_store %arg5[%c0_34, %c0_35], %41 {strides = array<i32>} : memref<256x256xf32, #tpu.memory_space<vmem>>, vector<256x256xf32>,
    return
  }
  func.func @transform_0(%arg0: i32) -> (i32, i32) {
    %c0_i32 = arith.constant 0 : i32
    %c0_i32_0 = arith.constant 0 : i32
    return %arg0, %c0_i32 : i32, i32
  }
  func.func @transform_1(%arg0: i32) -> (i32, i32) {
    %c0_i32 = arith.constant 0 : i32
    %c0_i32_0 = arith.constant 0 : i32
    return %arg0, %c0_i32 : i32, i32
  }
  func.func @transform_2(%arg0: i32) -> (i32, i32, i32, i32) {
    %c0_i32 = arith.constant 0 : i32
    %c0_i32_0 = arith.constant 0 : i32
    %c0_i32_1 = arith.constant 0 : i32
    %c0_i32_2 = arith.constant 0 : i32
    %c0_i32_3 = arith.constant 0 : i32
    return %c0_i32, %c0_i32_0, %c0_i32_1, %c0_i32_2 : i32, i32, i32, i32
  }
  func.func @transform_3(%arg0: i32) -> (i32, i32, i32) {
    %c0_i32 = arith.constant 0 : i32
    %c0_i32_0 = arith.constant 0 : i32
    %c0_i32_1 = arith.constant 0 : i32
    %c0_i32_2 = arith.constant 0 : i32
    return %c0_i32, %c0_i32_0, %c0_i32_1 : i32, i32, i32
  }
  func.func @transform_4(%arg0: i32) -> (i32, i32) {
    %c0_i32 = arith.constant 0 : i32
    %c0_i32_0 = arith.constant 0 : i32
    return %arg0, %c0_i32 : i32, i32
  }
}

</mosaic_0001>

<bundles_post_ra>
// kernel: tpu_custom_call.1
= control target key start
LH: loop header
LB: loop body
LE: loop exit
PB: predicated region body
PF: predicated region fallthrough
CT: control target
= control target key end

     0   :  { %9 = vsyncpa [#allocation3], 0  ;;  %s6499_s0 = inlined_call_operand.hbm [shape: bf16[256,256], index: 0, kind: input, shape index: {}]   ;;  %s6500_s1 = inlined_call_operand.hbm [shape: bf16[256,256], index: 1, kind: input, shape index: {}]   ;;  %s6501_s2 = inlined_call_operand.hbm [shape: bf16[2,2,256,256], index: 2, kind: input, shape index: {}]   ;;  %s6502_s3 = inlined_call_operand.hbm [shape: f32[2,2,256], index: 3, kind: input, shape index: {}]   ;;  %s6503_s4 = inlined_call_operand.hbm [shape: f32[256,256], index: 4, kind: output, shape index: {}]  }
   0x1   :  { %10 = vsyncpa [#allocation6], 0 }
   0x2   :  { %11 = vsyncpa [#allocation9], 0 }
   0x3   :  { %12 = vsyncpa [#allocation4], 0  ;;  %s30_s17 = sshll.u32 %s6500_s1, 4  ;;  %s5152_s18 = smov [#allocation5]   ;;  %s31_s17 = int_to_ptr.hbm [resolvable:$true] %s30_s17 }
   0x4   :  { %s32_s19 = sshll.u32 %s5152_s18, 4  ;;  %s17_s22 = sshll.u32 %s6499_s0, 4  ;;  %s33_s19 = int_to_ptr.vmem [resolvable:$true] %s32_s19  ;;  %s18_s22 = int_to_ptr.hbm [resolvable:$true] %s17_s22 }
   0x5   :  { %s5153_s23 = smov 128   ;;  %s5154_s24 = smov 8  }
   0x6   :  { %38 = dma.hbm_to_vmem [thread:$0]  %s31_s17, 4096, %s33_s19, [#allocation6], %s5153_s23, %s5153_s23, %s5154_s24  }
   0x7   :  { %s5155_s25 = smov [#allocation2]   ;;  %s43_s29 = sshll.u32 %s6501_s2, 4  ;;  %s44_s29 = int_to_ptr.hbm [resolvable:$true] %s43_s29 }
   0x8   :  { %s19_s26 = sshll.u32 %s5155_s25, 4  ;;  %s56_s5 = sshll.u32 %s6502_s3, 4  ;;  %s20_s26 = int_to_ptr.vmem [resolvable:$true] %s19_s26  ;;  %s57_s5 = int_to_ptr.hbm [resolvable:$true] %s56_s5 }
   0x9   :  { %25 = dma.hbm_to_vmem [thread:$0]  %s18_s22, 4096, %s20_s26, [#allocation3], %s5153_s23, %s5153_s23, %s5154_s24  }
   0xa   :  { %s5156_s6 = smov [#allocation7]   ;;  %s5157_s0 = smov [#allocation8]  }
   0xb   :  { %s45_s7 = sshll.u32 %s5156_s6, 4  ;;  %s58_s8 = sshll.u32 %s5157_s0, 4  ;;  %s46_s7 = int_to_ptr.vmem [resolvable:$true] %s45_s7  ;;  %s59_s8 = int_to_ptr.vmem [resolvable:$true] %s58_s8 }
   0xc   :  { %51 = dma.hbm_to_vmem [thread:$0]  %s44_s29, 16384, %s46_s7, [#allocation6], %s5153_s23, %s5153_s23, %s5154_s24  }
   0xd   :  { %s5158_s9 = smov 64   ;;  %s5159_s10 = smov 4  }
   0xe   :  { %64 = dma.hbm_to_vmem [thread:$0]  %s57_s5, 128, %s59_s8, [#allocation9], %s5158_s9, %s5158_s9, %s5159_s10  }
   0xf   :  { %5144 = dma.done.wait [#allocation3], 4096  }
  0x10   :  { %5145 = vsyncadd [#allocation3], 4294963200 }
  0x11   :  { %5146 = dma.done.wait [#allocation6], 20480  }
  0x12   :  { %5147 = vsyncadd [#allocation6], 4294946816 }
  0x13   :  { %5148 = dma.done.wait [#allocation9], 128  }
  0x14   :  { %5149 = vsyncadd [#allocation9], 4294967168  ;;  %v3599_v0 = vld [vmem:[#allocation7 + $0x70] sm:$0xf]  ;;  %v4260_v1 = vld [vmem:[#allocation7 + $0x74] sm:$0xf0] }
  0x15   :  { %v3663_v2 = vld [vmem:[#allocation7 + $0xf0] sm:$0xf]  ;;  %v3600_v3 = vor.u32 %v4260_v1, %v3599_v0  ;;  %v4276_v4 = vld [vmem:[#allocation7 + $0xf4] sm:$0xf0]  ;;  %v4259_v5 = vld [vmem:[#allocation7 + $0x74] sm:$0xf] }
  0x16   :  { %v3601_v6 = vld [vmem:[#allocation7 + $0x78] sm:$0xf0]  ;;  %v3664_v7 = vor.u32 %v4276_v4, %v3663_v2  ;;  %v4275_v9 = vld [vmem:[#allocation7 + $0xf4] sm:$0xf]  ;;  %v3591_v11 = vld [vmem:[#allocation7 + $0x60] sm:$0xf] }
  0x17   :  { %v3604_v8 = vor.u32 %v4259_v5, %v3601_v6  ;;  %v3665_v10 = vld [vmem:[#allocation7 + $0xf8] sm:$0xf0]  ;;  %536 = vmatpush.bf16.msra.mxu0 %v3600_v3  ;;  %v4258_v13 = vld [vmem:[#allocation7 + $0x64] sm:$0xf0]  ;;  %v3655_v14 = vld [vmem:[#allocation7 + $0xe0] sm:$0xf] }
  0x18   :  { %v3668_v12 = vor.u32 %v4275_v9, %v3665_v10  ;;  %v4274_v15 = vld [vmem:[#allocation7 + $0xe4] sm:$0xf0]  ;;  %625 = vmatpush.bf16.msra.mxu1 %v3664_v7  ;;  %v3592_v16 = vor.u32 %v4258_v13, %v3591_v11  ;;  %v4257_v18 = vld [vmem:[#allocation7 + $0x64] sm:$0xf]  ;;  %v3593_v19 = vld [vmem:[#allocation7 + $0x68] sm:$0xf0] }
  0x19   :  { %714 = vmatpush.bf16.msra.mxu2 %v3604_v8  ;;  %v3656_v17 = vor.u32 %v4274_v15, %v3655_v14  ;;  %v4273_v20 = vld [vmem:[#allocation7 + $0xe4] sm:$0xf]  ;;  %v3596_v21 = vor.u32 %v4257_v18, %v3593_v19  ;;  %v3657_v22 = vld [vmem:[#allocation7 + $0xe8] sm:$0xf0]  ;;  %v3583_v23 = vld [vmem:[#allocation7 + $0x50] sm:$0xf] }
  0x1a   :  { %803 = vmatpush.bf16.msra.mxu3 %v3668_v12  ;;  %v4256_v24 = vld [vmem:[#allocation7 + $0x54] sm:$0xf0]  ;;  %v3660_v25 = vor.u32 %v4273_v20, %v3657_v22  ;;  %v3647_v26 = vld [vmem:[#allocation7 + $0xd0] sm:$0xf]  ;;  %v4255_v28 = vld [vmem:[#allocation7 + $0x54] sm:$0xf] }
  0x1b   :  { %v4272_v27 = vld [vmem:[#allocation7 + $0xd4] sm:$0xf0]  ;;  %537 = vmatpush.bf16.msra.mxu0 %v3592_v16  ;;  %v3584_v29 = vor.u32 %v4256_v24, %v3583_v23  ;;  %v3585_v30 = vld [vmem:[#allocation7 + $0x58] sm:$0xf0]  ;;  %v4271_v31 = vld [vmem:[#allocation7 + $0xd4] sm:$0xf] }
  0x1c   :  { %v3649_v32 = vld [vmem:[#allocation7 + $0xd8] sm:$0xf0]  ;;  %626 = vmatpush.bf16.msra.mxu1 %v3656_v17  ;;  %v3648_v33 = vor.u32 %v4272_v27, %v3647_v26  ;;  %v3588_v34 = vor.u32 %v4255_v28, %v3585_v30  ;;  %v3575_v35 = vld [vmem:[#allocation7 + $0x40] sm:$0xf]  ;;  %v4254_v36 = vld [vmem:[#allocation7 + $0x44] sm:$0xf0] }
  0x1d   :  { %715 = vmatpush.bf16.msra.mxu2 %v3596_v21  ;;  %v3639_v37 = vld [vmem:[#allocation7 + $0xc0] sm:$0xf]  ;;  %v3652_v38 = vor.u32 %v4271_v31, %v3649_v32  ;;  %v4270_v39 = vld [vmem:[#allocation7 + $0xc4] sm:$0xf0]  ;;  %v4253_v40 = vld [vmem:[#allocation7 + $0x44] sm:$0xf]  ;;  %v3576_v44 = vor.u32 %v4254_v36, %v3575_v35 }
  0x1e   :  { %804 = vmatpush.bf16.msra.mxu3 %v3660_v25  ;;  %v3577_v41 = vld [vmem:[#allocation7 + $0x48] sm:$0xf0]  ;;  %v4269_v42 = vld [vmem:[#allocation7 + $0xc4] sm:$0xf]  ;;  %v3640_v45 = vor.u32 %v4270_v39, %v3639_v37  ;;  %v3567_v47 = vld [vmem:[#allocation7 + $0x30] sm:$0xf] }
  0x1f   :  { %v3641_v43 = vld [vmem:[#allocation7 + $0xc8] sm:$0xf0]  ;;  %538 = vmatpush.bf16.msra.mxu0 %v3584_v29  ;;  %v3580_v46 = vor.u32 %v4253_v40, %v3577_v41  ;;  %v4252_v48 = vld [vmem:[#allocation7 + $0x34] sm:$0xf0]  ;;  %v3631_v49 = vld [vmem:[#allocation7 + $0xb0] sm:$0xf] }
  0x20   :  { %627 = vmatpush.bf16.msra.mxu1 %v3648_v33  ;;  %v3644_v50 = vor.u32 %v4269_v42, %v3641_v43  ;;  %v4268_v51 = vld [vmem:[#allocation7 + $0xb4] sm:$0xf0]  ;;  %v4251_v52 = vld [vmem:[#allocation7 + $0x34] sm:$0xf]  ;;  %v3569_v53 = vld [vmem:[#allocation7 + $0x38] sm:$0xf0]  ;;  %v3568_v56 = vor.u32 %v4252_v48, %v3567_v47 }
  0x21   :  { %716 = vmatpush.bf16.msra.mxu2 %v3588_v34  ;;  %v4267_v54 = vld [vmem:[#allocation7 + $0xb4] sm:$0xf]  ;;  %v3633_v55 = vld [vmem:[#allocation7 + $0xb8] sm:$0xf0]  ;;  %v3632_v57 = vor.u32 %v4268_v51, %v3631_v49  ;;  %v3572_v58 = vor.u32 %v4251_v52, %v3569_v53  ;;  %v3559_v59 = vld [vmem:[#allocation7 + $0x20] sm:$0xf] }
  0x22   :  { %805 = vmatpush.bf16.msra.mxu3 %v3652_v38  ;;  %v4250_v60 = vld [vmem:[#allocation7 + $0x24] sm:$0xf0]  ;;  %v3623_v61 = vld [vmem:[#allocation7 + $0xa0] sm:$0xf]  ;;  %v3636_v62 = vor.u32 %v4267_v54, %v3633_v55  ;;  %v4249_v0 = vld [vmem:[#allocation7 + $0x24] sm:$0xf] }
  0x23   :  { %539 = vmatpush.bf16.msra.mxu0 %v3576_v44  ;;  %v4266_v63 = vld [vmem:[#allocation7 + $0xa4] sm:$0xf0]  ;;  %v3561_v1 = vld [vmem:[#allocation7 + $0x28] sm:$0xf0]  ;;  %v4265_v2 = vld [vmem:[#allocation7 + $0xa4] sm:$0xf]  ;;  %v3560_v4 = vor.u32 %v4250_v60, %v3559_v59 }
  0x24   :  { %628 = vmatpush.bf16.msra.mxu1 %v3640_v45  ;;  %v3625_v3 = vld [vmem:[#allocation7 + $0xa8] sm:$0xf0]  ;;  %v3624_v5 = vor.u32 %v4266_v63, %v3623_v61  ;;  %v3564_v6 = vor.u32 %v4249_v0, %v3561_v1  ;;  %v3551_v7 = vld [vmem:[#allocation7 + $0x10] sm:$0xf]  ;;  %v4248_v8 = vld [vmem:[#allocation7 + $0x14] sm:$0xf0] }
  0x25   :  { %717 = vmatpush.bf16.msra.mxu2 %v3580_v46  ;;  %v3615_v9 = vld [vmem:[#allocation7 + $0x90] sm:$0xf]  ;;  %v3628_v10 = vor.u32 %v4265_v2, %v3625_v3  ;;  %v4264_v11 = vld [vmem:[#allocation7 + $0x94] sm:$0xf0]  ;;  %v4247_v12 = vld [vmem:[#allocation7 + $0x14] sm:$0xf]  ;;  %v3552_v16 = vor.u32 %v4248_v8, %v3551_v7 }
  0x26   :  { %806 = vmatpush.bf16.msra.mxu3 %v3644_v50  ;;  %v3553_v13 = vld [vmem:[#allocation7 + $0x18] sm:$0xf0]  ;;  %v4263_v14 = vld [vmem:[#allocation7 + $0x94] sm:$0xf]  ;;  %v3543_v17 = vld [vmem:[#allocation7] sm:$0xf]  ;;  %v3616_v19 = vor.u32 %v4264_v11, %v3615_v9 }
  0x27   :  { %540 = vmatpush.bf16.msra.mxu0 %v3568_v56  ;;  %v3617_v15 = vld [vmem:[#allocation7 + $0x98] sm:$0xf0]  ;;  %v4246_v18 = vld [vmem:[#allocation7 + $0x4] sm:$0xf0]  ;;  %v3556_v20 = vor.u32 %v4247_v12, %v3553_v13  ;;  %v3607_v21 = vld [vmem:[#allocation7 + $0x80] sm:$0xf] }
  0x28   :  { %629 = vmatpush.bf16.msra.mxu1 %v3632_v57  ;;  %v4262_v22 = vld [vmem:[#allocation7 + $0x84] sm:$0xf0]  ;;  %v4245_v23 = vld [vmem:[#allocation7 + $0x4] sm:$0xf]  ;;  %v3620_v24 = vor.u32 %v4263_v14, %v3617_v15  ;;  %v3545_v25 = vld [vmem:[#allocation7 + $0x8] sm:$0xf0]  ;;  %v3544_v31 = vor.u32 %v4246_v18, %v3543_v17 }
  0x29   :  { %718 = vmatpush.bf16.msra.mxu2 %v3572_v58  ;;  %v4261_v26 = vld [vmem:[#allocation7 + $0x84] sm:$0xf]  ;;  %v3609_v27 = vld [vmem:[#allocation7 + $0x88] sm:$0xf0]  ;;  %v3415_v28 = vld [vmem:[#allocation2] sm:$0xf]  ;;  %v3608_v35 = vor.u32 %v4262_v22, %v3607_v21  ;;  %v3548_v36 = vor.u32 %v4245_v23, %v3545_v25 }
  0x2a   :  { %807 = vmatpush.bf16.msra.mxu3 %v3636_v62  ;;  %v4291_v29 = vld [vmem:[#allocation7 + $0x274] sm:$0xf]  ;;  %v3857_v30 = vld [vmem:[#allocation7 + $0x278] sm:$0xf0]  ;;  %v4182_v32 = vld [vmem:[#allocation2 + $0x4] sm:$0xf0]  ;;  %v3612_v39 = vor.u32 %v4261_v26, %v3609_v27 }
  0x2b   :  { %541 = vmatpush.bf16.msra.mxu0 %v3560_v4  ;;  %v4307_v33 = vld [vmem:[#allocation7 + $0x2f4] sm:$0xf]  ;;  %v3921_v34 = vld [vmem:[#allocation7 + $0x2f8] sm:$0xf0]  ;;  %v4181_v37 = vld [vmem:[#allocation2 + $0x4] sm:$0xf]  ;;  %v3860_v40 = vor.u32 %v4291_v29, %v3857_v30  ;;  %v3416_v43 = vor.u32 %v4182_v32, %v3415_v28 }
  0x2c   :  { %630 = vmatpush.bf16.msra.mxu1 %v3624_v5  ;;  %v3417_v38 = vld [vmem:[#allocation2 + $0x8] sm:$0xf0]  ;;  %v3855_v41 = vld [vmem:[#allocation7 + $0x270] sm:$0xf]  ;;  %v4292_v42 = vld [vmem:[#allocation7 + $0x274] sm:$0xf0]  ;;  %v3924_v44 = vor.u32 %v4307_v33, %v3921_v34 }
  0x2d   :  { %719 = vmatpush.bf16.msra.mxu2 %v3564_v6  ;;  %v3919_v45 = vld [vmem:[#allocation7 + $0x2f0] sm:$0xf]  ;;  %v4308_v46 = vld [vmem:[#allocation7 + $0x2f4] sm:$0xf0]  ;;  %v3420_v47 = vor.u32 %v4181_v37, %v3417_v38  ;;  %v3856_v48 = vor.u32 %v4292_v42, %v3855_v41  ;;  %v4289_v50 = vld [vmem:[#allocation7 + $0x264] sm:$0xf] }
  0x2e   :  { %808 = vmatpush.bf16.msra.mxu3 %v3628_v10  ;;  %v3920_v49 = vor.u32 %v4308_v46, %v3919_v45  ;;  %v3849_v51 = vld [vmem:[#allocation7 + $0x268] sm:$0xf0]  ;;  %v4305_v52 = vld [vmem:[#allocation7 + $0x2e4] sm:$0xf]  ;;  %v3847_v55 = vld [vmem:[#allocation7 + $0x260] sm:$0xf] }
  0x2f   :  { %542 = vmatpush.bf16.msra.mxu0 %v3552_v16  ;;  %v3852_v53 = vor.u32 %v4289_v50, %v3849_v51  ;;  %v3913_v54 = vld [vmem:[#allocation7 + $0x2e8] sm:$0xf0]  ;;  %v4290_v56 = vld [vmem:[#allocation7 + $0x264] sm:$0xf0]  ;;  %v3911_v59 = vld [vmem:[#allocation7 + $0x2e0] sm:$0xf] }
  0x30   :  { %631 = vmatpush.bf16.msra.mxu1 %v3616_v19  ;;  %v3916_v57 = vor.u32 %v4305_v52, %v3913_v54  ;;  %v3848_v58 = vor.u32 %v4290_v56, %v3847_v55  ;;  %v4306_v60 = vld [vmem:[#allocation7 + $0x2e4] sm:$0xf0]  ;;  %v3423_v62 = vld [vmem:[#allocation2 + $0x10] sm:$0xf]  ;;  %v4184_v63 = vld [vmem:[#allocation2 + $0x14] sm:$0xf0] }
  0x31   :  { %720 = vmatpush.bf16.msra.mxu2 %v3556_v20  ;;  %v3912_v61 = vor.u32 %v4306_v60, %v3911_v59  ;;  %v4183_v0 = vld [vmem:[#allocation2 + $0x14] sm:$0xf]  ;;  %v3425_v1 = vld [vmem:[#allocation2 + $0x18] sm:$0xf0]  ;;  %v3424_v2 = vor.u32 %v4184_v63, %v3423_v62  ;;  %v3431_v4 = vld [vmem:[#allocation2 + $0x20] sm:$0xf] }
  0x32   :  { %809 = vmatpush.bf16.msra.mxu3 %v3620_v24  ;;  %v3428_v3 = vor.u32 %v4183_v0, %v3425_v1  ;;  %v4186_v5 = vld [vmem:[#allocation2 + $0x24] sm:$0xf0]  ;;  %v4185_v6 = vld [vmem:[#allocation2 + $0x24] sm:$0xf]  ;;  %v3433_v7 = vld [vmem:[#allocation2 + $0x28] sm:$0xf0] }
  0x33   :  { %543 = vmatpush.bf16.msra.mxu0 %v3544_v31  ;;  %v3432_v8 = vor.u32 %v4186_v5, %v3431_v4  ;;  %v3436_v9 = vor.u32 %v4185_v6, %v3433_v7  ;;  %v4287_v10 = vld [vmem:[#allocation7 + $0x254] sm:$0xf]  ;;  %v3841_v11 = vld [vmem:[#allocation7 + $0x258] sm:$0xf0]  ;;  %v3839_v15 = vld [vmem:[#allocation7 + $0x250] sm:$0xf] }
  0x34   :  { %632 = vmatpush.bf16.msra.mxu1 %v3608_v35  ;;  %v4303_v12 = vld [vmem:[#allocation7 + $0x2d4] sm:$0xf]  ;;  %v3844_v13 = vor.u32 %v4287_v10, %v3841_v11  ;;  %v3905_v14 = vld [vmem:[#allocation7 + $0x2d8] sm:$0xf0]  ;;  %v4288_v16 = vld [vmem:[#allocation7 + $0x254] sm:$0xf0] }
  0x35   :  { %721 = vmatpush.bf16.msra.mxu2 %v3548_v36  ;;  %v3908_v17 = vor.u32 %v4303_v12, %v3905_v14  ;;  %v3840_v18 = vor.u32 %v4288_v16, %v3839_v15  ;;  %v3903_v19 = vld [vmem:[#allocation7 + $0x2d0] sm:$0xf]  ;;  %v4304_v20 = vld [vmem:[#allocation7 + $0x2d4] sm:$0xf0]  ;;  %v4187_v24 = vld [vmem:[#allocation2 + $0x34] sm:$0xf] }
  0x36   :  { %810 = vmatpush.bf16.msra.mxu3 %v3612_v39  ;;  %544 = vmatmul.bf16.vlgmr.msra.gmra.mxu0 %v3416_v43  ;;  %v3904_v21 = vor.u32 %v4304_v20, %v3903_v19  ;;  %v3439_v22 = vld [vmem:[#allocation2 + $0x30] sm:$0xf]  ;;  %v4188_v23 = vld [vmem:[#allocation2 + $0x34] sm:$0xf0]  ;;  %v3441_v25 = vld [vmem:[#allocation2 + $0x38] sm:$0xf0] }
  0x37   :  { %633 = vmatmul.bf16.vlgmr.msra.gmra.mxu1 %v3420_v47  ;;  %1283 = vmatpush.bf16.msrb.mxu0 %v3856_v48  ;;  %v3440_v26 = vor.u32 %v4188_v23, %v3439_v22  ;;  %v3444_v27 = vor.u32 %v4187_v24, %v3441_v25  ;;  %v3447_v28 = vld [vmem:[#allocation2 + $0x40] sm:$0xf]  ;;  %v4190_v29 = vld [vmem:[#allocation2 + $0x44] sm:$0xf0]  ;;  %v4189_v30 = vld [vmem:[#allocation2 + $0x44] sm:$0xf] }
  0x38   :  { %722 = vmatmul.bf16.vlgmr.msra.gmra.mxu2 %v3416_v43  ;;  %1372 = vmatpush.bf16.msrb.mxu1 %v3920_v49  ;;  %v3449_v31 = vld [vmem:[#allocation2 + $0x48] sm:$0xf0]  ;;  %v3448_v32 = vor.u32 %v4190_v29, %v3447_v28  ;;  %v4285_v34 = vld [vmem:[#allocation7 + $0x244] sm:$0xf]  ;;  %v3831_v39 = vld [vmem:[#allocation7 + $0x240] sm:$0xf] }
  0x39   :  { %1461 = vmatpush.bf16.msrb.mxu2 %v3860_v40  ;;  %811 = vmatmul.bf16.vlgmr.msra.gmra.mxu3 %v3420_v47  ;;  %v3452_v33 = vor.u32 %v4189_v30, %v3449_v31  ;;  %v3833_v35 = vld [vmem:[#allocation7 + $0x248] sm:$0xf0]  ;;  %v4301_v36 = vld [vmem:[#allocation7 + $0x2c4] sm:$0xf]  ;;  %v4286_v40 = vld [vmem:[#allocation7 + $0x244] sm:$0xf0] }
  0x3a   :  { %1550 = vmatpush.bf16.msrb.mxu3 %v3924_v44  ;;  %v3836_v37 = vor.u32 %v4285_v34, %v3833_v35  ;;  %v3897_v38 = vld [vmem:[#allocation7 + $0x2c8] sm:$0xf0]  ;;  %v3832_v42 = vor.u32 %v4286_v40, %v3831_v39  ;;  %v3895_v43 = vld [vmem:[#allocation7 + $0x2c0] sm:$0xf]  ;;  %v4302_v44 = vld [vmem:[#allocation7 + $0x2c4] sm:$0xf0] }
  0x3b   :  { %1284 = vmatpush.bf16.msrb.mxu0 %v3848_v58  ;;  %v3900_v41 = vor.u32 %v4301_v36, %v3897_v38  ;;  %v3896_v45 = vor.u32 %v4302_v44, %v3895_v43  ;;  %v3455_v46 = vld [vmem:[#allocation2 + $0x50] sm:$0xf]  ;;  %v4192_v47 = vld [vmem:[#allocation2 + $0x54] sm:$0xf0]  ;;  %v4191_v48 = vld [vmem:[#allocation2 + $0x54] sm:$0xf] }
  0x3c   :  { %1373 = vmatpush.bf16.msrb.mxu1 %v3912_v61  ;;  %v3457_v49 = vld [vmem:[#allocation2 + $0x58] sm:$0xf0]  ;;  %v3456_v50 = vor.u32 %v4192_v47, %v3455_v46  ;;  %v3463_v52 = vld [vmem:[#allocation2 + $0x60] sm:$0xf]  ;;  %v4193_v54 = vld [vmem:[#allocation2 + $0x64] sm:$0xf] }
  0x3d   :  { %1462 = vmatpush.bf16.msrb.mxu2 %v3852_v53  ;;  %v3460_v51 = vor.u32 %v4191_v48, %v3457_v49  ;;  %v4194_v53 = vld [vmem:[#allocation2 + $0x64] sm:$0xf0]  ;;  %v3465_v55 = vld [vmem:[#allocation2 + $0x68] sm:$0xf0]  ;;  %v4283_v58 = vld [vmem:[#allocation7 + $0x234] sm:$0xf] }
  0x3e   :  { %1551 = vmatpush.bf16.msrb.mxu3 %v3916_v57  ;;  %v3464_v56 = vor.u32 %v4194_v53, %v3463_v52  ;;  %v3468_v57 = vor.u32 %v4193_v54, %v3465_v55  ;;  %v3825_v59 = vld [vmem:[#allocation7 + $0x238] sm:$0xf0]  ;;  %v4299_v60 = vld [vmem:[#allocation7 + $0x2b4] sm:$0xf]  ;;  %v3471_v0 = vld [vmem:[#allocation2 + $0x70] sm:$0xf] }
  0x3f   :  { %1285 = vmatpush.bf16.msrb.mxu0 %v3840_v18  ;;  %v3828_v61 = vor.u32 %v4283_v58, %v3825_v59  ;;  %v3889_v62 = vld [vmem:[#allocation7 + $0x2b8] sm:$0xf0]  ;;  %v4196_v1 = vld [vmem:[#allocation2 + $0x74] sm:$0xf0]  ;;  %v3823_v6 = vld [vmem:[#allocation7 + $0x230] sm:$0xf] }
  0x40   :  { %1374 = vmatpush.bf16.msrb.mxu1 %v3904_v21  ;;  %v3892_v63 = vor.u32 %v4299_v60, %v3889_v62  ;;  %v3472_v4 = vor.u32 %v4196_v1, %v3471_v0  ;;  %v4284_v7 = vld [vmem:[#allocation7 + $0x234] sm:$0xf0]  ;;  %v210_v12 = vld [vmem:[#allocation8] ss:$2 sm:$0x3]  ;;  %s5160_s2 = smov [#allocation10]  }
  0x41   :  { %1463 = vmatpush.bf16.msrb.mxu2 %v3844_v13  ;;  %v4300_v10 = vld [vmem:[#allocation7 + $0x2b4] sm:$0xf0]  ;;  %v3479_v13 = vld [vmem:[#allocation2 + $0x80] sm:$0xf]  ;;  %v4198_v14 = vld [vmem:[#allocation2 + $0x84] sm:$0xf0] }
  0x42   :  { %1552 = vmatpush.bf16.msrb.mxu3 %v3908_v17  ;;  %v5200_v15 = vperm.slane %v210_v12, 0  ;;  %v4197_v16 = vld [vmem:[#allocation2 + $0x84] sm:$0xf]  ;;  %v3481_v17 = vld [vmem:[#allocation2 + $0x88] sm:$0xf0]  ;;  %v3480_v18 = vor.u32 %v4198_v14, %v3479_v13  ;;  %v5205_v24 = vperm.slane %v210_v12, 1 }
  0x43   :  { %1286 = vmatpush.bf16.msrb.mxu0 %v3832_v42  ;;  %v3484_v20 = vor.u32 %v4197_v16, %v3481_v17  ;;  %v4281_v25 = vld [vmem:[#allocation7 + $0x224] sm:$0xf]  ;;  %v3881_v29 = vld [vmem:[#allocation7 + $0x2a8] sm:$0xf0]  ;;  %v3487_v39 = vld [vmem:[#allocation2 + $0x90] sm:$0xf] }
  0x44   :  { %1375 = vmatpush.bf16.msrb.mxu1 %v3896_v45  ;;  %v4200_v40 = vld [vmem:[#allocation2 + $0x94] sm:$0xf0]  ;;  %v3489_v42 = vld [vmem:[#allocation2 + $0x98] sm:$0xf0]  ;;  %v3815_v43 = vld [vmem:[#allocation7 + $0x220] sm:$0xf] }
  0x45   :  { %1464 = vmatpush.bf16.msrb.mxu2 %v3836_v37  ;;  %v4282_v44 = vld [vmem:[#allocation7 + $0x224] sm:$0xf0]  ;;  %v3879_v45 = vld [vmem:[#allocation7 + $0x2a0] sm:$0xf]  ;;  %v3488_v49 = vor.u32 %v4200_v40, %v3487_v39  ;;  %v3505_v39 = vld [vmem:[#allocation2 + $0xb8] sm:$0xf0] }
  0x46   :  { %549 = vmatmul.bf16.gmra.mxu0 %v3424_v2  ;;  %1553 = vmatpush.bf16.msrb.mxu3 %v3900_v41  ;;  %v4199_v41 = vld [vmem:[#allocation2 + $0x94] sm:$0xf]  ;;  %v3816_v46 = vor.u32 %v4282_v44, %v3815_v43  ;;  %v4298_v47 = vld [vmem:[#allocation7 + $0x2a4] sm:$0xf0]  ;;  %v3807_v40 = vld [vmem:[#allocation7 + $0x210] sm:$0xf] }
  0x47   :  { %638 = vmatmul.bf16.gmra.mxu1 %v3428_v3  ;;  %v3492_v54 = vor.u32 %v4199_v41, %v3489_v42  ;;  %v4280_v41 = vld [vmem:[#allocation7 + $0x214] sm:$0xf0]  ;;  %v3871_v42 = vld [vmem:[#allocation7 + $0x290] sm:$0xf]  ;;  %s3395_s3 = sshll.u32 %s5160_s2, 4  ;;  %s3397_s13 = sshll.u32 %s6503_s4, 4  ;;  %s3396_s3 = int_to_ptr.vmem [resolvable:$true] %s3395_s3  ;;  %s3398_s13 = int_to_ptr.hbm [resolvable:$true] %s3397_s13 }
  0x48   :  { %727 = vmatmul.bf16.gmra.mxu2 %v3424_v2  ;;  %v4195_v2 = vld [vmem:[#allocation2 + $0x74] sm:$0xf]  ;;  %v3808_v43 = vor.u32 %v4280_v41, %v3807_v40  ;;  %v4296_v44 = vld [vmem:[#allocation7 + $0x294] sm:$0xf0]  ;;  %v3519_v41 = vld [vmem:[#allocation2 + $0xd0] sm:$0xf] }
  0x49   :  { %816 = vmatmul.bf16.gmra.mxu3 %v3428_v3  ;;  %1465 = vmatpush.bf16.msrb.mxu2 %v3828_v61  ;;  %v3473_v3 = vld [vmem:[#allocation2 + $0x78] sm:$0xf0]  ;;  %s5161_s14 = smov 256   ;;  %s5162_s15 = smov 16  }
  0x4a   :  { %1554 = vmatpush.bf16.msrb.mxu3 %v3892_v63  ;;  %v3476_v5 = vor.u32 %v4195_v2, %v3473_v3  ;;  %v3495_v3 = vld [vmem:[#allocation2 + $0xa0] sm:$0xf] }
  0x56   :  { %554 = vmatmul.bf16.gmra.mxu0 %v3432_v8 }
  0x57   :  { %643 = vmatmul.bf16.gmra.mxu1 %v3436_v9 }
  0x58   :  { %732 = vmatmul.bf16.gmra.mxu2 %v3432_v8  ;;  %v3887_v8 = vld [vmem:[#allocation7 + $0x2b0] sm:$0xf] }
  0x59   :  { %821 = vmatmul.bf16.gmra.mxu3 %v3436_v9  ;;  %v3824_v9 = vor.u32 %v4284_v7, %v3823_v6  ;;  %v3888_v11 = vor.u32 %v4300_v10, %v3887_v8  ;;  %v3497_v6 = vld [vmem:[#allocation2 + $0xa8] sm:$0xf0] }
  0x5b   :  { %1287 = vmatpush.bf16.msrb.mxu0 %v3824_v9  ;;  %1376 = vmatpush.bf16.msrb.mxu1 %v3888_v11 }
  0x5f   :  { %1288 = vmatpush.bf16.msrb.mxu0 %v3816_v46 }
  0x63   :  { %1289 = vmatpush.bf16.msrb.mxu0 %v3808_v43  ;;  %v4207_v43 = vld [vmem:[#allocation2 + $0xd4] sm:$0xf] }
  0x66   :  { %559 = vmatmul.bf16.gmra.mxu0 %v3440_v26 }
  0x67   :  { %648 = vmatmul.bf16.gmra.mxu1 %v3444_v27 }
  0x68   :  { %737 = vmatmul.bf16.gmra.mxu2 %v3440_v26  ;;  %v3817_v26 = vld [vmem:[#allocation7 + $0x228] sm:$0xf0] }
  0x69   :  { %826 = vmatmul.bf16.gmra.mxu3 %v3444_v27  ;;  %v4297_v27 = vld [vmem:[#allocation7 + $0x2a4] sm:$0xf]  ;;  %v3820_v28 = vor.u32 %v4281_v25, %v3817_v26 }
  0x6a   :  { %v3884_v31 = vor.u32 %v4297_v27, %v3881_v29 }
  0x6b   :  { %1466 = vmatpush.bf16.msrb.mxu2 %v3820_v28 }
  0x6c   :  { %1555 = vmatpush.bf16.msrb.mxu3 %v3884_v31 }
  0x76   :  { %564 = vmatmul.bf16.gmra.mxu0 %v3448_v32 }
  0x77   :  { %653 = vmatmul.bf16.gmra.mxu1 %v3452_v33 }
  0x78   :  { %742 = vmatmul.bf16.gmra.mxu2 %v3448_v32 }
  0x79   :  { %831 = vmatmul.bf16.gmra.mxu3 %v3452_v33 }
  0x86   :  { %569 = vmatmul.bf16.gmra.mxu0 %v3456_v50 }
  0x87   :  { %658 = vmatmul.bf16.gmra.mxu1 %v3460_v51 }
  0x88   :  { %747 = vmatmul.bf16.gmra.mxu2 %v3456_v50  ;;  %v3880_v50 = vor.u32 %v4298_v47, %v3879_v45  ;;  %v3872_v47 = vor.u32 %v4296_v44, %v3871_v42  ;;  %v4208_v42 = vld [vmem:[#allocation2 + $0xd4] sm:$0xf0]  ;;  %v3521_v44 = vld [vmem:[#allocation2 + $0xd8] sm:$0xf0] }
  0x89   :  { %836 = vmatmul.bf16.gmra.mxu3 %v3460_v51 }
  0x8a   :  { %1377 = vmatpush.bf16.msrb.mxu1 %v3880_v50 }
  0x8e   :  { %1378 = vmatpush.bf16.msrb.mxu1 %v3872_v47  ;;  %v3863_v47 = vld [vmem:[#allocation7 + $0x280] sm:$0xf] }
  0x96   :  { %574 = vmatmul.bf16.gmra.mxu0 %v3464_v56 }
  0x97   :  { %663 = vmatmul.bf16.gmra.mxu1 %v3468_v57 }
  0x98   :  { %752 = vmatmul.bf16.gmra.mxu2 %v3464_v56 }
  0x99   :  { %841 = vmatmul.bf16.gmra.mxu3 %v3468_v57 }
  0xa6   :  { %579 = vmatmul.bf16.gmra.mxu0 %v3472_v4 }
  0xa7   :  { %668 = vmatmul.bf16.gmra.mxu1 %v3476_v5 }
  0xa8   :  { %757 = vmatmul.bf16.gmra.mxu2 %v3472_v4  ;;  %v4202_v4 = vld [vmem:[#allocation2 + $0xa4] sm:$0xf0] }
  0xa9   :  { %846 = vmatmul.bf16.gmra.mxu3 %v3476_v5  ;;  %v4201_v5 = vld [vmem:[#allocation2 + $0xa4] sm:$0xf]  ;;  %v3496_v8 = vor.u32 %v4202_v4, %v3495_v3  ;;  %v3511_v4 = vld [vmem:[#allocation2 + $0xc0] sm:$0xf] }
  0xaa   :  { %v3500_v12 = vor.u32 %v4201_v5, %v3497_v6  ;;  %v4206_v5 = vld [vmem:[#allocation2 + $0xc4] sm:$0xf0]  ;;  %v4205_v6 = vld [vmem:[#allocation2 + $0xc4] sm:$0xf] }
  0xb3   :  { %v545_v19 = vpop.f32.mrf.mxu0 }
  0xb4   :  { %v546_v21 = vadd.f32 %v545_v19, %v5200_v15  ;;  %v634_v22 = vpop.f32.mrf.mxu1  ;;  %v3809_v19 = vld [vmem:[#allocation7 + $0x218] sm:$0xf0] }
  0xb6   :  { %v5203_v23 = vadd.f32 %v634_v22, %v546_v21  ;;  %584 = vmatmul.bf16.gmra.mxu0 %v3480_v18  ;;  %v3873_v22 = vld [vmem:[#allocation7 + $0x298] sm:$0xf0] }
  0xb7   :  { %673 = vmatmul.bf16.gmra.mxu1 %v3484_v20 }
  0xb8   :  { %762 = vmatmul.bf16.gmra.mxu2 %v3480_v18  ;;  %v4279_v18 = vld [vmem:[#allocation7 + $0x214] sm:$0xf] }
  0xb9   :  { %851 = vmatmul.bf16.gmra.mxu3 %v3484_v20  ;;  %v4295_v20 = vld [vmem:[#allocation7 + $0x294] sm:$0xf]  ;;  %v3812_v21 = vor.u32 %v4279_v18, %v3809_v19 }
  0xba   :  { %v3876_v26 = vor.u32 %v4295_v20, %v3873_v22  ;;  %v3801_v22 = vld [vmem:[#allocation7 + $0x208] sm:$0xf0] }
  0xbb   :  { %v723_v30 = vpop.f32.mrf.mxu2  ;;  %v547_v34 = vpop.f32.mrf.mxu0  ;;  %1467 = vmatpush.bf16.msrb.mxu2 %v3812_v21  ;;  %v4277_v21 = vld [vmem:[#allocation7 + $0x204] sm:$0xf] }
  0xbc   :  { %v724_v32 = vadd.f32 %v723_v30, %v5205_v24  ;;  %v812_v33 = vpop.f32.mrf.mxu3  ;;  %v548_v35 = vadd.f32 %v547_v34, %v5200_v15  ;;  %v636_v36 = vpop.f32.mrf.mxu1  ;;  %1556 = vmatpush.bf16.msrb.mxu3 %v3876_v26  ;;  %v3503_v34 = vld [vmem:[#allocation2 + $0xb0] sm:$0xf]  ;;  %v3804_v26 = vor.u32 %v4277_v21, %v3801_v22  ;;  %v3529_v21 = vld [vmem:[#allocation2 + $0xe8] sm:$0xf0] }
  0xbe   :  { %v5209_v37 = vadd.f32 %v812_v33, %v724_v32  ;;  %v5211_v38 = vadd.f32 %v636_v36, %v548_v35  ;;  %v4204_v35 = vld [vmem:[#allocation2 + $0xb4] sm:$0xf0]  ;;  %v4203_v36 = vld [vmem:[#allocation2 + $0xb4] sm:$0xf] }
  0xbf   :  { %v3504_v46 = vor.u32 %v4204_v35, %v3503_v34  ;;  %1468 = vmatpush.bf16.msrb.mxu2 %v3804_v26 }
  0xc3   :  { %v725_v48 = vpop.f32.mrf.mxu2  ;;  %v550_v53 = vpop.f32.mrf.mxu0 }
  0xc4   :  { %v726_v51 = vadd.f32 %v725_v48, %v5205_v24  ;;  %v814_v52 = vpop.f32.mrf.mxu3  ;;  %v551_v55 = vadd.f32 %v550_v53, %v5200_v15  ;;  %v639_v56 = vpop.f32.mrf.mxu1 }
  0xc6   :  { %v5215_v57 = vadd.f32 %v814_v52, %v726_v51  ;;  %v5217_v58 = vadd.f32 %v639_v56, %v551_v55  ;;  %589 = vmatmul.bf16.gmra.mxu0 %v3488_v49  ;;  %v3508_v51 = vor.u32 %v4203_v36, %v3505_v39 }
  0xc7   :  { %678 = vmatmul.bf16.gmra.mxu1 %v3492_v54 }
  0xc8   :  { %767 = vmatmul.bf16.gmra.mxu2 %v3488_v49 }
  0xc9   :  { %856 = vmatmul.bf16.gmra.mxu3 %v3492_v54 }
  0xcb   :  { %v728_v59 = vpop.f32.mrf.mxu2  ;;  %v552_v62 = vpop.f32.mrf.mxu0 }
  0xcc   :  { %v729_v60 = vadd.f32 %v728_v59, %v5205_v24  ;;  %v817_v61 = vpop.f32.mrf.mxu3  ;;  %v553_v63 = vadd.f32 %v552_v62, %v5200_v15  ;;  %v641_v0 = vpop.f32.mrf.mxu1 }
  0xce   :  { %v5221_v1 = vadd.f32 %v817_v61, %v729_v60  ;;  %v5223_v2 = vadd.f32 %v641_v0, %v553_v63 }
  0xd3   :  { %v730_v7 = vpop.f32.mrf.mxu2  ;;  %v555_v11 = vpop.f32.mrf.mxu0 }
  0xd4   :  { %v731_v9 = vadd.f32 %v730_v7, %v5205_v24  ;;  %v819_v10 = vpop.f32.mrf.mxu3  ;;  %v556_v13 = vadd.f32 %v555_v11, %v5200_v15  ;;  %v644_v14 = vpop.f32.mrf.mxu1  ;;  %v3513_v7 = vld [vmem:[#allocation2 + $0xc8] sm:$0xf0] }
  0xd6   :  { %v5227_v16 = vadd.f32 %v819_v10, %v731_v9  ;;  %v5229_v17 = vadd.f32 %v644_v14, %v556_v13  ;;  %594 = vmatmul.bf16.gmra.mxu0 %v3496_v8  ;;  %v3512_v9 = vor.u32 %v4206_v5, %v3511_v4  ;;  %v3516_v13 = vor.u32 %v4205_v6, %v3513_v7 }
  0xd7   :  { %683 = vmatmul.bf16.gmra.mxu1 %v3500_v12 }
  0xd8   :  { %772 = vmatmul.bf16.gmra.mxu2 %v3496_v8 }
  0xd9   :  { %861 = vmatmul.bf16.gmra.mxu3 %v3500_v12 }
  0xdb   :  { %v733_v25 = vpop.f32.mrf.mxu2  ;;  %v557_v29 = vpop.f32.mrf.mxu0 }
  0xdc   :  { %v734_v27 = vadd.f32 %v733_v25, %v5205_v24  ;;  %v822_v28 = vpop.f32.mrf.mxu3  ;;  %v558_v30 = vadd.f32 %v557_v29, %v5200_v15  ;;  %v646_v31 = vpop.f32.mrf.mxu1  ;;  %v4293_v25 = vld [vmem:[#allocation7 + $0x284] sm:$0xf] }
  0xde   :  { %v5233_v32 = vadd.f32 %v822_v28, %v734_v27  ;;  %v5235_v33 = vadd.f32 %v646_v31, %v558_v30  ;;  %v3865_v27 = vld [vmem:[#allocation7 + $0x288] sm:$0xf0] }
  0xdf   :  { %v3868_v29 = vor.u32 %v4293_v25, %v3865_v27 }
  0xe1   :  { %1557 = vmatpush.bf16.msrb.mxu3 %v3868_v29 }
  0xe3   :  { %v735_v45 = vpop.f32.mrf.mxu2  ;;  %v560_v50 = vpop.f32.mrf.mxu0 }
  0xe4   :  { %v736_v48 = vadd.f32 %v735_v45, %v5205_v24  ;;  %v824_v49 = vpop.f32.mrf.mxu3  ;;  %v561_v52 = vadd.f32 %v560_v50, %v5200_v15  ;;  %v649_v53 = vpop.f32.mrf.mxu1  ;;  %v3799_v45 = vld [vmem:[#allocation7 + $0x200] sm:$0xf] }
  0xe6   :  { %v5239_v54 = vadd.f32 %v824_v49, %v736_v48  ;;  %v5241_v55 = vadd.f32 %v649_v53, %v561_v52  ;;  %599 = vmatmul.bf16.gmra.mxu0 %v3504_v46  ;;  %v4294_v49 = vld [vmem:[#allocation7 + $0x284] sm:$0xf0] }
  0xe7   :  { %688 = vmatmul.bf16.gmra.mxu1 %v3508_v51  ;;  %v3864_v52 = vor.u32 %v4294_v49, %v3863_v47 }
  0xe8   :  { %777 = vmatmul.bf16.gmra.mxu2 %v3504_v46  ;;  %v4278_v46 = vld [vmem:[#allocation7 + $0x204] sm:$0xf0] }
  0xe9   :  { %866 = vmatmul.bf16.gmra.mxu3 %v3508_v51  ;;  %v3800_v48 = vor.u32 %v4278_v46, %v3799_v45  ;;  %v3520_v51 = vor.u32 %v4208_v42, %v3519_v41  ;;  %1379 = vmatpush.bf16.msrb.mxu1 %v3864_v52  ;;  %v3985_v41 = vld [vmem:[#allocation7 + $0x178] sm:$0xf0]  ;;  %v4339_v42 = vld [vmem:[#allocation7 + $0x1f4] sm:$0xf] }
  0xeb   :  { %v738_v56 = vpop.f32.mrf.mxu2  ;;  %v562_v61 = vpop.f32.mrf.mxu0  ;;  %1290 = vmatpush.bf16.msrb.mxu0 %v3800_v48 }
  0xec   :  { %v739_v59 = vadd.f32 %v738_v56, %v5205_v24  ;;  %v827_v60 = vpop.f32.mrf.mxu3  ;;  %v563_v62 = vadd.f32 %v562_v61, %v5200_v15  ;;  %v651_v63 = vpop.f32.mrf.mxu1 }
  0xee   :  { %v5245_v0 = vadd.f32 %v827_v60, %v739_v59  ;;  %v5247_v3 = vadd.f32 %v651_v63, %v563_v62  ;;  %v3524_v60 = vor.u32 %v4207_v43, %v3521_v44  ;;  %v4049_v44 = vld [vmem:[#allocation7 + $0x1f8] sm:$0xf0] }
  0xef   :  { %v4052_v46 = vor.u32 %v4339_v42, %v4049_v44 }
  0xf1   :  { %2395 = vmatpush.bf16.msra.mxu3 %v4052_v46  ;;  %v4214_v46 = vld [vmem:[#allocation5 + $0x4] sm:$0xf0] }
  0xf3   :  { %v740_v8 = vpop.f32.mrf.mxu2  ;;  %v565_v12 = vpop.f32.mrf.mxu0 }
  0xf4   :  { %v741_v10 = vadd.f32 %v740_v8, %v5205_v24  ;;  %v829_v11 = vpop.f32.mrf.mxu3  ;;  %v566_v14 = vadd.f32 %v565_v12, %v5200_v15  ;;  %v654_v18 = vpop.f32.mrf.mxu1 }
  0xf6   :  { %v5251_v19 = vadd.f32 %v829_v11, %v741_v10  ;;  %v5253_v20 = vadd.f32 %v654_v18, %v566_v14  ;;  %604 = vmatmul.bf16.gmra.mxu0 %v3512_v9  ;;  %v4210_v14 = vld [vmem:[#allocation2 + $0xe4] sm:$0xf0]  ;;  %v4209_v18 = vld [vmem:[#allocation2 + $0xe4] sm:$0xf] }
  0xf7   :  { %693 = vmatmul.bf16.gmra.mxu1 %v3516_v13  ;;  %v3532_v29 = vor.u32 %v4209_v18, %v3529_v21 }
  0xf8   :  { %782 = vmatmul.bf16.gmra.mxu2 %v3512_v9 }
  0xf9   :  { %871 = vmatmul.bf16.gmra.mxu3 %v3516_v13  ;;  %v3527_v13 = vld [vmem:[#allocation2 + $0xe0] sm:$0xf] }
  0xfa   :  { %v3528_v25 = vor.u32 %v4210_v14, %v3527_v13 }
  0xfb   :  { %v743_v28 = vpop.f32.mrf.mxu2  ;;  %v567_v34 = vpop.f32.mrf.mxu0 }
  0xfc   :  { %v744_v30 = vadd.f32 %v743_v28, %v5205_v24  ;;  %v832_v31 = vpop.f32.mrf.mxu3  ;;  %v568_v35 = vadd.f32 %v567_v34, %v5200_v15  ;;  %v656_v36 = vpop.f32.mrf.mxu1 }
  0xfe   :  { %v5257_v39 = vadd.f32 %v832_v31, %v744_v30  ;;  %v5259_v40 = vadd.f32 %v656_v36, %v568_v35  ;;  %v4323_v36 = vld [vmem:[#allocation7 + $0x174] sm:$0xf] }
  0xff   :  { %v3988_v43 = vor.u32 %v4323_v36, %v3985_v41 }
 0x101   :  { %2306 = vmatpush.bf16.msra.mxu2 %v3988_v43 }
 0x103   :  { %v745_v50 = vpop.f32.mrf.mxu2  ;;  %v570_v59 = vpop.f32.mrf.mxu0 }
 0x104   :  { %v746_v53 = vadd.f32 %v745_v50, %v5205_v24  ;;  %v834_v56 = vpop.f32.mrf.mxu3  ;;  %v571_v61 = vadd.f32 %v570_v59, %v5200_v15  ;;  %v659_v62 = vpop.f32.mrf.mxu1  ;;  %v4212_v59 = vld [vmem:[#allocation2 + $0xf4] sm:$0xf0] }
 0x106   :  { %v5263_v63 = vadd.f32 %v834_v56, %v746_v53  ;;  %v5265_v4 = vadd.f32 %v659_v62, %v571_v61  ;;  %609 = vmatmul.bf16.gmra.mxu0 %v3520_v51  ;;  %v3535_v56 = vld [vmem:[#allocation2 + $0xf0] sm:$0xf]  ;;  %v3537_v61 = vld [vmem:[#allocation2 + $0xf8] sm:$0xf0] }
 0x107   :  { %698 = vmatmul.bf16.gmra.mxu1 %v3524_v60  ;;  %v3983_v62 = vld [vmem:[#allocation7 + $0x170] sm:$0xf] }
 0x108   :  { %787 = vmatmul.bf16.gmra.mxu2 %v3520_v51 }
 0x109   :  { %876 = vmatmul.bf16.gmra.mxu3 %v3524_v60  ;;  %v4211_v60 = vld [vmem:[#allocation2 + $0xf4] sm:$0xf] }
 0x10b   :  { %v748_v5 = vpop.f32.mrf.mxu2  ;;  %v572_v8 = vpop.f32.mrf.mxu0 }
 0x10c   :  { %v749_v6 = vadd.f32 %v748_v5, %v5205_v24  ;;  %v837_v7 = vpop.f32.mrf.mxu3  ;;  %v573_v9 = vadd.f32 %v572_v8, %v5200_v15  ;;  %v661_v10 = vpop.f32.mrf.mxu1  ;;  %v4324_v5 = vld [vmem:[#allocation7 + $0x174] sm:$0xf0] }
 0x10d   :  { %v4340_v8 = vld [vmem:[#allocation7 + $0x1f4] sm:$0xf0] }
 0x10e   :  { %v5269_v11 = vadd.f32 %v837_v7, %v749_v6  ;;  %v5271_v12 = vadd.f32 %v661_v10, %v573_v9  ;;  %v4047_v6 = vld [vmem:[#allocation7 + $0x1f0] sm:$0xf]  ;;  %v3984_v7 = vor.u32 %v4324_v5, %v3983_v62  ;;  %v3536_v10 = vor.u32 %v4212_v59, %v3535_v56 }
 0x10f   :  { %v4048_v13 = vor.u32 %v4340_v8, %v4047_v6  ;;  %v3977_v8 = vld [vmem:[#allocation7 + $0x168] sm:$0xf0] }
 0x110   :  { %2128 = vmatpush.bf16.msra.mxu0 %v3984_v7  ;;  %v4321_v7 = vld [vmem:[#allocation7 + $0x164] sm:$0xf] }
 0x111   :  { %2217 = vmatpush.bf16.msra.mxu1 %v4048_v13  ;;  %v4041_v13 = vld [vmem:[#allocation7 + $0x1e8] sm:$0xf0] }
 0x113   :  { %v750_v22 = vpop.f32.mrf.mxu2  ;;  %v575_v28 = vpop.f32.mrf.mxu0 }
 0x114   :  { %v751_v26 = vadd.f32 %v750_v22, %v5205_v24  ;;  %v839_v27 = vpop.f32.mrf.mxu3  ;;  %v576_v30 = vadd.f32 %v575_v28, %v5200_v15  ;;  %v664_v31 = vpop.f32.mrf.mxu1  ;;  %v3540_v22 = vor.u32 %v4211_v60, %v3537_v61 }
 0x116   :  { %v5275_v34 = vadd.f32 %v839_v27, %v751_v26  ;;  %v5277_v35 = vadd.f32 %v664_v31, %v576_v30  ;;  %614 = vmatmul.bf16.gmra.mxu0 %v3528_v25 }
 0x117   :  { %703 = vmatmul.bf16.gmra.mxu1 %v3532_v29 }
 0x118   :  { %792 = vmatmul.bf16.gmra.mxu2 %v3528_v25 }
 0x119   :  { %881 = vmatmul.bf16.gmra.mxu3 %v3532_v29 }
 0x11b   :  { %v753_v45 = vpop.f32.mrf.mxu2  ;;  %v577_v49 = vpop.f32.mrf.mxu0 }
 0x11c   :  { %v754_v47 = vadd.f32 %v753_v45, %v5205_v24  ;;  %v842_v48 = vpop.f32.mrf.mxu3  ;;  %v578_v50 = vadd.f32 %v577_v49, %v5200_v15  ;;  %v666_v51 = vpop.f32.mrf.mxu1  ;;  %v3671_v45 = vld [vmem:[#allocation5] sm:$0xf] }
 0x11e   :  { %v5281_v52 = vadd.f32 %v842_v48, %v754_v47  ;;  %v5283_v53 = vadd.f32 %v666_v51, %v578_v50  ;;  %v4213_v47 = vld [vmem:[#allocation5 + $0x4] sm:$0xf]  ;;  %v3673_v48 = vld [vmem:[#allocation5 + $0x8] sm:$0xf0]  ;;  %v3672_v50 = vor.u32 %v4214_v46, %v3671_v45  ;;  %v3681_v45 = vld [vmem:[#allocation5 + $0x18] sm:$0xf0] }
 0x11f   :  { %v3676_v60 = vor.u32 %v4213_v47, %v3673_v48  ;;  %v3975_v46 = vld [vmem:[#allocation7 + $0x160] sm:$0xf]  ;;  %v4322_v47 = vld [vmem:[#allocation7 + $0x164] sm:$0xf0] }
 0x120   :  { %v4039_v48 = vld [vmem:[#allocation7 + $0x1e0] sm:$0xf] }
 0x123   :  { %v755_v9 = vpop.f32.mrf.mxu2  ;;  %v580_v21 = vpop.f32.mrf.mxu0 }
 0x124   :  { %v756_v14 = vadd.f32 %v755_v9, %v5205_v24  ;;  %v844_v18 = vpop.f32.mrf.mxu3  ;;  %v581_v25 = vadd.f32 %v580_v21, %v5200_v15  ;;  %v669_v26 = vpop.f32.mrf.mxu1  ;;  %v4337_v9 = vld [vmem:[#allocation7 + $0x1e4] sm:$0xf] }
 0x126   :  { %v5287_v27 = vadd.f32 %v844_v18, %v756_v14  ;;  %v5289_v28 = vadd.f32 %v669_v26, %v581_v25  ;;  %619 = vmatmul.bf16.gmra.mxu0 %v3536_v10  ;;  %v4044_v18 = vor.u32 %v4337_v9, %v4041_v13 }
 0x127   :  { %708 = vmatmul.bf16.gmra.mxu1 %v3540_v22 }
 0x128   :  { %797 = vmatmul.bf16.gmra.mxu2 %v3536_v10  ;;  %v3980_v10 = vor.u32 %v4321_v7, %v3977_v8  ;;  %2396 = vmatpush.bf16.msra.mxu3 %v4044_v18 }
 0x129   :  { %886 = vmatmul.bf16.gmra.mxu3 %v3540_v22 }
 0x12a   :  { %2307 = vmatpush.bf16.msra.mxu2 %v3980_v10 }
 0x12b   :  { %v758_v29 = vpop.f32.mrf.mxu2  ;;  %v582_v36 = vpop.f32.mrf.mxu0 }
 0x12c   :  { %v759_v30 = vadd.f32 %v758_v29, %v5205_v24  ;;  %v847_v31 = vpop.f32.mrf.mxu3  ;;  %v583_v41 = vadd.f32 %v582_v36, %v5200_v15  ;;  %v671_v42 = vpop.f32.mrf.mxu1  ;;  %v3679_v36 = vld [vmem:[#allocation5 + $0x10] sm:$0xf] }
 0x12e   :  { %v5293_v43 = vadd.f32 %v847_v31, %v759_v30  ;;  %v5295_v44 = vadd.f32 %v671_v42, %v583_v41  ;;  %v4216_v41 = vld [vmem:[#allocation5 + $0x14] sm:$0xf0]  ;;  %v4215_v42 = vld [vmem:[#allocation5 + $0x14] sm:$0xf] }
 0x12f   :  { %v3684_v7 = vor.u32 %v4215_v42, %v3681_v45  ;;  %v4218_v42 = vld [vmem:[#allocation5 + $0x24] sm:$0xf0]  ;;  %v4217_v45 = vld [vmem:[#allocation5 + $0x24] sm:$0xf] }
 0x133   :  { %v760_v49 = vpop.f32.mrf.mxu2  ;;  %v585_v59 = vpop.f32.mrf.mxu0 }
 0x134   :  { %v761_v51 = vadd.f32 %v760_v49, %v5205_v24  ;;  %v849_v56 = vpop.f32.mrf.mxu3  ;;  %v586_v61 = vadd.f32 %v585_v59, %v5200_v15  ;;  %v674_v62 = vpop.f32.mrf.mxu1  ;;  %v3976_v49 = vor.u32 %v4322_v47, %v3975_v46  ;;  %v3689_v46 = vld [vmem:[#allocation5 + $0x28] sm:$0xf0] }
 0x136   :  { %v5299_v5 = vadd.f32 %v849_v56, %v761_v51  ;;  %v5301_v6 = vadd.f32 %v674_v62, %v586_v61  ;;  %1291 = vmatmul.bf16.vlgmr.msrb.gmra.mxu0 %v3672_v50  ;;  %v3680_v56 = vor.u32 %v4216_v41, %v3679_v36  ;;  %v3687_v41 = vld [vmem:[#allocation5 + $0x20] sm:$0xf] }
 0x137   :  { %1380 = vmatmul.bf16.vlgmr.msrb.gmra.mxu1 %v3676_v60  ;;  %2129 = vmatpush.bf16.msra.mxu0 %v3976_v49 }
 0x138   :  { %1469 = vmatmul.bf16.vlgmr.msrb.gmra.mxu2 %v3672_v50  ;;  %v4338_v50 = vld [vmem:[#allocation7 + $0x1e4] sm:$0xf0] }
 0x139   :  { %1558 = vmatmul.bf16.vlgmr.msrb.gmra.mxu3 %v3676_v60  ;;  %v4040_v59 = vor.u32 %v4338_v50, %v4039_v48  ;;  %v3688_v48 = vor.u32 %v4218_v42, %v3687_v41 }
 0x13b   :  { %v763_v14 = vpop.f32.mrf.mxu2  ;;  %v587_v25 = vpop.f32.mrf.mxu0  ;;  %2218 = vmatpush.bf16.msra.mxu1 %v4040_v59 }
 0x13c   :  { %v764_v21 = vadd.f32 %v763_v14, %v5205_v24  ;;  %v852_v22 = vpop.f32.mrf.mxu3  ;;  %v588_v26 = vadd.f32 %v587_v25, %v5200_v15  ;;  %v676_v29 = vpop.f32.mrf.mxu1 }
 0x13e   :  { %v5305_v30 = vadd.f32 %v852_v22, %v764_v21  ;;  %v5307_v31 = vadd.f32 %v676_v29, %v588_v26 }
 0x143   :  { %v765_v51 = vpop.f32.mrf.mxu2  ;;  %v590_v62 = vpop.f32.mrf.mxu0 }
 0x144   :  { %v766_v60 = vadd.f32 %v765_v51, %v5205_v24  ;;  %v854_v61 = vpop.f32.mrf.mxu3  ;;  %v591_v8 = vadd.f32 %v590_v62, %v5200_v15  ;;  %v679_v9 = vpop.f32.mrf.mxu1 }
 0x146   :  { %v5311_v10 = vadd.f32 %v854_v61, %v766_v60  ;;  %v5313_v13 = vadd.f32 %v679_v9, %v591_v8  ;;  %1296 = vmatmul.bf16.gmra.mxu0 %v3680_v56  ;;  %v3969_v8 = vld [vmem:[#allocation7 + $0x158] sm:$0xf0]  ;;  %v4335_v9 = vld [vmem:[#allocation7 + $0x1d4] sm:$0xf] }
 0x147   :  { %1385 = vmatmul.bf16.gmra.mxu1 %v3684_v7 }
 0x148   :  { %1474 = vmatmul.bf16.gmra.mxu2 %v3680_v56  ;;  %v3692_v56 = vor.u32 %v4217_v45, %v3689_v46 }
 0x149   :  { %1563 = vmatmul.bf16.gmra.mxu3 %v3684_v7  ;;  %v4319_v7 = vld [vmem:[#allocation7 + $0x154] sm:$0xf] }
 0x14b   :  { %v768_v14 = vpop.f32.mrf.mxu2  ;;  %v592_v22 = vpop.f32.mrf.mxu0 }
 0x14c   :  { %v769_v18 = vadd.f32 %v768_v14, %v5205_v24  ;;  %v857_v21 = vpop.f32.mrf.mxu3  ;;  %v593_v25 = vadd.f32 %v592_v22, %v5200_v15  ;;  %v681_v26 = vpop.f32.mrf.mxu1  ;;  %v3972_v14 = vor.u32 %v4319_v7, %v3969_v8  ;;  %v4336_v8 = vld [vmem:[#allocation7 + $0x1d4] sm:$0xf0] }
 0x14e   :  { %v5317_v29 = vadd.f32 %v857_v21, %v769_v18  ;;  %v5319_v36 = vadd.f32 %v681_v26, %v593_v25  ;;  %v4033_v18 = vld [vmem:[#allocation7 + $0x1d8] sm:$0xf0]  ;;  %2308 = vmatpush.bf16.msra.mxu2 %v3972_v14 }
 0x14f   :  { %v4036_v22 = vor.u32 %v4335_v9, %v4033_v18 }
 0x151   :  { %2397 = vmatpush.bf16.msra.mxu3 %v4036_v22 }
 0x153   :  { %v770_v47 = vpop.f32.mrf.mxu2  ;;  %v595_v51 = vpop.f32.mrf.mxu0 }
 0x154   :  { %v771_v49 = vadd.f32 %v770_v47, %v5205_v24  ;;  %v859_v50 = vpop.f32.mrf.mxu3  ;;  %v596_v59 = vadd.f32 %v595_v51, %v5200_v15  ;;  %v684_v60 = vpop.f32.mrf.mxu1  ;;  %v3697_v51 = vld [vmem:[#allocation5 + $0x38] sm:$0xf0] }
 0x156   :  { %v5323_v61 = vadd.f32 %v859_v50, %v771_v49  ;;  %v5325_v62 = vadd.f32 %v684_v60, %v596_v59  ;;  %1301 = vmatmul.bf16.gmra.mxu0 %v3688_v48  ;;  %v4220_v49 = vld [vmem:[#allocation5 + $0x34] sm:$0xf0]  ;;  %v4219_v50 = vld [vmem:[#allocation5 + $0x34] sm:$0xf]  ;;  %v4031_v60 = vld [vmem:[#allocation7 + $0x1d0] sm:$0xf] }
 0x157   :  { %1390 = vmatmul.bf16.gmra.mxu1 %v3692_v56  ;;  %v4320_v59 = vld [vmem:[#allocation7 + $0x154] sm:$0xf0]  ;;  %v4032_v14 = vor.u32 %v4336_v8, %v4031_v60  ;;  %v3703_v8 = vld [vmem:[#allocation5 + $0x40] sm:$0xf] }
 0x158   :  { %6637 = vst [vmem:[#allocation15_spill] sm:$0xff] %v5325_v62  ;;  %1479 = vmatmul.bf16.gmra.mxu2 %v3688_v48  ;;  %v3695_v48 = vld [vmem:[#allocation5 + $0x30] sm:$0xf] }
 0x159   :  { %1568 = vmatmul.bf16.gmra.mxu3 %v3692_v56  ;;  %v3967_v56 = vld [vmem:[#allocation7 + $0x150] sm:$0xf]  ;;  %v3696_v18 = vor.u32 %v4220_v49, %v3695_v48  ;;  %2219 = vmatpush.bf16.msra.mxu1 %v4032_v14  ;;  %v4221_v14 = vld [vmem:[#allocation5 + $0x44] sm:$0xf] }
 0x15a   :  { %v3968_v7 = vor.u32 %v4320_v59, %v3967_v56 }
 0x15b   :  { %v773_v21 = vpop.f32.mrf.mxu2  ;;  %v597_v41 = vpop.f32.mrf.mxu0 }
 0x15c   :  { %v774_v25 = vadd.f32 %v773_v21, %v5205_v24  ;;  %v862_v26 = vpop.f32.mrf.mxu3  ;;  %v598_v42 = vadd.f32 %v597_v41, %v5200_v15  ;;  %v686_v45 = vpop.f32.mrf.mxu1  ;;  %2130 = vmatpush.bf16.msra.mxu0 %v3968_v7 }
 0x15e   :  { %v5329_v46 = vadd.f32 %v862_v26, %v774_v25  ;;  %v5331_v47 = vadd.f32 %v686_v45, %v598_v42  ;;  %v3700_v25 = vor.u32 %v4219_v50, %v3697_v51 }
 0x160   :  { %6638 = vst [vmem:[#allocation16_spill] sm:$0xff] %v5329_v46 }
 0x161   :  { %6639 = vst [vmem:[#allocation17_spill] sm:$0xff] %v5331_v47 }
 0x163   :  { %v775_v9 = vpop.f32.mrf.mxu2  ;;  %v600_v22 = vpop.f32.mrf.mxu0 }
 0x164   :  { %v776_v21 = vadd.f32 %v775_v9, %v5205_v24  ;;  %v864_v41 = vpop.f32.mrf.mxu3  ;;  %v601_v26 = vadd.f32 %v600_v22, %v5200_v15  ;;  %v689_v42 = vpop.f32.mrf.mxu1  ;;  %v4222_v9 = vld [vmem:[#allocation5 + $0x44] sm:$0xf0] }
 0x165   :  { %v3704_v22 = vor.u32 %v4222_v9, %v3703_v8  ;;  %v4025_v9 = vld [vmem:[#allocation7 + $0x1c8] sm:$0xf0] }
 0x166   :  { %v5335_v45 = vadd.f32 %v864_v41, %v776_v21  ;;  %v5337_v46 = vadd.f32 %v689_v42, %v601_v26  ;;  %1306 = vmatmul.bf16.gmra.mxu0 %v3696_v18  ;;  %v3705_v21 = vld [vmem:[#allocation5 + $0x48] sm:$0xf0] }
 0x167   :  { %1395 = vmatmul.bf16.gmra.mxu1 %v3700_v25  ;;  %v3708_v42 = vor.u32 %v4221_v14, %v3705_v21 }
 0x168   :  { %6640 = vst [vmem:[#allocation18_spill] sm:$0xff] %v5335_v45  ;;  %1484 = vmatmul.bf16.gmra.mxu2 %v3696_v18 }
 0x169   :  { %6641 = vst [vmem:[#allocation19_spill] sm:$0xff] %v5337_v46  ;;  %1573 = vmatmul.bf16.gmra.mxu3 %v3700_v25 }
 0x16b   :  { %v778_v48 = vpop.f32.mrf.mxu2  ;;  %v602_v59 = vpop.f32.mrf.mxu0 }
 0x16c   :  { %v779_v49 = vadd.f32 %v778_v48, %v5205_v24  ;;  %v867_v56 = vpop.f32.mrf.mxu3  ;;  %v603_v50 = vadd.f32 %v602_v59, %v5200_v15  ;;  %v691_v51 = vpop.f32.mrf.mxu1 }
 0x16e   :  { %v5341_v60 = vadd.f32 %v867_v56, %v779_v49  ;;  %v5343_v7 = vadd.f32 %v691_v51, %v603_v50  ;;  %v4317_v56 = vld [vmem:[#allocation7 + $0x144] sm:$0xf]  ;;  %v3961_v50 = vld [vmem:[#allocation7 + $0x148] sm:$0xf0] }
 0x16f   :  { %v4333_v51 = vld [vmem:[#allocation7 + $0x1c4] sm:$0xf]  ;;  %v3964_v8 = vor.u32 %v4317_v56, %v3961_v50  ;;  %v3713_v56 = vld [vmem:[#allocation5 + $0x58] sm:$0xf0]  ;;  %v3959_v50 = vld [vmem:[#allocation7 + $0x140] sm:$0xf] }
 0x170   :  { %6642 = vst [vmem:[#allocation20_spill] sm:$0xff] %v5341_v60  ;;  %v4028_v60 = vor.u32 %v4333_v51, %v4025_v9  ;;  %v4023_v51 = vld [vmem:[#allocation7 + $0x1c0] sm:$0xf] }
 0x171   :  { %6643 = vst [vmem:[#allocation21_spill] sm:$0xff] %v5343_v7  ;;  %2309 = vmatpush.bf16.msra.mxu2 %v3964_v8 }
 0x172   :  { %2398 = vmatpush.bf16.msra.mxu3 %v4028_v60 }
 0x173   :  { %v780_v41 = vpop.f32.mrf.mxu2  ;;  %v605_v26 = vpop.f32.mrf.mxu0 }
 0x174   :  { %v781_v18 = vadd.f32 %v780_v41, %v5205_v24  ;;  %v869_v25 = vpop.f32.mrf.mxu3  ;;  %v606_v48 = vadd.f32 %v605_v26, %v5200_v15  ;;  %v694_v46 = vpop.f32.mrf.mxu1 }
 0x176   :  { %v5347_v59 = vadd.f32 %v869_v25, %v781_v18  ;;  %v5349_v49 = vadd.f32 %v694_v46, %v606_v48  ;;  %1311 = vmatmul.bf16.gmra.mxu0 %v3704_v22  ;;  %v4224_v48 = vld [vmem:[#allocation5 + $0x54] sm:$0xf0] }
 0x177   :  { %1400 = vmatmul.bf16.gmra.mxu1 %v3708_v42 }
 0x178   :  { %6644 = vst [vmem:[#allocation22_spill] sm:$0xff] %v5347_v59  ;;  %1489 = vmatmul.bf16.gmra.mxu2 %v3704_v22  ;;  %v4318_v59 = vld [vmem:[#allocation7 + $0x144] sm:$0xf0] }
 0x179   :  { %6645 = vst [vmem:[#allocation23_spill] sm:$0xff] %v5349_v49  ;;  %1578 = vmatmul.bf16.gmra.mxu3 %v3708_v42  ;;  %v3711_v42 = vld [vmem:[#allocation5 + $0x50] sm:$0xf]  ;;  %v4223_v49 = vld [vmem:[#allocation5 + $0x54] sm:$0xf]  ;;  %v3960_v9 = vor.u32 %v4318_v59, %v3959_v50 }
 0x17a   :  { %v3712_v62 = vor.u32 %v4224_v48, %v3711_v42 }
 0x17b   :  { %v783_v41 = vpop.f32.mrf.mxu2  ;;  %v607_v26 = vpop.f32.mrf.mxu0  ;;  %2131 = vmatpush.bf16.msra.mxu0 %v3960_v9  ;;  %v4226_v9 = vld [vmem:[#allocation5 + $0x64] sm:$0xf0] }
 0x17c   :  { %v784_v14 = vadd.f32 %v783_v41, %v5205_v24  ;;  %v872_v21 = vpop.f32.mrf.mxu3  ;;  %v608_v18 = vadd.f32 %v607_v26, %v5200_v15  ;;  %v696_v46 = vpop.f32.mrf.mxu1  ;;  %v4334_v41 = vld [vmem:[#allocation7 + $0x1c4] sm:$0xf0] }
 0x17d   :  { %v4024_v8 = vor.u32 %v4334_v41, %v4023_v51  ;;  %v4225_v41 = vld [vmem:[#allocation5 + $0x64] sm:$0xf] }
 0x17e   :  { %v5353_v25 = vadd.f32 %v872_v21, %v784_v14  ;;  %v5355_v22 = vadd.f32 %v696_v46, %v608_v18  ;;  %v3716_v14 = vor.u32 %v4223_v49, %v3713_v56 }
 0x17f   :  { %2220 = vmatpush.bf16.msra.mxu1 %v4024_v8  ;;  %v3721_v8 = vld [vmem:[#allocation5 + $0x68] sm:$0xf0] }
 0x180   :  { %6646 = vst [vmem:[#allocation24_spill] sm:$0xff] %v5353_v25 }
 0x181   :  { %6647 = vst [vmem:[#allocation25_spill] sm:$0xff] %v5355_v22 }
 0x183   :  { %v785_v7 = vpop.f32.mrf.mxu2  ;;  %v610_v60 = vpop.f32.mrf.mxu0 }
 0x184   :  { %v786_v26 = vadd.f32 %v785_v7, %v5205_v24  ;;  %v874_v45 = vpop.f32.mrf.mxu3  ;;  %v611_v21 = vadd.f32 %v610_v60, %v5200_v15  ;;  %v699_v18 = vpop.f32.mrf.mxu1 }
 0x186   :  { %v5359_v46 = vadd.f32 %v874_v45, %v786_v26  ;;  %v5361_v25 = vadd.f32 %v699_v18, %v611_v21  ;;  %1316 = vmatmul.bf16.gmra.mxu0 %v3712_v62  ;;  %v3719_v45 = vld [vmem:[#allocation5 + $0x60] sm:$0xf]  ;;  %v3724_v18 = vor.u32 %v4225_v41, %v3721_v8 }
 0x187   :  { %1405 = vmatmul.bf16.gmra.mxu1 %v3716_v14  ;;  %v3720_v60 = vor.u32 %v4226_v9, %v3719_v45 }
 0x188   :  { %6648 = vst [vmem:[#allocation26_spill] sm:$0xff] %v5359_v46  ;;  %1494 = vmatmul.bf16.gmra.mxu2 %v3712_v62 }
 0x189   :  { %6649 = vst [vmem:[#allocation27_spill] sm:$0xff] %v5361_v25  ;;  %1583 = vmatmul.bf16.gmra.mxu3 %v3716_v14 }
 0x18b   :  { %v788_v59 = vpop.f32.mrf.mxu2  ;;  %v612_v48 = vpop.f32.mrf.mxu0 }
 0x18c   :  { %v789_v42 = vadd.f32 %v788_v59, %v5205_v24  ;;  %v877_v7 = vpop.f32.mrf.mxu3  ;;  %v613_v49 = vadd.f32 %v612_v48, %v5200_v15  ;;  %v701_v56 = vpop.f32.mrf.mxu1 }
 0x18e   :  { %v5365_v50 = vadd.f32 %v877_v7, %v789_v42  ;;  %v5367_v51 = vadd.f32 %v701_v56, %v613_v49 }
 0x190   :  { %6650 = vst [vmem:[#allocation28_spill] sm:$0xff] %v5365_v50  ;;  %v4017_v50 = vld [vmem:[#allocation7 + $0x1b8] sm:$0xf0] }
 0x191   :  { %6651 = vst [vmem:[#allocation29_spill] sm:$0xff] %v5367_v51 }
 0x193   :  { %v790_v26 = vpop.f32.mrf.mxu2  ;;  %v615_v21 = vpop.f32.mrf.mxu0 }
 0x194   :  { %v791_v62 = vadd.f32 %v790_v26, %v5205_v24  ;;  %v879_v14 = vpop.f32.mrf.mxu3  ;;  %v616_v59 = vadd.f32 %v615_v21, %v5200_v15  ;;  %v704_v25 = vpop.f32.mrf.mxu1  ;;  %v3953_v21 = vld [vmem:[#allocation7 + $0x138] sm:$0xf0] }
 0x196   :  { %v5371_v48 = vadd.f32 %v879_v14, %v791_v62  ;;  %v5373_v42 = vadd.f32 %v704_v25, %v616_v59  ;;  %1321 = vmatmul.bf16.gmra.mxu0 %v3720_v60  ;;  %v3727_v62 = vld [vmem:[#allocation5 + $0x70] sm:$0xf]  ;;  %v4228_v14 = vld [vmem:[#allocation5 + $0x74] sm:$0xf0]  ;;  %v4315_v25 = vld [vmem:[#allocation7 + $0x134] sm:$0xf] }
 0x197   :  { %1410 = vmatmul.bf16.gmra.mxu1 %v3724_v18  ;;  %v4331_v59 = vld [vmem:[#allocation7 + $0x1b4] sm:$0xf]  ;;  %v3728_v51 = vor.u32 %v4228_v14, %v3727_v62  ;;  %v4015_v62 = vld [vmem:[#allocation7 + $0x1b0] sm:$0xf] }
 0x198   :  { %6652 = vst [vmem:[#allocation30_spill] sm:$0xff] %v5371_v48  ;;  %1499 = vmatmul.bf16.gmra.mxu2 %v3720_v60  ;;  %v3729_v60 = vld [vmem:[#allocation5 + $0x78] sm:$0xf0]  ;;  %v4020_v48 = vor.u32 %v4331_v59, %v4017_v50  ;;  %v3951_v50 = vld [vmem:[#allocation7 + $0x130] sm:$0xf] }
 0x199   :  { %6653 = vst [vmem:[#allocation31_spill] sm:$0xff] %v5373_v42  ;;  %1588 = vmatmul.bf16.gmra.mxu3 %v3724_v18  ;;  %v4227_v42 = vld [vmem:[#allocation5 + $0x74] sm:$0xf]  ;;  %v3956_v18 = vor.u32 %v4315_v25, %v3953_v21  ;;  %v4316_v25 = vld [vmem:[#allocation7 + $0x134] sm:$0xf0] }
 0x19a   :  { %2399 = vmatpush.bf16.msra.mxu3 %v4020_v48  ;;  %v3952_v14 = vor.u32 %v4316_v25, %v3951_v50  ;;  %v4332_v21 = vld [vmem:[#allocation7 + $0x1b4] sm:$0xf0]  ;;  %v4229_v50 = vld [vmem:[#allocation5 + $0x84] sm:$0xf]  ;;  %v3737_v25 = vld [vmem:[#allocation5 + $0x88] sm:$0xf0] }
 0x19b   :  { %v793_v7 = vpop.f32.mrf.mxu2  ;;  %v617_v45 = vpop.f32.mrf.mxu0  ;;  %2310 = vmatpush.bf16.msra.mxu2 %v3956_v18  ;;  %v4016_v59 = vor.u32 %v4332_v21, %v4015_v62 }
 0x19c   :  { %v794_v49 = vadd.f32 %v793_v7, %v5205_v24  ;;  %v882_v56 = vpop.f32.mrf.mxu3  ;;  %v618_v9 = vadd.f32 %v617_v45, %v5200_v15  ;;  %v706_v26 = vpop.f32.mrf.mxu1  ;;  %2132 = vmatpush.bf16.msra.mxu0 %v3952_v14 }
 0x19d   :  { %2221 = vmatpush.bf16.msra.mxu1 %v4016_v59 }
 0x19e   :  { %v5377_v41 = vadd.f32 %v882_v56, %v794_v49  ;;  %v5379_v8 = vadd.f32 %v706_v26, %v618_v9  ;;  %v3732_v56 = vor.u32 %v4227_v42, %v3729_v60 }
 0x1a0   :  { %6654 = vst [vmem:[#allocation32_spill] sm:$0xff] %v5377_v41 }
 0x1a1   :  { %6655 = vst [vmem:[#allocation33_spill] sm:$0xff] %v5379_v8 }
 0x1a3   :  { %v795_v7 = vpop.f32.mrf.mxu2  ;;  %v620_v49 = vpop.f32.mrf.mxu0 }
 0x1a4   :  { %v796_v45 = vadd.f32 %v795_v7, %v5205_v24  ;;  %v884_v46 = vpop.f32.mrf.mxu3  ;;  %v621_v9 = vadd.f32 %v620_v49, %v5200_v15  ;;  %v709_v26 = vpop.f32.mrf.mxu1 }
 0x1a6   :  { %v5383_v41 = vadd.f32 %v884_v46, %v796_v45  ;;  %v5385_v8 = vadd.f32 %v709_v26, %v621_v9  ;;  %1326 = vmatmul.bf16.gmra.mxu0 %v3728_v51  ;;  %v3735_v9 = vld [vmem:[#allocation5 + $0x80] sm:$0xf] }
 0x1a7   :  { %1415 = vmatmul.bf16.gmra.mxu1 %v3732_v56 }
 0x1a8   :  { %6656 = vst [vmem:[#allocation34_spill] sm:$0xff] %v5383_v41  ;;  %1504 = vmatmul.bf16.gmra.mxu2 %v3728_v51  ;;  %v957_v51 = vld [vmem:[#allocation8 + $0x4] ss:$2 sm:$0x3] }
 0x1a9   :  { %6657 = vst [vmem:[#allocation35_spill] sm:$0xff] %v5385_v8  ;;  %1593 = vmatmul.bf16.gmra.mxu3 %v3732_v56  ;;  %v4230_v56 = vld [vmem:[#allocation5 + $0x84] sm:$0xf0]  ;;  %v5393_v26 = vperm.slane %v957_v51, 0  ;;  %v3740_v8 = vor.u32 %v4229_v50, %v3737_v25 }
 0x1aa   :  { %v3736_v14 = vor.u32 %v4230_v56, %v3735_v9 }
 0x1ab   :  { %v798_v18 = vpop.f32.mrf.mxu2  ;;  %v622_v60 = vpop.f32.mrf.mxu0 }
 0x1ac   :  { %v799_v48 = vadd.f32 %v798_v18, %v5205_v24  ;;  %v887_v42 = vpop.f32.mrf.mxu3  ;;  %v623_v46 = vadd.f32 %v622_v60, %v5200_v15  ;;  %v711_v7 = vpop.f32.mrf.mxu1 }
 0x1ae   :  { %v5389_v45 = vadd.f32 %v887_v42, %v799_v48  ;;  %v5391_v49 = vadd.f32 %v711_v7, %v623_v46  ;;  %v5399_v46 = vperm.slane %v957_v51, 1  ;;  %v4231_v51 = vld [vmem:[#allocation5 + $0x94] sm:$0xf] }
 0x1b0   :  { %6658 = vst [vmem:[#allocation36_spill] sm:$0xff] %v5389_v45  ;;  %v3743_v45 = vld [vmem:[#allocation5 + $0x90] sm:$0xf] }
 0x1b1   :  { %6659 = vst [vmem:[#allocation37_spill] sm:$0xff] %v5391_v49 }
 0x1b3   :  { %v800_v62 = vpop.f32.mrf.mxu2  ;;  %v1292_v59 = vpop.f32.mrf.mxu0 }
 0x1b4   :  { %v801_v21 = vadd.f32 %v800_v62, %v5205_v24  ;;  %v889_v18 = vpop.f32.mrf.mxu3  ;;  %v1293_v15 = vadd.f32 %v1292_v59, %v5393_v26  ;;  %v1381_v48 = vpop.f32.mrf.mxu1 }
 0x1b6   :  { %v5397_v42 = vadd.f32 %v889_v18, %v801_v21  ;;  %v1382_v60 = vadd.f32 %v1381_v48, %v1293_v15  ;;  %1331 = vmatmul.bf16.gmra.mxu0 %v3736_v14  ;;  %v4232_v21 = vld [vmem:[#allocation5 + $0x94] sm:$0xf0]  ;;  %v4313_v18 = vld [vmem:[#allocation7 + $0x124] sm:$0xf]  ;;  %v3945_v15 = vld [vmem:[#allocation7 + $0x128] sm:$0xf0] }
 0x1b7   :  { %1420 = vmatmul.bf16.gmra.mxu1 %v3740_v8  ;;  %v4329_v48 = vld [vmem:[#allocation7 + $0x1a4] sm:$0xf]  ;;  %v3744_v41 = vor.u32 %v4232_v21, %v3743_v45  ;;  %v4007_v21 = vld [vmem:[#allocation7 + $0x1a0] sm:$0xf] }
 0x1b8   :  { %6660 = vst [vmem:[#allocation38_spill] sm:$0xff] %v5397_v42  ;;  %1509 = vmatmul.bf16.gmra.mxu2 %v3736_v14  ;;  %4384 = vtanh.f32 %v1382_v60  ;;  %v3745_v14 = vld [vmem:[#allocation5 + $0x98] sm:$0xf0]  ;;  %v4009_v42 = vld [vmem:[#allocation7 + $0x1a8] sm:$0xf0] }
 0x1b9   :  { %1598 = vmatmul.bf16.gmra.mxu3 %v3740_v8  ;;  %v3948_v8 = vor.u32 %v4313_v18, %v3945_v15  ;;  %v4012_v49 = vor.u32 %v4329_v48, %v4009_v42  ;;  %v3943_v42 = vld [vmem:[#allocation7 + $0x120] sm:$0xf]  ;;  %v4330_v48 = vld [vmem:[#allocation7 + $0x1a4] sm:$0xf0] }
 0x1bb   :  { %v1470_v7 = vpop.f32.mrf.mxu2  ;;  %v1294_v24 = vpop.f32.mrf.mxu0  ;;  %2311 = vmatpush.bf16.msra.mxu2 %v3948_v8  ;;  %2400 = vmatpush.bf16.msra.mxu3 %v4012_v49  ;;  %v4314_v49 = vld [vmem:[#allocation7 + $0x124] sm:$0xf0] }
 0x1bc   :  { %v1471_v9 = vadd.f32 %v1470_v7, %v5399_v46  ;;  %v1559_v56 = vpop.f32.mrf.mxu3  ;;  %v1295_v62 = vadd.f32 %v1294_v24, %v5393_v26  ;;  %v1383_v50 = vpop.f32.mrf.mxu1  ;;  %v3944_v15 = vor.u32 %v4314_v49, %v3943_v42  ;;  %v4234_v42 = vld [vmem:[#allocation5 + $0xa4] sm:$0xf0]  ;;  %v4233_v49 = vld [vmem:[#allocation5 + $0xa4] sm:$0xf] }
 0x1be   :  { %v1560_v25 = vadd.f32 %v1559_v56, %v1471_v9  ;;  %v1384_v59 = vadd.f32 %v1383_v50, %v1295_v62  ;;  %v3748_v56 = vor.u32 %v4231_v51, %v3745_v14  ;;  %v5405_v50 = vpop.eup %4384  ;;  %v4008_v51 = vor.u32 %v4330_v48, %v4007_v21  ;;  %2133 = vmatpush.bf16.msra.mxu0 %v3944_v15  ;;  %v3753_v21 = vld [vmem:[#allocation5 + $0xa8] sm:$0xf0] }
 0x1bf   :  { %6661 = vst [vmem:[#allocation39_spill] sm:$0xff] %v5405_v50 }
 0x1c0   :  { %4386 = vtanh.f32 %v1384_v59  ;;  %2222 = vmatpush.bf16.msra.mxu1 %v4008_v51 }
 0x1c1   :  { %4388 = vtanh.f32 %v1560_v25 }
 0x1c3   :  { %v1472_v7 = vpop.f32.mrf.mxu2  ;;  %v1297_v9 = vpop.f32.mrf.mxu0 }
 0x1c4   :  { %v1473_v24 = vadd.f32 %v1472_v7, %v5399_v46  ;;  %v1561_v22 = vpop.f32.mrf.mxu3  ;;  %v1298_v60 = vadd.f32 %v1297_v9, %v5393_v26  ;;  %v1386_v62 = vpop.f32.mrf.mxu1 }
 0x1c6   :  { %v1562_v59 = vadd.f32 %v1561_v22, %v1473_v24  ;;  %v5407_v47 = vpop.eup %4386  ;;  %v1387_v18 = vadd.f32 %v1386_v62, %v1298_v60  ;;  %1336 = vmatmul.bf16.gmra.mxu0 %v3744_v41 }
 0x1c7   :  { %6662 = vst [vmem:[#allocation40_spill] sm:$0xff] %v5407_v47  ;;  %v5411_v45 = vpack.c.bf16 %v5407_v47, %v5405_v50  ;;  %1425 = vmatmul.bf16.gmra.mxu1 %v3748_v56  ;;  %v5414_v7 = vpop.eup %4388  ;;  %v3756_v47 = vor.u32 %v4233_v49, %v3753_v21 }
 0x1c8   :  { %4390 = vtanh.f32 %v1562_v59  ;;  %1514 = vmatmul.bf16.gmra.mxu2 %v3744_v41  ;;  %6664 = vst [vmem:[#allocation42_spill] sm:$0xff] %v5414_v7  ;;  %v3751_v59 = vld [vmem:[#allocation5 + $0xa0] sm:$0xf] }
 0x1c9   :  { %6663 = vst [vmem:[#allocation41_spill] sm:$0xff] %v5411_v45  ;;  %1603 = vmatmul.bf16.gmra.mxu3 %v3748_v56  ;;  %4392 = vtanh.f32 %v1387_v18  ;;  %v3752_v48 = vor.u32 %v4234_v42, %v3751_v59 }
 0x1cb   :  { %v1475_v22 = vpop.f32.mrf.mxu2  ;;  %v1299_v8 = vpop.f32.mrf.mxu0 }
 0x1cc   :  { %v1476_v25 = vadd.f32 %v1475_v22, %v5399_v46  ;;  %v1564_v14 = vpop.f32.mrf.mxu3  ;;  %v1300_v24 = vadd.f32 %v1299_v8, %v5393_v26  ;;  %v1388_v9 = vpop.f32.mrf.mxu1 }
 0x1ce   :  { %v5417_v41 = vpop.eup %4390  ;;  %v1565_v60 = vadd.f32 %v1564_v14, %v1476_v25  ;;  %v1389_v62 = vadd.f32 %v1388_v9, %v1300_v24 }
 0x1cf   :  { %6665 = vst [vmem:[#allocation43_spill] sm:$0xff] %v5417_v41  ;;  %v5421_v56 = vpack.c.bf16 %v5417_v41, %v5414_v7  ;;  %v5425_v50 = vpop.eup %4392 }
 0x1d0   :  { %4394 = vtanh.f32 %v1389_v62  ;;  %6667 = vst [vmem:[#allocation45_spill] sm:$0xff] %v5425_v50 }
 0x1d1   :  { %6666 = vst [vmem:[#allocation44_spill] sm:$0xff] %v5421_v56  ;;  %4396 = vtanh.f32 %v1565_v60 }
 0x1d3   :  { %v1477_v15 = vpop.f32.mrf.mxu2  ;;  %v1302_v8 = vpop.f32.mrf.mxu0 }
 0x1d4   :  { %v1478_v51 = vadd.f32 %v1477_v15, %v5399_v46  ;;  %v1566_v22 = vpop.f32.mrf.mxu3  ;;  %v1303_v25 = vadd.f32 %v1302_v8, %v5393_v26  ;;  %v1391_v14 = vpop.f32.mrf.mxu1  ;;  %v4236_v8 = vld [vmem:[#allocation5 + $0xb4] sm:$0xf0] }
 0x1d6   :  { %v1567_v41 = vadd.f32 %v1566_v22, %v1478_v51  ;;  %v5427_v24 = vpop.eup %4394  ;;  %v1392_v18 = vadd.f32 %v1391_v14, %v1303_v25  ;;  %1341 = vmatmul.bf16.gmra.mxu0 %v3752_v48  ;;  %v3937_v14 = vld [vmem:[#allocation7 + $0x118] sm:$0xf0] }
 0x1d7   :  { %6668 = vst [vmem:[#allocation46_spill] sm:$0xff] %v5427_v24  ;;  %1430 = vmatmul.bf16.gmra.mxu1 %v3756_v47  ;;  %v5431_v9 = vpack.c.bf16 %v5427_v24, %v5425_v50  ;;  %v5434_v21 = vpop.eup %4396  ;;  %v4235_v24 = vld [vmem:[#allocation5 + $0xb4] sm:$0xf]  ;;  %v3761_v50 = vld [vmem:[#allocation5 + $0xb8] sm:$0xf0] }
 0x1d8   :  { %4398 = vtanh.f32 %v1567_v41  ;;  %1519 = vmatmul.bf16.gmra.mxu2 %v3752_v48  ;;  %6670 = vst [vmem:[#allocation48_spill] sm:$0xff] %v5434_v21  ;;  %v3759_v48 = vld [vmem:[#allocation5 + $0xb0] sm:$0xf] }
 0x1d9   :  { %6669 = vst [vmem:[#allocation47_spill] sm:$0xff] %v5431_v9  ;;  %1608 = vmatmul.bf16.gmra.mxu3 %v3756_v47  ;;  %4400 = vtanh.f32 %v1392_v18  ;;  %v4311_v47 = vld [vmem:[#allocation7 + $0x114] sm:$0xf]  ;;  %v3760_v45 = vor.u32 %v4236_v8, %v3759_v48  ;;  %v3999_v48 = vld [vmem:[#allocation7 + $0x190] sm:$0xf] }
 0x1da   :  { %v3940_v7 = vor.u32 %v4311_v47, %v3937_v14 }
 0x1db   :  { %v1480_v62 = vpop.f32.mrf.mxu2  ;;  %v1304_v49 = vpop.f32.mrf.mxu0 }
 0x1dc   :  { %v1481_v59 = vadd.f32 %v1480_v62, %v5399_v46  ;;  %v1569_v42 = vpop.f32.mrf.mxu3  ;;  %v1305_v15 = vadd.f32 %v1304_v49, %v5393_v26  ;;  %v1393_v60 = vpop.f32.mrf.mxu1  ;;  %v4327_v62 = vld [vmem:[#allocation7 + $0x194] sm:$0xf]  ;;  %v4001_v49 = vld [vmem:[#allocation7 + $0x198] sm:$0xf0]  ;;  %2312 = vmatpush.bf16.msra.mxu2 %v3940_v7  ;;  %v3935_v7 = vld [vmem:[#allocation7 + $0x110] sm:$0xf] }
 0x1dd   :  { %v4004_v9 = vor.u32 %v4327_v62, %v4001_v49 }
 0x1de   :  { %v5437_v51 = vpop.eup %4398  ;;  %v1570_v41 = vadd.f32 %v1569_v42, %v1481_v59  ;;  %v1394_v22 = vadd.f32 %v1393_v60, %v1305_v15  ;;  %v3764_v60 = vor.u32 %v4235_v24, %v3761_v50 }
 0x1df   :  { %6671 = vst [vmem:[#allocation49_spill] sm:$0xff] %v5437_v51  ;;  %v5441_v25 = vpack.c.bf16 %v5437_v51, %v5434_v21  ;;  %2401 = vmatpush.bf16.msra.mxu3 %v4004_v9  ;;  %v5445_v21 = vpop.eup %4400  ;;  %v4328_v9 = vld [vmem:[#allocation7 + $0x194] sm:$0xf0] }
 0x1e0   :  { %4402 = vtanh.f32 %v1394_v22  ;;  %6673 = vst [vmem:[#allocation51_spill] sm:$0xff] %v5445_v21  ;;  %v4000_v8 = vor.u32 %v4328_v9, %v3999_v48  ;;  %v3769_v48 = vld [vmem:[#allocation5 + $0xc8] sm:$0xf0] }
 0x1e1   :  { %6672 = vst [vmem:[#allocation50_spill] sm:$0xff] %v5441_v25  ;;  %4404 = vtanh.f32 %v1570_v41 }
 0x1e2   :  { %2223 = vmatpush.bf16.msra.mxu1 %v4000_v8 }
 0x1e3   :  { %v1482_v56 = vpop.f32.mrf.mxu2  ;;  %v1307_v15 = vpop.f32.mrf.mxu0 }
 0x1e4   :  { %v1483_v59 = vadd.f32 %v1482_v56, %v5399_v46  ;;  %v1571_v42 = vpop.f32.mrf.mxu3  ;;  %v1308_v18 = vadd.f32 %v1307_v15, %v5393_v26  ;;  %v1396_v51 = vpop.f32.mrf.mxu1  ;;  %v4312_v56 = vld [vmem:[#allocation7 + $0x114] sm:$0xf0] }
 0x1e5   :  { %v3936_v24 = vor.u32 %v4312_v56, %v3935_v7  ;;  %v4238_v7 = vld [vmem:[#allocation5 + $0xc4] sm:$0xf0]  ;;  %v4237_v56 = vld [vmem:[#allocation5 + $0xc4] sm:$0xf] }
 0x1e6   :  { %v1572_v22 = vadd.f32 %v1571_v42, %v1483_v59  ;;  %v5447_v25 = vpop.eup %4402  ;;  %v1397_v47 = vadd.f32 %v1396_v51, %v1308_v18  ;;  %1346 = vmatmul.bf16.gmra.mxu0 %v3760_v45 }
 0x1e7   :  { %6674 = vst [vmem:[#allocation52_spill] sm:$0xff] %v5447_v25  ;;  %1435 = vmatmul.bf16.gmra.mxu1 %v3764_v60  ;;  %v5451_v50 = vpack.c.bf16 %v5447_v25, %v5445_v21  ;;  %2134 = vmatpush.bf16.msra.mxu0 %v3936_v24  ;;  %v5454_v49 = vpop.eup %4404  ;;  %v3772_v25 = vor.u32 %v4237_v56, %v3769_v48 }
 0x1e8   :  { %4406 = vtanh.f32 %v1572_v22  ;;  %1524 = vmatmul.bf16.gmra.mxu2 %v3760_v45  ;;  %6676 = vst [vmem:[#allocation54_spill] sm:$0xff] %v5454_v49  ;;  %v3767_v22 = vld [vmem:[#allocation5 + $0xc0] sm:$0xf] }
 0x1e9   :  { %6675 = vst [vmem:[#allocation53_spill] sm:$0xff] %v5451_v50  ;;  %1613 = vmatmul.bf16.gmra.mxu3 %v3764_v60  ;;  %4408 = vtanh.f32 %v1397_v47  ;;  %v3768_v9 = vor.u32 %v4238_v7, %v3767_v22 }
 0x1eb   :  { %v1485_v14 = vpop.f32.mrf.mxu2  ;;  %v1309_v62 = vpop.f32.mrf.mxu0 }
 0x1ec   :  { %v1486_v41 = vadd.f32 %v1485_v14, %v5399_v46  ;;  %v1574_v51 = vpop.f32.mrf.mxu3  ;;  %v1310_v45 = vadd.f32 %v1309_v62, %v5393_v26  ;;  %v1398_v59 = vpop.f32.mrf.mxu1 }
 0x1ee   :  { %v5457_v42 = vpop.eup %4406  ;;  %v1575_v15 = vadd.f32 %v1574_v51, %v1486_v41  ;;  %v1399_v18 = vadd.f32 %v1398_v59, %v1310_v45 }
 0x1ef   :  { %6677 = vst [vmem:[#allocation55_spill] sm:$0xff] %v5457_v42  ;;  %v5461_v60 = vpack.c.bf16 %v5457_v42, %v5454_v49  ;;  %v5465_v45 = vpop.eup %4408  ;;  %v3777_v49 = vld [vmem:[#allocation5 + $0xd8] sm:$0xf0] }
 0x1f0   :  { %4410 = vtanh.f32 %v1399_v18  ;;  %6679 = vst [vmem:[#allocation57_spill] sm:$0xff] %v5465_v45 }
 0x1f1   :  { %6678 = vst [vmem:[#allocation56_spill] sm:$0xff] %v5461_v60  ;;  %4412 = vtanh.f32 %v1575_v15 }
 0x1f3   :  { %v1487_v24 = vpop.f32.mrf.mxu2  ;;  %v1312_v62 = vpop.f32.mrf.mxu0 }
 0x1f4   :  { %v1488_v8 = vadd.f32 %v1487_v24, %v5399_v46  ;;  %v1576_v14 = vpop.f32.mrf.mxu3  ;;  %v1313_v41 = vadd.f32 %v1312_v62, %v5393_v26  ;;  %v1401_v51 = vpop.f32.mrf.mxu1 }
 0x1f6   :  { %v1577_v59 = vadd.f32 %v1576_v14, %v1488_v8  ;;  %v5467_v42 = vpop.eup %4410  ;;  %v1402_v47 = vadd.f32 %v1401_v51, %v1313_v41  ;;  %1351 = vmatmul.bf16.gmra.mxu0 %v3768_v9  ;;  %v4240_v51 = vld [vmem:[#allocation5 + $0xd4] sm:$0xf0] }
 0x1f7   :  { %6680 = vst [vmem:[#allocation58_spill] sm:$0xff] %v5467_v42  ;;  %1440 = vmatmul.bf16.gmra.mxu1 %v3772_v25  ;;  %v5471_v18 = vpack.c.bf16 %v5467_v42, %v5465_v45  ;;  %v5474_v24 = vpop.eup %4412  ;;  %v4325_v42 = vld [vmem:[#allocation7 + $0x184] sm:$0xf]  ;;  %v4239_v45 = vld [vmem:[#allocation5 + $0xd4] sm:$0xf] }
 0x1f8   :  { %4414 = vtanh.f32 %v1577_v59  ;;  %1529 = vmatmul.bf16.gmra.mxu2 %v3768_v9  ;;  %6682 = vst [vmem:[#allocation60_spill] sm:$0xff] %v5474_v24  ;;  %v3775_v9 = vld [vmem:[#allocation5 + $0xd0] sm:$0xf] }
 0x1f9   :  { %6681 = vst [vmem:[#allocation59_spill] sm:$0xff] %v5471_v18  ;;  %1618 = vmatmul.bf16.gmra.mxu3 %v3772_v25  ;;  %4416 = vtanh.f32 %v1402_v47  ;;  %v4309_v25 = vld [vmem:[#allocation7 + $0x104] sm:$0xf]  ;;  %v3776_v50 = vor.u32 %v4240_v51, %v3775_v9 }
 0x1fb   :  { %v1490_v22 = vpop.f32.mrf.mxu2  ;;  %v1314_v48 = vpop.f32.mrf.mxu0 }
 0x1fc   :  { %v1491_v7 = vadd.f32 %v1490_v22, %v5399_v46  ;;  %v1579_v56 = vpop.f32.mrf.mxu3  ;;  %v1315_v8 = vadd.f32 %v1314_v48, %v5393_v26  ;;  %v1403_v15 = vpop.f32.mrf.mxu1  ;;  %v3929_v22 = vld [vmem:[#allocation7 + $0x108] sm:$0xf0] }
 0x1fd   :  { %v3932_v21 = vor.u32 %v4309_v25, %v3929_v22  ;;  %v3993_v48 = vld [vmem:[#allocation7 + $0x188] sm:$0xf0] }
 0x1fe   :  { %v5477_v14 = vpop.eup %4414  ;;  %v1580_v62 = vadd.f32 %v1579_v56, %v1491_v7  ;;  %v1404_v41 = vadd.f32 %v1403_v15, %v1315_v8  ;;  %v3996_v18 = vor.u32 %v4325_v42, %v3993_v48  ;;  %v3780_v15 = vor.u32 %v4239_v45, %v3777_v49  ;;  %v4310_v42 = vld [vmem:[#allocation7 + $0x104] sm:$0xf0] }
 0x1ff   :  { %6683 = vst [vmem:[#allocation61_spill] sm:$0xff] %v5477_v14  ;;  %v5481_v59 = vpack.c.bf16 %v5477_v14, %v5474_v24  ;;  %2313 = vmatpush.bf16.msra.mxu2 %v3932_v21  ;;  %v5485_v24 = vpop.eup %4416  ;;  %v3927_v21 = vld [vmem:[#allocation7 + $0x100] sm:$0xf] }
 0x200   :  { %4418 = vtanh.f32 %v1404_v41  ;;  %2402 = vmatpush.bf16.msra.mxu3 %v3996_v18  ;;  %6685 = vst [vmem:[#allocation63_spill] sm:$0xff] %v5485_v24  ;;  %v3928_v45 = vor.u32 %v4310_v42, %v3927_v21  ;;  %v4326_v18 = vld [vmem:[#allocation7 + $0x184] sm:$0xf0]  ;;  %v4241_v42 = vld [vmem:[#allocation5 + $0xe4] sm:$0xf] }
 0x201   :  { %6684 = vst [vmem:[#allocation62_spill] sm:$0xff] %v5481_v59  ;;  %4420 = vtanh.f32 %v1580_v62  ;;  %v4242_v21 = vld [vmem:[#allocation5 + $0xe4] sm:$0xf0] }
 0x202   :  { %2135 = vmatpush.bf16.msra.mxu0 %v3928_v45 }
 0x203   :  { %v1492_v60 = vpop.f32.mrf.mxu2  ;;  %v1317_v8 = vpop.f32.mrf.mxu0 }
 0x204   :  { %v1493_v7 = vadd.f32 %v1492_v60, %v5399_v46  ;;  %v1581_v56 = vpop.f32.mrf.mxu3  ;;  %v1318_v47 = vadd.f32 %v1317_v8, %v5393_v26  ;;  %v1406_v14 = vpop.f32.mrf.mxu1  ;;  %v3991_v60 = vld [vmem:[#allocation7 + $0x180] sm:$0xf] }
 0x205   :  { %v3992_v9 = vor.u32 %v4326_v18, %v3991_v60  ;;  %v3785_v60 = vld [vmem:[#allocation5 + $0xe8] sm:$0xf0] }
 0x206   :  { %v1582_v41 = vadd.f32 %v1581_v56, %v1493_v7  ;;  %v5487_v59 = vpop.eup %4418  ;;  %v1407_v25 = vadd.f32 %v1406_v14, %v1318_v47  ;;  %1356 = vmatmul.bf16.gmra.mxu0 %v3776_v50 }
 0x207   :  { %6686 = vst [vmem:[#allocation64_spill] sm:$0xff] %v5487_v59  ;;  %1445 = vmatmul.bf16.gmra.mxu1 %v3780_v15  ;;  %v5491_v49 = vpack.c.bf16 %v5487_v59, %v5485_v24  ;;  %v5494_v48 = vpop.eup %4420  ;;  %v3788_v59 = vor.u32 %v4241_v42, %v3785_v60 }
 0x208   :  { %4422 = vtanh.f32 %v1582_v41  ;;  %1534 = vmatmul.bf16.gmra.mxu2 %v3776_v50  ;;  %2224 = vmatpush.bf16.msra.mxu1 %v3992_v9  ;;  %6688 = vst [vmem:[#allocation66_spill] sm:$0xff] %v5494_v48  ;;  %v3783_v41 = vld [vmem:[#allocation5 + $0xe0] sm:$0xf] }
 0x209   :  { %6687 = vst [vmem:[#allocation65_spill] sm:$0xff] %v5491_v49  ;;  %1623 = vmatmul.bf16.gmra.mxu3 %v3780_v15  ;;  %4424 = vtanh.f32 %v1407_v25  ;;  %v3784_v18 = vor.u32 %v4242_v21, %v3783_v41 }
 0x20b   :  { %v1495_v51 = vpop.f32.mrf.mxu2  ;;  %v1319_v22 = vpop.f32.mrf.mxu0 }
 0x20c   :  { %v1496_v62 = vadd.f32 %v1495_v51, %v5399_v46  ;;  %v1584_v14 = vpop.f32.mrf.mxu3  ;;  %v1320_v50 = vadd.f32 %v1319_v22, %v5393_v26  ;;  %v1408_v7 = vpop.f32.mrf.mxu1 }
 0x20e   :  { %v5497_v56 = vpop.eup %4422  ;;  %v1585_v8 = vadd.f32 %v1584_v14, %v1496_v62  ;;  %v1409_v47 = vadd.f32 %v1408_v7, %v1320_v50 }
 0x20f   :  { %6689 = vst [vmem:[#allocation67_spill] sm:$0xff] %v5497_v56  ;;  %v5501_v15 = vpack.c.bf16 %v5497_v56, %v5494_v48  ;;  %v5505_v50 = vpop.eup %4424  ;;  %v3793_v48 = vld [vmem:[#allocation5 + $0xf8] sm:$0xf0] }
 0x210   :  { %4426 = vtanh.f32 %v1409_v47  ;;  %6691 = vst [vmem:[#allocation69_spill] sm:$0xff] %v5505_v50 }
 0x211   :  { %6690 = vst [vmem:[#allocation68_spill] sm:$0xff] %v5501_v15  ;;  %4428 = vtanh.f32 %v1585_v8 }
 0x213   :  { %v1497_v45 = vpop.f32.mrf.mxu2  ;;  %v1322_v22 = vpop.f32.mrf.mxu0 }
 0x214   :  { %v1498_v9 = vadd.f32 %v1497_v45, %v5399_v46  ;;  %v1586_v51 = vpop.f32.mrf.mxu3  ;;  %v1323_v62 = vadd.f32 %v1322_v22, %v5393_v26  ;;  %v1411_v14 = vpop.f32.mrf.mxu1 }
 0x216   :  { %v1587_v7 = vadd.f32 %v1586_v51, %v1498_v9  ;;  %v5507_v56 = vpop.eup %4426  ;;  %v1412_v25 = vadd.f32 %v1411_v14, %v1323_v62  ;;  %1361 = vmatmul.bf16.gmra.mxu0 %v3784_v18  ;;  %v4244_v14 = vld [vmem:[#allocation5 + $0xf4] sm:$0xf0] }
 0x217   :  { %6692 = vst [vmem:[#allocation70_spill] sm:$0xff] %v5507_v56  ;;  %1450 = vmatmul.bf16.gmra.mxu1 %v3788_v59  ;;  %v5511_v47 = vpack.c.bf16 %v5507_v56, %v5505_v50  ;;  %v5514_v45 = vpop.eup %4428  ;;  %v4371_v56 = vld [vmem:[#allocation7 + $0x3f4] sm:$0xf] }
 0x218   :  { %4430 = vtanh.f32 %v1587_v7  ;;  %1539 = vmatmul.bf16.gmra.mxu2 %v3784_v18  ;;  %6694 = vst [vmem:[#allocation72_spill] sm:$0xff] %v5514_v45  ;;  %v3791_v18 = vld [vmem:[#allocation5 + $0xf0] sm:$0xf]  ;;  %v4243_v50 = vld [vmem:[#allocation5 + $0xf4] sm:$0xf] }
 0x219   :  { %6693 = vst [vmem:[#allocation71_spill] sm:$0xff] %v5511_v47  ;;  %1628 = vmatmul.bf16.gmra.mxu3 %v3788_v59  ;;  %4432 = vtanh.f32 %v1412_v25  ;;  %v4355_v59 = vld [vmem:[#allocation7 + $0x374] sm:$0xf]  ;;  %v3792_v49 = vor.u32 %v4244_v14, %v3791_v18 }
 0x21b   :  { %v1500_v41 = vpop.f32.mrf.mxu2  ;;  %v1324_v60 = vpop.f32.mrf.mxu0 }
 0x21c   :  { %v1501_v21 = vadd.f32 %v1500_v41, %v5399_v46  ;;  %v1589_v42 = vpop.f32.mrf.mxu3  ;;  %v1325_v9 = vadd.f32 %v1324_v60, %v5393_v26  ;;  %v1413_v8 = vpop.f32.mrf.mxu1  ;;  %v4113_v41 = vld [vmem:[#allocation7 + $0x378] sm:$0xf0] }
 0x21d   :  { %v4116_v24 = vor.u32 %v4355_v59, %v4113_v41  ;;  %v4177_v60 = vld [vmem:[#allocation7 + $0x3f8] sm:$0xf0] }
 0x21e   :  { %v5517_v51 = vpop.eup %4430  ;;  %v1590_v22 = vadd.f32 %v1589_v42, %v1501_v21  ;;  %v1414_v62 = vadd.f32 %v1413_v8, %v1325_v9  ;;  %v4180_v47 = vor.u32 %v4371_v56, %v4177_v60  ;;  %v3796_v8 = vor.u32 %v4243_v50, %v3793_v48  ;;  %v4356_v56 = vld [vmem:[#allocation7 + $0x374] sm:$0xf0] }
 0x21f   :  { %6695 = vst [vmem:[#allocation73_spill] sm:$0xff] %v5517_v51  ;;  %v5521_v7 = vpack.c.bf16 %v5517_v51, %v5514_v45  ;;  %2893 = vmatpush.bf16.msrb.mxu2 %v4116_v24  ;;  %v5525_v45 = vpop.eup %4432  ;;  %v4111_v24 = vld [vmem:[#allocation7 + $0x370] sm:$0xf] }
 0x220   :  { %4434 = vtanh.f32 %v1414_v62  ;;  %2982 = vmatpush.bf16.msrb.mxu3 %v4180_v47  ;;  %6697 = vst [vmem:[#allocation75_spill] sm:$0xff] %v5525_v45  ;;  %v4112_v50 = vor.u32 %v4356_v56, %v4111_v24  ;;  %v4372_v47 = vld [vmem:[#allocation7 + $0x3f4] sm:$0xf0] }
 0x221   :  { %6696 = vst [vmem:[#allocation74_spill] sm:$0xff] %v5521_v7  ;;  %4436 = vtanh.f32 %v1590_v22 }
 0x222   :  { %2715 = vmatpush.bf16.msrb.mxu0 %v4112_v50 }
 0x223   :  { %v1502_v15 = vpop.f32.mrf.mxu2  ;;  %v1327_v9 = vpop.f32.mrf.mxu0 }
 0x224   :  { %v1503_v21 = vadd.f32 %v1502_v15, %v5399_v46  ;;  %v1591_v42 = vpop.f32.mrf.mxu3  ;;  %v1328_v25 = vadd.f32 %v1327_v9, %v5393_v26  ;;  %v1416_v51 = vpop.f32.mrf.mxu1  ;;  %v4175_v15 = vld [vmem:[#allocation7 + $0x3f0] sm:$0xf] }
 0x225   :  { %v4176_v18 = vor.u32 %v4372_v47, %v4175_v15 }
 0x226   :  { %v1592_v62 = vadd.f32 %v1591_v42, %v1503_v21  ;;  %v5527_v7 = vpop.eup %4434  ;;  %v1417_v59 = vadd.f32 %v1416_v51, %v1328_v25  ;;  %1366 = vmatmul.bf16.gmra.mxu0 %v3792_v49 }
 0x227   :  { %6698 = vst [vmem:[#allocation76_spill] sm:$0xff] %v5527_v7  ;;  %1455 = vmatmul.bf16.gmra.mxu1 %v3796_v8  ;;  %v5531_v48 = vpack.c.bf16 %v5527_v7, %v5525_v45 }
 0x228   :  { %4438 = vtanh.f32 %v1592_v62  ;;  %1544 = vmatmul.bf16.gmra.mxu2 %v3792_v49  ;;  %2804 = vmatpush.bf16.msrb.mxu1 %v4176_v18  ;;  %v5535_v49 = vpop.eup %4436 }
 0x229   :  { %1633 = vmatmul.bf16.gmra.mxu3 %v3796_v8  ;;  %4440 = vtanh.f32 %v5211_v38  ;;  %6699 = vst [vmem:[#allocation77_spill] sm:$0xff] %v5535_v49 }
 0x22a   :  { %4442 = vtanh.f32 %v5215_v57 }
 0x22b   :  { %v1505_v14 = vpop.f32.mrf.mxu2  ;;  %v1329_v41 = vpop.f32.mrf.mxu0  ;;  %4444 = vtanh.f32 %v5203_v23 }
 0x22c   :  { %v1506_v51 = vadd.f32 %v1505_v14, %v5399_v46  ;;  %v1594_v22 = vpop.f32.mrf.mxu3  ;;  %v1330_v60 = vadd.f32 %v1329_v41, %v5393_v26  ;;  %v1418_v21 = vpop.f32.mrf.mxu1  ;;  %4446 = vtanh.f32 %v5209_v37 }
 0x22d   :  { %4448 = vtanh.f32 %v1417_v59 }
 0x22e   :  { %v5539_v42 = vpop.eup %4438  ;;  %v1595_v9 = vadd.f32 %v1594_v22, %v1506_v51  ;;  %v1419_v38 = vadd.f32 %v1418_v21, %v1330_v60 }
 0x22f   :  { %6700 = vst [vmem:[#allocation78_spill] sm:$0xff] %v5539_v42  ;;  %v5545_v8 = vpack.c.bf16 %v5539_v42, %v5535_v49  ;;  %v5547_v25 = vpop.eup %4440 }
 0x230   :  { %4450 = vtanh.f32 %v1419_v38  ;;  %v5549_v57 = vpop.eup %4442 }
 0x231   :  { %v5551_v24 = vpop.eup %4444  ;;  %4452 = vtanh.f32 %v1595_v9 }
 0x232   :  { %v5554_v50 = vpop.eup %4446  ;;  %v1831_v37 = vpack.c.bf16 %v5547_v25, %v5551_v24 }
 0x233   :  { %v1507_v62 = vpop.f32.mrf.mxu2  ;;  %v1332_v15 = vpop.f32.mrf.mxu0  ;;  %v1832_v14 = vpack.c.bf16 %v5549_v57, %v5554_v50 }
 0x234   :  { %v1508_v56 = vadd.f32 %v1507_v62, %v5399_v46  ;;  %v1596_v23 = vpop.f32.mrf.mxu3  ;;  %v1333_v47 = vadd.f32 %v1332_v15, %v5393_v26  ;;  %v1421_v59 = vpop.f32.mrf.mxu1 }
 0x235   :  { %v5559_v18 = vpop.eup %4448 }
 0x236   :  { %6701 = vst [vmem:[#allocation79_spill] sm:$0xff] %v5559_v18  ;;  %v1597_v51 = vadd.f32 %v1596_v23, %v1508_v56  ;;  %v5563_v22 = vpop.eup %4450  ;;  %v1422_v41 = vadd.f32 %v1421_v59, %v1333_v47  ;;  %2136 = vmatmul.bf16.vlgmr.msra.gmra.mxu0 %v1831_v37 }
 0x237   :  { %6702 = vst [vmem:[#allocation80_spill] sm:$0xff] %v5563_v22  ;;  %2225 = vmatmul.bf16.vlgmr.msra.gmra.mxu1 %v1832_v14  ;;  %v5567_v60 = vpack.c.bf16 %v5563_v22, %v5559_v18  ;;  %v5571_v23 = vpop.eup %4452 }
 0x238   :  { %4454 = vtanh.f32 %v1597_v51  ;;  %2314 = vmatmul.bf16.vlgmr.msra.gmra.mxu2 %v1831_v37  ;;  %6703 = vst [vmem:[#allocation81_spill] sm:$0xff] %v5571_v23  ;;  %v4105_v51 = vld [vmem:[#allocation7 + $0x368] sm:$0xf0] }
 0x239   :  { %2403 = vmatmul.bf16.vlgmr.msra.gmra.mxu3 %v1832_v14  ;;  %4456 = vtanh.f32 %v5223_v2  ;;  %v4353_v14 = vld [vmem:[#allocation7 + $0x364] sm:$0xf] }
 0x23a   :  { %4458 = vtanh.f32 %v5227_v16  ;;  %v4108_v16 = vor.u32 %v4353_v14, %v4105_v51 }
 0x23b   :  { %v1510_v21 = vpop.f32.mrf.mxu2  ;;  %v1334_v56 = vpop.f32.mrf.mxu0  ;;  %4460 = vtanh.f32 %v5217_v58 }
 0x23c   :  { %v1511_v38 = vadd.f32 %v1510_v21, %v5399_v46  ;;  %v1599_v62 = vpop.f32.mrf.mxu3  ;;  %v1335_v9 = vadd.f32 %v1334_v56, %v5393_v26  ;;  %v1423_v15 = vpop.f32.mrf.mxu1  ;;  %4462 = vtanh.f32 %v5221_v1  ;;  %v4369_v21 = vld [vmem:[#allocation7 + $0x3e4] sm:$0xf]  ;;  %v4169_v56 = vld [vmem:[#allocation7 + $0x3e8] sm:$0xf0]  ;;  %2894 = vmatpush.bf16.msrb.mxu2 %v4108_v16 }
 0x23d   :  { %4464 = vtanh.f32 %v1422_v41  ;;  %v4172_v18 = vor.u32 %v4369_v21, %v4169_v56 }
 0x23e   :  { %v5575_v37 = vpop.eup %4454  ;;  %v1600_v47 = vadd.f32 %v1599_v62, %v1511_v38  ;;  %v1424_v59 = vadd.f32 %v1423_v15, %v1335_v9 }
 0x23f   :  { %6704 = vst [vmem:[#allocation82_spill] sm:$0xff] %v5575_v37  ;;  %v5581_v2 = vpack.c.bf16 %v5575_v37, %v5571_v23  ;;  %v5583_v22 = vpop.eup %4456  ;;  %2983 = vmatpush.bf16.msrb.mxu3 %v4172_v18  ;;  %v4103_v18 = vld [vmem:[#allocation7 + $0x360] sm:$0xf] }
 0x240   :  { %4466 = vtanh.f32 %v1424_v59  ;;  %v5585_v42 = vpop.eup %4458  ;;  %v4167_v37 = vld [vmem:[#allocation7 + $0x3e0] sm:$0xf] }
 0x241   :  { %v5587_v1 = vpop.eup %4460  ;;  %4468 = vtanh.f32 %v1600_v47 }
 0x242   :  { %v5590_v41 = vpop.eup %4462  ;;  %v1833_v14 = vpack.c.bf16 %v5583_v22, %v5587_v1 }
 0x243   :  { %v1512_v58 = vpop.f32.mrf.mxu2  ;;  %v1337_v9 = vpop.f32.mrf.mxu0  ;;  %v1834_v16 = vpack.c.bf16 %v5585_v42, %v5590_v41 }
 0x244   :  { %v1513_v38 = vadd.f32 %v1512_v58, %v5399_v46  ;;  %v1601_v62 = vpop.f32.mrf.mxu3  ;;  %v1338_v15 = vadd.f32 %v1337_v9, %v5393_v26  ;;  %v1426_v59 = vpop.f32.mrf.mxu1  ;;  %v4354_v9 = vld [vmem:[#allocation7 + $0x364] sm:$0xf0] }
 0x245   :  { %v5595_v51 = vpop.eup %4464 }
 0x246   :  { %6705 = vst [vmem:[#allocation83_spill] sm:$0xff] %v5595_v51  ;;  %v1602_v21 = vadd.f32 %v1601_v62, %v1513_v38  ;;  %v5599_v56 = vpop.eup %4466  ;;  %v1427_v58 = vadd.f32 %v1426_v59, %v1338_v15  ;;  %2141 = vmatmul.bf16.gmra.mxu0 %v1833_v14  ;;  %v4104_v38 = vor.u32 %v4354_v9, %v4103_v18  ;;  %v4370_v62 = vld [vmem:[#allocation7 + $0x3e4] sm:$0xf0] }
 0x247   :  { %6706 = vst [vmem:[#allocation84_spill] sm:$0xff] %v5599_v56  ;;  %2230 = vmatmul.bf16.gmra.mxu1 %v1834_v16  ;;  %v5603_v23 = vpack.c.bf16 %v5599_v56, %v5595_v51  ;;  %v4168_v7 = vor.u32 %v4370_v62, %v4167_v37 }
 0x248   :  { %4470 = vtanh.f32 %v1602_v21  ;;  %2319 = vmatmul.bf16.gmra.mxu2 %v1833_v14  ;;  %2716 = vmatpush.bf16.msrb.mxu0 %v4104_v38  ;;  %v5607_v14 = vpop.eup %4468 }
 0x249   :  { %2408 = vmatmul.bf16.gmra.mxu3 %v1834_v16  ;;  %4472 = vtanh.f32 %v5235_v33  ;;  %2805 = vmatpush.bf16.msrb.mxu1 %v4168_v7  ;;  %6707 = vst [vmem:[#allocation85_spill] sm:$0xff] %v5607_v14 }
 0x24a   :  { %4474 = vtanh.f32 %v5239_v54 }
 0x24b   :  { %v1515_v49 = vpop.f32.mrf.mxu2  ;;  %v1339_v59 = vpop.f32.mrf.mxu0  ;;  %4476 = vtanh.f32 %v5229_v17 }
 0x24c   :  { %v1516_v47 = vadd.f32 %v1515_v49, %v5399_v46  ;;  %v1604_v15 = vpop.f32.mrf.mxu3  ;;  %v1340_v21 = vadd.f32 %v1339_v59, %v5393_v26  ;;  %v1428_v56 = vpop.f32.mrf.mxu1  ;;  %4478 = vtanh.f32 %v5233_v32 }
 0x24d   :  { %4480 = vtanh.f32 %v1427_v58 }
 0x24e   :  { %v5611_v16 = vpop.eup %4470  ;;  %v1605_v37 = vadd.f32 %v1604_v15, %v1516_v47  ;;  %v1429_v33 = vadd.f32 %v1428_v56, %v1340_v21 }
 0x24f   :  { %6708 = vst [vmem:[#allocation86_spill] sm:$0xff] %v5611_v16  ;;  %v5617_v49 = vpack.c.bf16 %v5611_v16, %v5607_v14  ;;  %v5619_v7 = vpop.eup %4472 }
 0x250   :  { %4482 = vtanh.f32 %v1429_v33  ;;  %v5621_v54 = vpop.eup %4474 }
 0x251   :  { %6709 = vst [vmem:[#allocation87_spill] sm:$0xff] %v5621_v54  ;;  %v5623_v9 = vpop.eup %4476  ;;  %4484 = vtanh.f32 %v1605_v37 }
 0x252   :  { %v5626_v47 = vpop.eup %4478  ;;  %v1835_v58 = vpack.c.bf16 %v5619_v7, %v5623_v9 }
 0x253   :  { %v1517_v18 = vpop.f32.mrf.mxu2  ;;  %v1342_v62 = vpop.f32.mrf.mxu0  ;;  %v1836_v21 = vpack.c.bf16 %v5621_v54, %v5626_v47 }
 0x254   :  { %v1518_v38 = vadd.f32 %v1517_v18, %v5399_v46  ;;  %v1606_v17 = vpop.f32.mrf.mxu3  ;;  %v1343_v32 = vadd.f32 %v1342_v62, %v5393_v26  ;;  %v1431_v56 = vpop.f32.mrf.mxu1 }
 0x255   :  { %v5631_v15 = vpop.eup %4480 }
 0x256   :  { %6710 = vst [vmem:[#allocation88_spill] sm:$0xff] %v5631_v15  ;;  %v1607_v59 = vadd.f32 %v1606_v17, %v1518_v38  ;;  %v5635_v33 = vpop.eup %4482  ;;  %v1432_v18 = vadd.f32 %v1431_v56, %v1343_v32  ;;  %2146 = vmatmul.bf16.gmra.mxu0 %v1835_v58 }
 0x257   :  { %6711 = vst [vmem:[#allocation89_spill] sm:$0xff] %v5635_v33  ;;  %2235 = vmatmul.bf16.gmra.mxu1 %v1836_v21  ;;  %v5639_v62 = vpack.c.bf16 %v5635_v33, %v5631_v15  ;;  %v5643_v51 = vpop.eup %4484  ;;  %v4367_v33 = vld [vmem:[#allocation7 + $0x3d4] sm:$0xf] }
 0x258   :  { %4486 = vtanh.f32 %v1607_v59  ;;  %2324 = vmatmul.bf16.gmra.mxu2 %v1835_v58  ;;  %6712 = vst [vmem:[#allocation90_spill] sm:$0xff] %v5643_v51 }
 0x259   :  { %2413 = vmatmul.bf16.gmra.mxu3 %v1836_v21  ;;  %4488 = vtanh.f32 %v5247_v3  ;;  %v4097_v21 = vld [vmem:[#allocation7 + $0x358] sm:$0xf0] }
 0x25a   :  { %4490 = vtanh.f32 %v5251_v19 }
 0x25b   :  { %v1520_v16 = vpop.f32.mrf.mxu2  ;;  %v1344_v14 = vpop.f32.mrf.mxu0  ;;  %4492 = vtanh.f32 %v5241_v55 }
 0x25c   :  { %v1521_v38 = vadd.f32 %v1520_v16, %v5399_v46  ;;  %v1609_v17 = vpop.f32.mrf.mxu3  ;;  %v1345_v37 = vadd.f32 %v1344_v14, %v5393_v26  ;;  %v1433_v32 = vpop.f32.mrf.mxu1  ;;  %4494 = vtanh.f32 %v5245_v0  ;;  %v4351_v16 = vld [vmem:[#allocation7 + $0x354] sm:$0xf]  ;;  %v4161_v14 = vld [vmem:[#allocation7 + $0x3d8] sm:$0xf0] }
 0x25d   :  { %4496 = vtanh.f32 %v1432_v18  ;;  %v4100_v19 = vor.u32 %v4351_v16, %v4097_v21  ;;  %v4164_v45 = vor.u32 %v4367_v33, %v4161_v14 }
 0x25e   :  { %v5647_v56 = vpop.eup %4486  ;;  %v1610_v58 = vadd.f32 %v1609_v17, %v1521_v38  ;;  %v1434_v59 = vadd.f32 %v1433_v32, %v1345_v37 }
 0x25f   :  { %6713 = vst [vmem:[#allocation91_spill] sm:$0xff] %v5647_v56  ;;  %v5653_v3 = vpack.c.bf16 %v5647_v56, %v5643_v51  ;;  %v5655_v15 = vpop.eup %4488  ;;  %2895 = vmatpush.bf16.msrb.mxu2 %v4100_v19  ;;  %2984 = vmatpush.bf16.msrb.mxu3 %v4164_v45  ;;  %v4095_v45 = vld [vmem:[#allocation7 + $0x350] sm:$0xf] }
 0x260   :  { %4498 = vtanh.f32 %v1434_v59  ;;  %6714 = vst [vmem:[#allocation92_spill] sm:$0xff] %v5655_v15  ;;  %v5657_v54 = vpop.eup %4490  ;;  %v4159_v56 = vld [vmem:[#allocation7 + $0x3d0] sm:$0xf] }
 0x261   :  { %6715 = vst [vmem:[#allocation93_spill] sm:$0xff] %v5657_v54  ;;  %v5659_v0 = vpop.eup %4492  ;;  %4500 = vtanh.f32 %v1610_v58 }
 0x262   :  { %v5662_v18 = vpop.eup %4494  ;;  %v1837_v16 = vpack.c.bf16 %v5655_v15, %v5659_v0 }
 0x263   :  { %v1522_v55 = vpop.f32.mrf.mxu2  ;;  %v1347_v37 = vpop.f32.mrf.mxu0  ;;  %v1838_v19 = vpack.c.bf16 %v5657_v54, %v5662_v18 }
 0x264   :  { %v1523_v38 = vadd.f32 %v1522_v55, %v5399_v46  ;;  %v1611_v17 = vpop.f32.mrf.mxu3  ;;  %v1348_v32 = vadd.f32 %v1347_v37, %v5393_v26  ;;  %v1436_v59 = vpop.f32.mrf.mxu1  ;;  %v4352_v37 = vld [vmem:[#allocation7 + $0x354] sm:$0xf0] }
 0x265   :  { %v5667_v33 = vpop.eup %4496 }
 0x266   :  { %6716 = vst [vmem:[#allocation94_spill] sm:$0xff] %v5667_v33  ;;  %v1612_v21 = vadd.f32 %v1611_v17, %v1523_v38  ;;  %v5671_v14 = vpop.eup %4498  ;;  %v1437_v55 = vadd.f32 %v1436_v59, %v1348_v32  ;;  %2151 = vmatmul.bf16.gmra.mxu0 %v1837_v16  ;;  %v4096_v38 = vor.u32 %v4352_v37, %v4095_v45  ;;  %v4368_v17 = vld [vmem:[#allocation7 + $0x3d4] sm:$0xf0] }
 0x267   :  { %6717 = vst [vmem:[#allocation95_spill] sm:$0xff] %v5671_v14  ;;  %2240 = vmatmul.bf16.gmra.mxu1 %v1838_v19  ;;  %v5675_v51 = vpack.c.bf16 %v5671_v14, %v5667_v33  ;;  %v4160_v15 = vor.u32 %v4368_v17, %v4159_v56 }
 0x268   :  { %4502 = vtanh.f32 %v1612_v21  ;;  %2329 = vmatmul.bf16.gmra.mxu2 %v1837_v16  ;;  %2717 = vmatpush.bf16.msrb.mxu0 %v4096_v38  ;;  %v5679_v16 = vpop.eup %4500 }
 0x269   :  { %2418 = vmatmul.bf16.gmra.mxu3 %v1838_v19  ;;  %4504 = vtanh.f32 %v5259_v40  ;;  %2806 = vmatpush.bf16.msrb.mxu1 %v4160_v15  ;;  %6718 = vst [vmem:[#allocation96_spill] sm:$0xff] %v5679_v16 }
 0x26a   :  { %4506 = vtanh.f32 %v5263_v63 }
 0x26b   :  { %v1525_v54 = vpop.f32.mrf.mxu2  ;;  %v1349_v59 = vpop.f32.mrf.mxu0  ;;  %4508 = vtanh.f32 %v5253_v20 }
 0x26c   :  { %v1526_v58 = vadd.f32 %v1525_v54, %v5399_v46  ;;  %v1614_v32 = vpop.f32.mrf.mxu3  ;;  %v1350_v21 = vadd.f32 %v1349_v59, %v5393_v26  ;;  %v1438_v14 = vpop.f32.mrf.mxu1  ;;  %4510 = vtanh.f32 %v5257_v39 }
 0x26d   :  { %4512 = vtanh.f32 %v1437_v55 }
 0x26e   :  { %v5683_v19 = vpop.eup %4502  ;;  %v1615_v56 = vadd.f32 %v1614_v32, %v1526_v58  ;;  %v1439_v40 = vadd.f32 %v1438_v14, %v1350_v21 }
 0x26f   :  { %6719 = vst [vmem:[#allocation97_spill] sm:$0xff] %v5683_v19  ;;  %v5689_v54 = vpack.c.bf16 %v5683_v19, %v5679_v16  ;;  %v5691_v15 = vpop.eup %4504 }
 0x270   :  { %4514 = vtanh.f32 %v1439_v40  ;;  %6720 = vst [vmem:[#allocation98_spill] sm:$0xff] %v5691_v15  ;;  %v5693_v63 = vpop.eup %4506 }
 0x271   :  { %6721 = vst [vmem:[#allocation99_spill] sm:$0xff] %v5693_v63  ;;  %v5695_v37 = vpop.eup %4508  ;;  %4516 = vtanh.f32 %v1615_v56 }
 0x272   :  { %6722 = vst [vmem:[#allocation100_spill] sm:$0xff] %v5695_v37  ;;  %v5698_v58 = vpop.eup %4510  ;;  %v1839_v55 = vpack.c.bf16 %v5691_v15, %v5695_v37  ;;  %v6794_v37 = vld [vmem:[#allocation29_spill] sm:$0xff] }
 0x273   :  { %v1527_v45 = vpop.f32.mrf.mxu2  ;;  %v1352_v17 = vpop.f32.mrf.mxu0  ;;  %6723 = vst [vmem:[#allocation101_spill] sm:$0xff] %v5698_v58  ;;  %v1840_v21 = vpack.c.bf16 %v5693_v63, %v5698_v58 }
 0x274   :  { %v1528_v38 = vadd.f32 %v1527_v45, %v5399_v46  ;;  %v1616_v20 = vpop.f32.mrf.mxu3  ;;  %v1353_v39 = vadd.f32 %v1352_v17, %v5393_v26  ;;  %v1441_v14 = vpop.f32.mrf.mxu1 }
 0x275   :  { %v5703_v32 = vpop.eup %4512 }
 0x276   :  { %6724 = vst [vmem:[#allocation102_spill] sm:$0xff] %v5703_v32  ;;  %v1617_v59 = vadd.f32 %v1616_v20, %v1528_v38  ;;  %v5707_v40 = vpop.eup %4514  ;;  %v1442_v45 = vadd.f32 %v1441_v14, %v1353_v39  ;;  %2156 = vmatmul.bf16.gmra.mxu0 %v1839_v55 }
 0x277   :  { %6725 = vst [vmem:[#allocation103_spill] sm:$0xff] %v5707_v40  ;;  %2245 = vmatmul.bf16.gmra.mxu1 %v1840_v21  ;;  %v5711_v17 = vpack.c.bf16 %v5707_v40, %v5703_v32  ;;  %v5715_v33 = vpop.eup %4516  ;;  %v4365_v40 = vld [vmem:[#allocation7 + $0x3c4] sm:$0xf] }
 0x278   :  { %4518 = vtanh.f32 %v1617_v59  ;;  %2334 = vmatmul.bf16.gmra.mxu2 %v1839_v55  ;;  %6726 = vst [vmem:[#allocation104_spill] sm:$0xff] %v5715_v33 }
 0x279   :  { %2423 = vmatmul.bf16.gmra.mxu3 %v1840_v21  ;;  %4520 = vtanh.f32 %v5271_v12  ;;  %v4089_v21 = vld [vmem:[#allocation7 + $0x348] sm:$0xf0] }
 0x27a   :  { %4522 = vtanh.f32 %v5275_v34 }
 0x27b   :  { %v1530_v19 = vpop.f32.mrf.mxu2  ;;  %v1354_v16 = vpop.f32.mrf.mxu0  ;;  %4524 = vtanh.f32 %v5265_v4 }
 0x27c   :  { %v1531_v38 = vadd.f32 %v1530_v19, %v5399_v46  ;;  %v1619_v20 = vpop.f32.mrf.mxu3  ;;  %v1355_v56 = vadd.f32 %v1354_v16, %v5393_v26  ;;  %v1443_v39 = vpop.f32.mrf.mxu1  ;;  %4526 = vtanh.f32 %v5269_v11  ;;  %v4349_v19 = vld [vmem:[#allocation7 + $0x344] sm:$0xf]  ;;  %v4153_v16 = vld [vmem:[#allocation7 + $0x3c8] sm:$0xf0] }
 0x27d   :  { %4528 = vtanh.f32 %v1442_v45  ;;  %v4092_v34 = vor.u32 %v4349_v19, %v4089_v21  ;;  %v4156_v63 = vor.u32 %v4365_v40, %v4153_v16 }
 0x27e   :  { %v5719_v14 = vpop.eup %4518  ;;  %v1620_v55 = vadd.f32 %v1619_v20, %v1531_v38  ;;  %v1444_v59 = vadd.f32 %v1443_v39, %v1355_v56 }
 0x27f   :  { %6727 = vst [vmem:[#allocation105_spill] sm:$0xff] %v5719_v14  ;;  %v5725_v12 = vpack.c.bf16 %v5719_v14, %v5715_v33  ;;  %v5727_v32 = vpop.eup %4520  ;;  %2896 = vmatpush.bf16.msrb.mxu2 %v4092_v34  ;;  %2985 = vmatpush.bf16.msrb.mxu3 %v4156_v63  ;;  %v4087_v63 = vld [vmem:[#allocation7 + $0x340] sm:$0xf] }
 0x280   :  { %4530 = vtanh.f32 %v1444_v59  ;;  %6728 = vst [vmem:[#allocation106_spill] sm:$0xff] %v5727_v32  ;;  %v5729_v15 = vpop.eup %4522  ;;  %v4151_v14 = vld [vmem:[#allocation7 + $0x3c0] sm:$0xf] }
 0x281   :  { %6729 = vst [vmem:[#allocation107_spill] sm:$0xff] %v5729_v15  ;;  %v5731_v11 = vpop.eup %4524  ;;  %4532 = vtanh.f32 %v1620_v55 }
 0x282   :  { %6730 = vst [vmem:[#allocation108_spill] sm:$0xff] %v5731_v11  ;;  %v5734_v45 = vpop.eup %4526  ;;  %v1841_v19 = vpack.c.bf16 %v5727_v32, %v5731_v11  ;;  %v4357_v11 = vld [vmem:[#allocation7 + $0x384] sm:$0xf] }
 0x283   :  { %v1532_v4 = vpop.f32.mrf.mxu2  ;;  %v1357_v56 = vpop.f32.mrf.mxu0  ;;  %6731 = vst [vmem:[#allocation109_spill] sm:$0xff] %v5734_v45  ;;  %v1842_v34 = vpack.c.bf16 %v5729_v15, %v5734_v45  ;;  %v4057_v45 = vld [vmem:[#allocation7 + $0x308] sm:$0xf0] }
 0x284   :  { %v1533_v38 = vadd.f32 %v1532_v4, %v5399_v46  ;;  %v1621_v20 = vpop.f32.mrf.mxu3  ;;  %v1358_v39 = vadd.f32 %v1357_v56, %v5393_v26  ;;  %v1446_v59 = vpop.f32.mrf.mxu1  ;;  %v4350_v56 = vld [vmem:[#allocation7 + $0x344] sm:$0xf0] }
 0x285   :  { %v5739_v40 = vpop.eup %4528 }
 0x286   :  { %6732 = vst [vmem:[#allocation110_spill] sm:$0xff] %v5739_v40  ;;  %v1622_v21 = vadd.f32 %v1621_v20, %v1533_v38  ;;  %v5743_v16 = vpop.eup %4530  ;;  %v1447_v4 = vadd.f32 %v1446_v59, %v1358_v39  ;;  %2161 = vmatmul.bf16.gmra.mxu0 %v1841_v19  ;;  %v4088_v38 = vor.u32 %v4350_v56, %v4087_v63  ;;  %v4366_v20 = vld [vmem:[#allocation7 + $0x3c4] sm:$0xf0] }
 0x287   :  { %6733 = vst [vmem:[#allocation111_spill] sm:$0xff] %v5743_v16  ;;  %2250 = vmatmul.bf16.gmra.mxu1 %v1842_v34  ;;  %v5747_v33 = vpack.c.bf16 %v5743_v16, %v5739_v40  ;;  %v4152_v32 = vor.u32 %v4366_v20, %v4151_v14 }
 0x288   :  { %4534 = vtanh.f32 %v1622_v21  ;;  %2339 = vmatmul.bf16.gmra.mxu2 %v1841_v19  ;;  %2718 = vmatpush.bf16.msrb.mxu0 %v4088_v38  ;;  %v5751_v19 = vpop.eup %4532 }
 0x289   :  { %2428 = vmatmul.bf16.gmra.mxu3 %v1842_v34  ;;  %4536 = vtanh.f32 %v5283_v53  ;;  %2807 = vmatpush.bf16.msrb.mxu1 %v4152_v32  ;;  %6734 = vst [vmem:[#allocation112_spill] sm:$0xff] %v5751_v19 }
 0x28a   :  { %4538 = vtanh.f32 %v5287_v27 }
 0x28b   :  { %v1535_v15 = vpop.f32.mrf.mxu2  ;;  %v1359_v59 = vpop.f32.mrf.mxu0  ;;  %4540 = vtanh.f32 %v5277_v35 }
 0x28c   :  { %v1536_v55 = vadd.f32 %v1535_v15, %v5399_v46  ;;  %v1624_v39 = vpop.f32.mrf.mxu3  ;;  %v1360_v21 = vadd.f32 %v1359_v59, %v5393_v26  ;;  %v1448_v16 = vpop.f32.mrf.mxu1  ;;  %4542 = vtanh.f32 %v5281_v52 }
 0x28d   :  { %4544 = vtanh.f32 %v1447_v4 }
 0x28e   :  { %v5755_v34 = vpop.eup %4534  ;;  %v1625_v14 = vadd.f32 %v1624_v39, %v1536_v55  ;;  %v1449_v53 = vadd.f32 %v1448_v16, %v1360_v21 }
 0x28f   :  { %6735 = vst [vmem:[#allocation113_spill] sm:$0xff] %v5755_v34  ;;  %v5761_v15 = vpack.c.bf16 %v5755_v34, %v5751_v19  ;;  %v5763_v32 = vpop.eup %4536 }
 0x290   :  { %4546 = vtanh.f32 %v1449_v53  ;;  %6736 = vst [vmem:[#allocation114_spill] sm:$0xff] %v5763_v32  ;;  %v5765_v27 = vpop.eup %4538 }
 0x291   :  { %6737 = vst [vmem:[#allocation115_spill] sm:$0xff] %v5765_v27  ;;  %v5767_v56 = vpop.eup %4540  ;;  %4548 = vtanh.f32 %v1625_v14 }
 0x292   :  { %6738 = vst [vmem:[#allocation116_spill] sm:$0xff] %v5767_v56  ;;  %v5770_v55 = vpop.eup %4542  ;;  %v1843_v4 = vpack.c.bf16 %v5763_v32, %v5767_v56  ;;  %v4348_v32 = vld [vmem:[#allocation7 + $0x334] sm:$0xf0] }
 0x293   :  { %v1537_v63 = vpop.f32.mrf.mxu2  ;;  %v1362_v20 = vpop.f32.mrf.mxu0  ;;  %6739 = vst [vmem:[#allocation117_spill] sm:$0xff] %v5770_v55  ;;  %v1844_v21 = vpack.c.bf16 %v5765_v27, %v5770_v55  ;;  %v4079_v27 = vld [vmem:[#allocation7 + $0x330] sm:$0xf]  ;;  %v6778_v56 = vld [vmem:[#allocation21_spill] sm:$0xff] }
 0x294   :  { %v1538_v38 = vadd.f32 %v1537_v63, %v5399_v46  ;;  %v1626_v35 = vpop.f32.mrf.mxu3  ;;  %v1363_v52 = vadd.f32 %v1362_v20, %v5393_v26  ;;  %v1451_v16 = vpop.f32.mrf.mxu1  ;;  %v4143_v55 = vld [vmem:[#allocation7 + $0x3b0] sm:$0xf] }
 0x295   :  { %v5775_v39 = vpop.eup %4544 }
 0x296   :  { %6740 = vst [vmem:[#allocation118_spill] sm:$0xff] %v5775_v39  ;;  %v1627_v59 = vadd.f32 %v1626_v35, %v1538_v38  ;;  %v5779_v53 = vpop.eup %4546  ;;  %v1452_v63 = vadd.f32 %v1451_v16, %v1363_v52  ;;  %2166 = vmatmul.bf16.gmra.mxu0 %v1843_v4 }
 0x297   :  { %6741 = vst [vmem:[#allocation119_spill] sm:$0xff] %v5779_v53  ;;  %2255 = vmatmul.bf16.gmra.mxu1 %v1844_v21  ;;  %v5783_v20 = vpack.c.bf16 %v5779_v53, %v5775_v39  ;;  %v5787_v40 = vpop.eup %4548  ;;  %v4145_v39 = vld [vmem:[#allocation7 + $0x3b8] sm:$0xf0] }
 0x298   :  { %4550 = vtanh.f32 %v1627_v59  ;;  %2344 = vmatmul.bf16.gmra.mxu2 %v1843_v4  ;;  %6743 = vst [vmem:[#allocation121_spill] sm:$0xff] %v5787_v40 }
 0x299   :  { %6742 = vst [vmem:[#allocation120_spill] sm:$0xff] %v5783_v20  ;;  %2433 = vmatmul.bf16.gmra.mxu3 %v1844_v21  ;;  %4552 = vtanh.f32 %v5295_v44  ;;  %v4347_v44 = vld [vmem:[#allocation7 + $0x334] sm:$0xf]  ;;  %v4081_v21 = vld [vmem:[#allocation7 + $0x338] sm:$0xf0] }
 0x29a   :  { %4554 = vtanh.f32 %v5299_v5  ;;  %v4084_v5 = vor.u32 %v4347_v44, %v4081_v21 }
 0x29b   :  { %v1540_v34 = vpop.f32.mrf.mxu2  ;;  %v1364_v19 = vpop.f32.mrf.mxu0  ;;  %4556 = vtanh.f32 %v5289_v28 }
 0x29c   :  { %v1541_v38 = vadd.f32 %v1540_v34, %v5399_v46  ;;  %v1629_v35 = vpop.f32.mrf.mxu3  ;;  %v1365_v14 = vadd.f32 %v1364_v19, %v5393_v26  ;;  %v1453_v52 = vpop.f32.mrf.mxu1  ;;  %4558 = vtanh.f32 %v5293_v43  ;;  %v4363_v34 = vld [vmem:[#allocation7 + $0x3b4] sm:$0xf]  ;;  %2897 = vmatpush.bf16.msrb.mxu2 %v4084_v5  ;;  %v4080_v43 = vor.u32 %v4348_v32, %v4079_v27 }
 0x29d   :  { %4560 = vtanh.f32 %v1452_v63  ;;  %v4148_v19 = vor.u32 %v4363_v34, %v4145_v39 }
 0x29e   :  { %v5791_v16 = vpop.eup %4550  ;;  %v1630_v4 = vadd.f32 %v1629_v35, %v1541_v38  ;;  %v1454_v59 = vadd.f32 %v1453_v52, %v1365_v14  ;;  %v4364_v38 = vld [vmem:[#allocation7 + $0x3b4] sm:$0xf0]  ;;  %2719 = vmatpush.bf16.msrb.mxu0 %v4080_v43 }
 0x29f   :  { %6744 = vst [vmem:[#allocation122_spill] sm:$0xff] %v5791_v16  ;;  %v5797_v53 = vpack.c.bf16 %v5791_v16, %v5787_v40  ;;  %v5799_v28 = vpop.eup %4552  ;;  %2986 = vmatpush.bf16.msrb.mxu3 %v4148_v19  ;;  %v4144_v52 = vor.u32 %v4364_v38, %v4143_v55  ;;  %v4361_v40 = vld [vmem:[#allocation7 + $0x3a4] sm:$0xf] }
 0x2a0   :  { %4562 = vtanh.f32 %v1454_v59  ;;  %6746 = vst [vmem:[#allocation124_spill] sm:$0xff] %v5799_v28  ;;  %v5801_v35 = vpop.eup %4554 }
 0x2a1   :  { %6745 = vst [vmem:[#allocation123_spill] sm:$0xff] %v5797_v53  ;;  %v5803_v16 = vpop.eup %4556  ;;  %2808 = vmatpush.bf16.msrb.mxu1 %v4144_v52  ;;  %4564 = vtanh.f32 %v1630_v4 }
 0x2a2   :  { %6747 = vst [vmem:[#allocation125_spill] sm:$0xff] %v5801_v35  ;;  %v5806_v39 = vpop.eup %4558  ;;  %v1845_v32 = vpack.c.bf16 %v5799_v28, %v5803_v16  ;;  %v4065_v28 = vld [vmem:[#allocation7 + $0x318] sm:$0xf0] }
 0x2a3   :  { %v1542_v14 = vpop.f32.mrf.mxu2  ;;  %6748 = vst [vmem:[#allocation126_spill] sm:$0xff] %v5803_v16  ;;  %v1367_v59 = vpop.f32.mrf.mxu0  ;;  %v1846_v55 = vpack.c.bf16 %v5801_v35, %v5806_v39 }
 0x2a4   :  { %v1543_v63 = vadd.f32 %v1542_v14, %v5399_v46  ;;  %v1631_v44 = vpop.f32.mrf.mxu3  ;;  %6749 = vst [vmem:[#allocation127_spill] sm:$0xff] %v5806_v39  ;;  %v1368_v21 = vadd.f32 %v1367_v59, %v5393_v26  ;;  %v1456_v34 = vpop.f32.mrf.mxu1  ;;  %v4359_v39 = vld [vmem:[#allocation7 + $0x394] sm:$0xf] }
 0x2a5   :  { %v5811_v27 = vpop.eup %4560 }
 0x2a6   :  { %6750 = vst [vmem:[#allocation128_spill] sm:$0xff] %v5811_v27  ;;  %v1632_v5 = vadd.f32 %v1631_v44, %v1543_v63  ;;  %v5815_v19 = vpop.eup %4562  ;;  %v1457_v38 = vadd.f32 %v1456_v34, %v1368_v21  ;;  %2171 = vmatmul.bf16.gmra.mxu0 %v1845_v32 }
 0x2a7   :  { %6751 = vst [vmem:[#allocation129_spill] sm:$0xff] %v5815_v19  ;;  %2260 = vmatmul.bf16.gmra.mxu1 %v1846_v55  ;;  %v5819_v43 = vpack.c.bf16 %v5815_v19, %v5811_v27  ;;  %v5823_v59 = vpop.eup %4564 }
 0x2a8   :  { %4566 = vtanh.f32 %v1632_v5  ;;  %2349 = vmatmul.bf16.gmra.mxu2 %v1845_v32  ;;  %6753 = vst [vmem:[#allocation131_spill] sm:$0xff] %v5823_v59  ;;  %v1962_v5 = vld [vmem:[#allocation8 + $0x1] ss:$2 sm:$0x3] }
 0x2a9   :  { %6752 = vst [vmem:[#allocation130_spill] sm:$0xff] %v5819_v43  ;;  %2438 = vmatmul.bf16.gmra.mxu3 %v1846_v55  ;;  %4568 = vtanh.f32 %v5307_v31 }
 0x2aa   :  { %4570 = vtanh.f32 %v5311_v10 }
 0x2ab   :  { %v1545_v14 = vpop.f32.mrf.mxu2  ;;  %v1369_v44 = vpop.f32.mrf.mxu0  ;;  %4572 = vtanh.f32 %v5301_v6 }
 0x2ac   :  { %v1546_v52 = vadd.f32 %v1545_v14, %v5399_v46  ;;  %v1634_v63 = vpop.f32.mrf.mxu3  ;;  %v1370_v4 = vadd.f32 %v1369_v44, %v5393_v26  ;;  %v1458_v21 = vpop.f32.mrf.mxu1  ;;  %4574 = vtanh.f32 %v5305_v30  ;;  %v5835_v14 = vperm.slane %v1962_v5, 0 }
 0x2ad   :  { %4576 = vtanh.f32 %v1457_v38 }
 0x2ae   :  { %v5827_v34 = vpop.eup %4566  ;;  %v1635_v32 = vadd.f32 %v1634_v63, %v1546_v52  ;;  %v1459_v31 = vadd.f32 %v1458_v21, %v1370_v4 }
 0x2af   :  { %6754 = vst [vmem:[#allocation132_spill] sm:$0xff] %v5827_v34  ;;  %v5833_v55 = vpack.c.bf16 %v5827_v34, %v5823_v59  ;;  %v5837_v10 = vpop.eup %4568 }
 0x2b0   :  { %4578 = vtanh.f32 %v1459_v31  ;;  %6756 = vst [vmem:[#allocation134_spill] sm:$0xff] %v5837_v10  ;;  %v5839_v26 = vpop.eup %4570 }
 0x2b1   :  { %6755 = vst [vmem:[#allocation133_spill] sm:$0xff] %v5833_v55  ;;  %v5841_v19 = vpop.eup %4572  ;;  %4580 = vtanh.f32 %v1635_v32 }
 0x2b2   :  { %6757 = vst [vmem:[#allocation135_spill] sm:$0xff] %v5839_v26  ;;  %v5844_v63 = vpop.eup %4574  ;;  %v1847_v38 = vpack.c.bf16 %v5837_v10, %v5841_v19  ;;  %v4137_v10 = vld [vmem:[#allocation7 + $0x3a8] sm:$0xf0] }
 0x2b3   :  { %v1547_v44 = vpop.f32.mrf.mxu2  ;;  %6758 = vst [vmem:[#allocation136_spill] sm:$0xff] %v5841_v19  ;;  %v2137_v30 = vpop.f32.mrf.mxu0  ;;  %v1848_v59 = vpack.c.bf16 %v5839_v26, %v5844_v63  ;;  %v4140_v32 = vor.u32 %v4361_v40, %v4137_v10 }
 0x2b4   :  { %v1548_v6 = vadd.f32 %v1547_v44, %v5399_v46  ;;  %v1636_v52 = vpop.f32.mrf.mxu3  ;;  %6759 = vst [vmem:[#allocation137_spill] sm:$0xff] %v5844_v63  ;;  %v2138_v4 = vadd.f32 %v2137_v30, %v5835_v14  ;;  %v2226_v21 = vpop.f32.mrf.mxu1  ;;  %v5857_v44 = vperm.slane %v1962_v5, 1 }
 0x2b5   :  { %v5849_v31 = vpop.eup %4576  ;;  %2987 = vmatpush.bf16.msrb.mxu3 %v4140_v32  ;;  %v4362_v32 = vld [vmem:[#allocation7 + $0x3a4] sm:$0xf0] }
 0x2b6   :  { %6760 = vst [vmem:[#allocation138_spill] sm:$0xff] %v5849_v31  ;;  %v1637_v34 = vadd.f32 %v1636_v52, %v1548_v6  ;;  %v5853_v27 = vpop.eup %4578  ;;  %v5855_v46 = vadd.f32 %v2226_v21, %v2138_v4  ;;  %2176 = vmatmul.bf16.gmra.mxu0 %v1847_v38  ;;  %v4345_v6 = vld [vmem:[#allocation7 + $0x324] sm:$0xf]  ;;  %v4073_v52 = vld [vmem:[#allocation7 + $0x328] sm:$0xf0] }
 0x2b7   :  { %6761 = vst [vmem:[#allocation139_spill] sm:$0xff] %v5853_v27  ;;  %2265 = vmatmul.bf16.gmra.mxu1 %v1848_v59  ;;  %v5861_v30 = vpack.c.bf16 %v5853_v27, %v5849_v31  ;;  %v4076_v26 = vor.u32 %v4345_v6, %v4073_v52  ;;  %v5865_v5 = vpop.eup %4580 }
 0x2b8   :  { %4582 = vtanh.f32 %v1637_v34  ;;  %2354 = vmatmul.bf16.gmra.mxu2 %v1847_v38  ;;  %6763 = vst [vmem:[#allocation141_spill] sm:$0xff] %v5865_v5 }
 0x2b9   :  { %6762 = vst [vmem:[#allocation140_spill] sm:$0xff] %v5861_v30  ;;  %2443 = vmatmul.bf16.gmra.mxu3 %v1848_v59  ;;  %4584 = vtanh.f32 %v5319_v36  ;;  %2898 = vmatpush.bf16.msrb.mxu2 %v4076_v26  ;;  %v4071_v26 = vld [vmem:[#allocation7 + $0x320] sm:$0xf] }
 0x2ba   :  { %4586 = vtanh.f32 %v5323_v61  ;;  %v4346_v61 = vld [vmem:[#allocation7 + $0x324] sm:$0xf0] }
 0x2bb   :  { %v2315_v63 = vpop.f32.mrf.mxu2  ;;  %v2139_v21 = vpop.f32.mrf.mxu0  ;;  %4588 = vtanh.f32 %v5313_v13  ;;  %v4072_v52 = vor.u32 %v4346_v61, %v4071_v26 }
 0x2bc   :  { %v2316_v34 = vadd.f32 %v2315_v63, %v5857_v44  ;;  %v2404_v4 = vpop.f32.mrf.mxu3  ;;  %v2140_v59 = vadd.f32 %v2139_v21, %v5835_v14  ;;  %v2228_v38 = vpop.f32.mrf.mxu1  ;;  %4590 = vtanh.f32 %v5317_v29  ;;  %v4135_v63 = vld [vmem:[#allocation7 + $0x3a0] sm:$0xf] }
 0x2bd   :  { %2720 = vmatpush.bf16.msrb.mxu0 %v4072_v52 }
 0x2be   :  { %v5869_v27 = vpop.eup %4582  ;;  %v5872_v40 = vadd.f32 %v2404_v4, %v2316_v34  ;;  %v5875_v36 = vadd.f32 %v2228_v38, %v2140_v59  ;;  %v4136_v34 = vor.u32 %v4362_v32, %v4135_v63 }
 0x2bf   :  { %6764 = vst [vmem:[#allocation142_spill] sm:$0xff] %v5869_v27  ;;  %v5879_v10 = vpack.c.bf16 %v5869_v27, %v5865_v5  ;;  %v5881_v6 = vpop.eup %4584 }
 0x2c0   :  { %6766 = vst [vmem:[#allocation144_spill] sm:$0xff] %v5881_v6  ;;  %v5883_v21 = vpop.eup %4586  ;;  %2809 = vmatpush.bf16.msrb.mxu1 %v4136_v34 }
 0x2c1   :  { %6765 = vst [vmem:[#allocation143_spill] sm:$0xff] %v5879_v10  ;;  %v5885_v4 = vpop.eup %4588 }
 0x2c2   :  { %6767 = vst [vmem:[#allocation145_spill] sm:$0xff] %v5883_v21  ;;  %v5888_v27 = vpop.eup %4590  ;;  %v1849_v26 = vpack.c.bf16 %v5881_v6, %v5885_v4  ;;  %v6771_v6 = vld [vmem:[#allocation18_spill] sm:$0xff] }
 0x2c3   :  { %v2317_v13 = vpop.f32.mrf.mxu2  ;;  %6768 = vst [vmem:[#allocation146_spill] sm:$0xff] %v5885_v4  ;;  %v2142_v38 = vpop.f32.mrf.mxu0  ;;  %v1850_v63 = vpack.c.bf16 %v5883_v21, %v5888_v27 }
 0x2c4   :  { %v2318_v29 = vadd.f32 %v2317_v13, %v5857_v44  ;;  %v2406_v59 = vpop.f32.mrf.mxu3  ;;  %6769 = vst [vmem:[#allocation147_spill] sm:$0xff] %v5888_v27  ;;  %v2143_v5 = vadd.f32 %v2142_v38, %v5835_v14  ;;  %v2231_v31 = vpop.f32.mrf.mxu1  ;;  %v6770_v13 = vld [vmem:[#allocation17_spill] sm:$0xff] }
 0x2c5   :  { %4592 = vtanh.f32 %v6770_v13 }
 0x2c6   :  { %v5893_v61 = vadd.f32 %v2406_v59, %v2318_v29  ;;  %v5897_v32 = vadd.f32 %v2231_v31, %v2143_v5  ;;  %2181 = vmatmul.bf16.gmra.mxu0 %v1849_v26  ;;  %4594 = vtanh.f32 %v6771_v6  ;;  %v6772_v59 = vld [vmem:[#allocation15_spill] sm:$0xff]  ;;  %v6773_v5 = vld [vmem:[#allocation16_spill] sm:$0xff] }
 0x2c7   :  { %2270 = vmatmul.bf16.gmra.mxu1 %v1850_v63  ;;  %4596 = vtanh.f32 %v6772_v59 }
 0x2c8   :  { %2359 = vmatmul.bf16.gmra.mxu2 %v1849_v26  ;;  %4598 = vtanh.f32 %v6773_v5 }
 0x2c9   :  { %2448 = vmatmul.bf16.gmra.mxu3 %v1850_v63  ;;  %4600 = vtanh.f32 %v6778_v56  ;;  %v4063_v56 = vld [vmem:[#allocation7 + $0x310] sm:$0xf] }
 0x2cb   :  { %v2320_v52 = vpop.f32.mrf.mxu2  ;;  %v2144_v35 = vpop.f32.mrf.mxu0 }
 0x2cc   :  { %v2321_v38 = vadd.f32 %v2320_v52, %v5857_v44  ;;  %v2409_v19 = vpop.f32.mrf.mxu3  ;;  %v2145_v34 = vadd.f32 %v2144_v35, %v5835_v14  ;;  %v2233_v29 = vpop.f32.mrf.mxu1 }
 0x2cd   :  { %v5909_v63 = vpop.eup %4592 }
 0x2ce   :  { %v5904_v31 = vadd.f32 %v2409_v19, %v2321_v38  ;;  %v5907_v26 = vadd.f32 %v2233_v29, %v2145_v34  ;;  %6774 = vst [vmem:[#allocation17_spill] sm:$0xff] %v5909_v63  ;;  %v5911_v13 = vpop.eup %4594 }
 0x2cf   :  { %6775 = vst [vmem:[#allocation18_spill] sm:$0xff] %v5911_v13  ;;  %v5913_v21 = vpop.eup %4596 }
 0x2d0   :  { %6776 = vst [vmem:[#allocation15_spill] sm:$0xff] %v5913_v21  ;;  %v5916_v4 = vpop.eup %4598  ;;  %v1851_v34 = vpack.c.bf16 %v5909_v63, %v5913_v21 }
 0x2d1   :  { %6777 = vst [vmem:[#allocation16_spill] sm:$0xff] %v5916_v4  ;;  %v1852_v59 = vpack.c.bf16 %v5911_v13, %v5916_v4  ;;  %v4360_v4 = vld [vmem:[#allocation7 + $0x394] sm:$0xf0] }
 0x2d3   :  { %v2322_v52 = vpop.f32.mrf.mxu2  ;;  %v2147_v35 = vpop.f32.mrf.mxu0 }
 0x2d4   :  { %v2323_v6 = vadd.f32 %v2322_v52, %v5857_v44  ;;  %v2411_v27 = vpop.f32.mrf.mxu3  ;;  %v2148_v19 = vadd.f32 %v2147_v35, %v5835_v14  ;;  %v2236_v38 = vpop.f32.mrf.mxu1  ;;  %v4343_v52 = vld [vmem:[#allocation7 + $0x314] sm:$0xf]  ;;  %v4129_v35 = vld [vmem:[#allocation7 + $0x398] sm:$0xf0] }
 0x2d5   :  { %v4068_v16 = vor.u32 %v4343_v52, %v4065_v28  ;;  %v4132_v30 = vor.u32 %v4359_v39, %v4129_v35  ;;  %v6781_v28 = vld [vmem:[#allocation20_spill] sm:$0xff]  ;;  %v4344_v52 = vld [vmem:[#allocation7 + $0x314] sm:$0xf0]  ;;  %v5937_v35 = vpop.eup %4600 }
 0x2d6   :  { %v5921_v29 = vadd.f32 %v2411_v27, %v2323_v6  ;;  %v5925_v5 = vadd.f32 %v2236_v38, %v2148_v19  ;;  %2186 = vmatmul.bf16.gmra.mxu0 %v1851_v34  ;;  %v6779_v19 = vld [vmem:[#allocation22_spill] sm:$0xff]  ;;  %6782 = vst [vmem:[#allocation21_spill] sm:$0xff] %v5937_v35 }
 0x2d7   :  { %2275 = vmatmul.bf16.gmra.mxu1 %v1852_v59  ;;  %2899 = vmatpush.bf16.msrb.mxu2 %v4068_v16  ;;  %4602 = vtanh.f32 %v6779_v19  ;;  %v4064_v16 = vor.u32 %v4344_v52, %v4063_v56 }
 0x2d8   :  { %2364 = vmatmul.bf16.gmra.mxu2 %v1851_v34  ;;  %2988 = vmatpush.bf16.msrb.mxu3 %v4132_v30 }
 0x2d9   :  { %2453 = vmatmul.bf16.gmra.mxu3 %v1852_v59  ;;  %v6780_v59 = vld [vmem:[#allocation19_spill] sm:$0xff]  ;;  %2721 = vmatpush.bf16.msrb.mxu0 %v4064_v16 }
 0x2da   :  { %4604 = vtanh.f32 %v6780_v59 }
 0x2db   :  { %v2325_v10 = vpop.f32.mrf.mxu2  ;;  %v2149_v63 = vpop.f32.mrf.mxu0  ;;  %4606 = vtanh.f32 %v6781_v28 }
 0x2dc   :  { %v2326_v27 = vadd.f32 %v2325_v10, %v5857_v44  ;;  %v2414_v6 = vpop.f32.mrf.mxu3  ;;  %v2150_v38 = vadd.f32 %v2149_v63, %v5835_v14  ;;  %v2238_v34 = vpop.f32.mrf.mxu1  ;;  %v4127_v10 = vld [vmem:[#allocation7 + $0x390] sm:$0xf] }
 0x2dd   :  { %v5939_v19 = vpop.eup %4602  ;;  %v4128_v21 = vor.u32 %v4360_v4, %v4127_v10 }
 0x2de   :  { %v5932_v13 = vadd.f32 %v2414_v6, %v2326_v27  ;;  %v5935_v39 = vadd.f32 %v2238_v34, %v2150_v38  ;;  %6783 = vst [vmem:[#allocation22_spill] sm:$0xff] %v5939_v19 }
 0x2df   :  { %2810 = vmatpush.bf16.msrb.mxu1 %v4128_v21 }
 0x2e0   :  { %v5941_v30 = vpop.eup %4604 }
 0x2e1   :  { %6784 = vst [vmem:[#allocation19_spill] sm:$0xff] %v5941_v30  ;;  %v5944_v38 = vpop.eup %4606  ;;  %v1853_v56 = vpack.c.bf16 %v5937_v35, %v5941_v30  ;;  %v6787_v35 = vld [vmem:[#allocation26_spill] sm:$0xff] }
 0x2e2   :  { %6785 = vst [vmem:[#allocation20_spill] sm:$0xff] %v5944_v38  ;;  %v1854_v4 = vpack.c.bf16 %v5939_v19, %v5944_v38 }
 0x2e3   :  { %v2327_v63 = vpop.f32.mrf.mxu2  ;;  %v2152_v59 = vpop.f32.mrf.mxu0 }
 0x2e4   :  { %v2328_v27 = vadd.f32 %v2327_v63, %v5857_v44  ;;  %v2416_v6 = vpop.f32.mrf.mxu3  ;;  %v2153_v34 = vadd.f32 %v2152_v59, %v5835_v14  ;;  %v2241_v28 = vpop.f32.mrf.mxu1  ;;  %v6786_v63 = vld [vmem:[#allocation25_spill] sm:$0xff] }
 0x2e5   :  { %4608 = vtanh.f32 %v6786_v63 }
 0x2e6   :  { %v5949_v52 = vadd.f32 %v2416_v6, %v2328_v27  ;;  %v5953_v10 = vadd.f32 %v2241_v28, %v2153_v34  ;;  %2191 = vmatmul.bf16.gmra.mxu0 %v1853_v56  ;;  %4610 = vtanh.f32 %v6787_v35  ;;  %v6788_v6 = vld [vmem:[#allocation23_spill] sm:$0xff]  ;;  %v6789_v28 = vld [vmem:[#allocation24_spill] sm:$0xff] }
 0x2e7   :  { %2280 = vmatmul.bf16.gmra.mxu1 %v1854_v4  ;;  %4612 = vtanh.f32 %v6788_v6 }
 0x2e8   :  { %2369 = vmatmul.bf16.gmra.mxu2 %v1853_v56  ;;  %4614 = vtanh.f32 %v6789_v28 }
 0x2e9   :  { %2458 = vmatmul.bf16.gmra.mxu3 %v1854_v4  ;;  %4616 = vtanh.f32 %v6794_v37  ;;  %v4055_v37 = vld [vmem:[#allocation7 + $0x300] sm:$0xf] }
 0x2eb   :  { %v2330_v16 = vpop.f32.mrf.mxu2  ;;  %v2154_v43 = vpop.f32.mrf.mxu0 }
 0x2ec   :  { %v2331_v59 = vadd.f32 %v2330_v16, %v5857_v44  ;;  %v2419_v55 = vpop.f32.mrf.mxu3  ;;  %v2155_v21 = vadd.f32 %v2154_v43, %v5835_v14  ;;  %v2243_v27 = vpop.f32.mrf.mxu1 }
 0x2ed   :  { %v5965_v4 = vpop.eup %4608 }
 0x2ee   :  { %v5960_v34 = vadd.f32 %v2419_v55, %v2331_v59  ;;  %v5963_v56 = vadd.f32 %v2243_v27, %v2155_v21  ;;  %6790 = vst [vmem:[#allocation25_spill] sm:$0xff] %v5965_v4  ;;  %v5967_v63 = vpop.eup %4610 }
 0x2ef   :  { %6791 = vst [vmem:[#allocation26_spill] sm:$0xff] %v5967_v63  ;;  %v5969_v19 = vpop.eup %4612 }
 0x2f0   :  { %6792 = vst [vmem:[#allocation23_spill] sm:$0xff] %v5969_v19  ;;  %v5972_v30 = vpop.eup %4614  ;;  %v1855_v21 = vpack.c.bf16 %v5965_v4, %v5969_v19 }
 0x2f1   :  { %6793 = vst [vmem:[#allocation24_spill] sm:$0xff] %v5972_v30  ;;  %v1856_v6 = vpack.c.bf16 %v5967_v63, %v5972_v30  ;;  %v4358_v30 = vld [vmem:[#allocation7 + $0x384] sm:$0xf0] }
 0x2f3   :  { %v2332_v16 = vpop.f32.mrf.mxu2  ;;  %v2157_v43 = vpop.f32.mrf.mxu0 }
 0x2f4   :  { %v2333_v35 = vadd.f32 %v2332_v16, %v5857_v44  ;;  %v2421_v38 = vpop.f32.mrf.mxu3  ;;  %v2158_v55 = vadd.f32 %v2157_v43, %v5835_v14  ;;  %v2246_v59 = vpop.f32.mrf.mxu1  ;;  %v4341_v16 = vld [vmem:[#allocation7 + $0x304] sm:$0xf]  ;;  %v4121_v43 = vld [vmem:[#allocation7 + $0x388] sm:$0xf0] }
 0x2f5   :  { %v4060_v53 = vor.u32 %v4341_v16, %v4057_v45  ;;  %v4124_v58 = vor.u32 %v4357_v11, %v4121_v43  ;;  %v6798_v45 = vld [vmem:[#allocation28_spill] sm:$0xff]  ;;  %v4342_v16 = vld [vmem:[#allocation7 + $0x304] sm:$0xf0]  ;;  %v5993_v43 = vpop.eup %4616 }
 0x2f6   :  { %v5977_v27 = vadd.f32 %v2421_v38, %v2333_v35  ;;  %v5981_v28 = vadd.f32 %v2246_v59, %v2158_v55  ;;  %2196 = vmatmul.bf16.gmra.mxu0 %v1855_v21  ;;  %v6795_v55 = vld [vmem:[#allocation30_spill] sm:$0xff] }
 0x2f7   :  { %2285 = vmatmul.bf16.gmra.mxu1 %v1856_v6  ;;  %2900 = vmatpush.bf16.msrb.mxu2 %v4060_v53  ;;  %4618 = vtanh.f32 %v6795_v55  ;;  %v4056_v53 = vor.u32 %v4342_v16, %v4055_v37 }
 0x2f8   :  { %2374 = vmatmul.bf16.gmra.mxu2 %v1855_v21  ;;  %2989 = vmatpush.bf16.msrb.mxu3 %v4124_v58 }
 0x2f9   :  { %2463 = vmatmul.bf16.gmra.mxu3 %v1856_v6  ;;  %v6796_v6 = vld [vmem:[#allocation27_spill] sm:$0xff]  ;;  %2722 = vmatpush.bf16.msrb.mxu0 %v4056_v53 }
 0x2fa   :  { %4620 = vtanh.f32 %v6796_v6  ;;  %6800 = vst [vmem:[#allocation27_spill] sm:$0xff] %v5993_v43 }
 0x2fb   :  { %v2335_v20 = vpop.f32.mrf.mxu2  ;;  %v2159_v4 = vpop.f32.mrf.mxu0  ;;  %4622 = vtanh.f32 %v6798_v45 }
 0x2fc   :  { %v2336_v38 = vadd.f32 %v2335_v20, %v5857_v44  ;;  %v2424_v35 = vpop.f32.mrf.mxu3  ;;  %v2160_v59 = vadd.f32 %v2159_v4, %v5835_v14  ;;  %v2248_v21 = vpop.f32.mrf.mxu1  ;;  %v4119_v20 = vld [vmem:[#allocation7 + $0x380] sm:$0xf] }
 0x2fd   :  { %v5995_v55 = vpop.eup %4618  ;;  %v4120_v19 = vor.u32 %v4358_v30, %v4119_v20 }
 0x2fe   :  { %v5988_v63 = vadd.f32 %v2424_v35, %v2336_v38  ;;  %v5991_v11 = vadd.f32 %v2248_v21, %v2160_v59  ;;  %6801 = vst [vmem:[#allocation28_spill] sm:$0xff] %v5995_v55 }
 0x2ff   :  { %2811 = vmatpush.bf16.msrb.mxu1 %v4120_v19 }
 0x300   :  { %6797 = vst [vmem:[#allocation29_spill] sm:$0xff] %v5988_v63  ;;  %v5997_v58 = vpop.eup %4620 }
 0x301   :  { %6799 = vst [vmem:[#allocation30_spill] sm:$0xff] %v5991_v11  ;;  %v6000_v59 = vpop.eup %4622  ;;  %v1857_v37 = vpack.c.bf16 %v5993_v43, %v5997_v58  ;;  %v6807_v43 = vld [vmem:[#allocation34_spill] sm:$0xff] }
 0x302   :  { %6802 = vst [vmem:[#allocation148_spill] sm:$0xff] %v5997_v58  ;;  %v1858_v30 = vpack.c.bf16 %v5995_v55, %v6000_v59 }
 0x303   :  { %v2337_v4 = vpop.f32.mrf.mxu2  ;;  %v2162_v6 = vpop.f32.mrf.mxu0  ;;  %6803 = vst [vmem:[#allocation149_spill] sm:$0xff] %v6000_v59 }
 0x304   :  { %v2338_v38 = vadd.f32 %v2337_v4, %v5857_v44  ;;  %v2426_v35 = vpop.f32.mrf.mxu3  ;;  %v2163_v21 = vadd.f32 %v2162_v6, %v5835_v14  ;;  %v2251_v45 = vpop.f32.mrf.mxu1  ;;  %v6806_v4 = vld [vmem:[#allocation33_spill] sm:$0xff] }
 0x305   :  { %4624 = vtanh.f32 %v6806_v4 }
 0x306   :  { %v6005_v16 = vadd.f32 %v2426_v35, %v2338_v38  ;;  %v6009_v20 = vadd.f32 %v2251_v45, %v2163_v21  ;;  %2201 = vmatmul.bf16.gmra.mxu0 %v1857_v37  ;;  %4626 = vtanh.f32 %v6807_v43  ;;  %v6808_v35 = vld [vmem:[#allocation31_spill] sm:$0xff]  ;;  %v6810_v45 = vld [vmem:[#allocation32_spill] sm:$0xff] }
 0x307   :  { %2290 = vmatmul.bf16.gmra.mxu1 %v1858_v30  ;;  %4628 = vtanh.f32 %v6808_v35 }
 0x308   :  { %6804 = vst [vmem:[#allocation150_spill] sm:$0xff] %v6005_v16  ;;  %2379 = vmatmul.bf16.gmra.mxu2 %v1857_v37  ;;  %4630 = vtanh.f32 %v6810_v45  ;;  %v6819_v16 = vld [vmem:[#allocation38_spill] sm:$0xff] }
 0x309   :  { %6805 = vst [vmem:[#allocation151_spill] sm:$0xff] %v6009_v20  ;;  %2468 = vmatmul.bf16.gmra.mxu3 %v1858_v30 }
 0x30b   :  { %v2340_v53 = vpop.f32.mrf.mxu2  ;;  %v2164_v63 = vpop.f32.mrf.mxu0 }
 0x30c   :  { %v2341_v6 = vadd.f32 %v2340_v53, %v5857_v44  ;;  %v2429_v11 = vpop.f32.mrf.mxu3  ;;  %v2165_v19 = vadd.f32 %v2164_v63, %v5835_v14  ;;  %v2253_v38 = vpop.f32.mrf.mxu1 }
 0x30d   :  { %v6021_v30 = vpop.eup %4624 }
 0x30e   :  { %v6016_v21 = vadd.f32 %v2429_v11, %v2341_v6  ;;  %v6019_v37 = vadd.f32 %v2253_v38, %v2165_v19  ;;  %6812 = vst [vmem:[#allocation31_spill] sm:$0xff] %v6021_v30  ;;  %v6023_v4 = vpop.eup %4626 }
 0x30f   :  { %6813 = vst [vmem:[#allocation32_spill] sm:$0xff] %v6023_v4  ;;  %v6025_v55 = vpop.eup %4628 }
 0x310   :  { %6809 = vst [vmem:[#allocation33_spill] sm:$0xff] %v6016_v21  ;;  %v6028_v58 = vpop.eup %4630  ;;  %v1859_v19 = vpack.c.bf16 %v6021_v30, %v6025_v55  ;;  %v6820_v30 = vld [vmem:[#allocation35_spill] sm:$0xff] }
 0x311   :  { %6811 = vst [vmem:[#allocation34_spill] sm:$0xff] %v6019_v37  ;;  %v1860_v35 = vpack.c.bf16 %v6023_v4, %v6028_v58  ;;  %v6818_v37 = vld [vmem:[#allocation37_spill] sm:$0xff] }
 0x312   :  { %6814 = vst [vmem:[#allocation152_spill] sm:$0xff] %v6025_v55  ;;  %4632 = vtanh.f32 %v6818_v37 }
 0x313   :  { %v2342_v53 = vpop.f32.mrf.mxu2  ;;  %v2167_v63 = vpop.f32.mrf.mxu0  ;;  %6815 = vst [vmem:[#allocation153_spill] sm:$0xff] %v6028_v58  ;;  %4634 = vtanh.f32 %v6819_v16 }
 0x314   :  { %v2343_v43 = vadd.f32 %v2342_v53, %v5857_v44  ;;  %v2431_v59 = vpop.f32.mrf.mxu3  ;;  %v2168_v11 = vadd.f32 %v2167_v63, %v5835_v14  ;;  %v2256_v6 = vpop.f32.mrf.mxu1  ;;  %4636 = vtanh.f32 %v6820_v30 }
 0x316   :  { %v6033_v38 = vadd.f32 %v2431_v59, %v2343_v43  ;;  %v6037_v45 = vadd.f32 %v2256_v6, %v2168_v11  ;;  %2206 = vmatmul.bf16.gmra.mxu0 %v1859_v19  ;;  %v6822_v6 = vld [vmem:[#allocation36_spill] sm:$0xff] }
 0x317   :  { %2295 = vmatmul.bf16.gmra.mxu1 %v1860_v35  ;;  %4638 = vtanh.f32 %v6822_v6 }
 0x318   :  { %6816 = vst [vmem:[#allocation154_spill] sm:$0xff] %v6033_v38  ;;  %2384 = vmatmul.bf16.gmra.mxu2 %v1859_v19  ;;  %4640 = vtanh.f32 %v5855_v46 }
 0x319   :  { %6817 = vst [vmem:[#allocation155_spill] sm:$0xff] %v6037_v45  ;;  %2473 = vmatmul.bf16.gmra.mxu3 %v1860_v35  ;;  %v6049_v35 = vpop.eup %4632 }
 0x31a   :  { %6824 = vst [vmem:[#allocation35_spill] sm:$0xff] %v6049_v35  ;;  %v6051_v37 = vpop.eup %4634 }
 0x31b   :  { %v2345_v53 = vpop.f32.mrf.mxu2  ;;  %v2169_v20 = vpop.f32.mrf.mxu0  ;;  %6825 = vst [vmem:[#allocation36_spill] sm:$0xff] %v6051_v37 }
 0x31c   :  { %v2346_v63 = vadd.f32 %v2345_v53, %v5857_v44  ;;  %v2434_v21 = vpop.f32.mrf.mxu3  ;;  %v2170_v59 = vadd.f32 %v2169_v20, %v5835_v14  ;;  %v2258_v43 = vpop.f32.mrf.mxu1 }
 0x31d   :  { %v6053_v4 = vpop.eup %4636 }
 0x31e   :  { %v6044_v11 = vadd.f32 %v2434_v21, %v2346_v63  ;;  %v6047_v19 = vadd.f32 %v2258_v43, %v2170_v59  ;;  %6826 = vst [vmem:[#allocation156_spill] sm:$0xff] %v6053_v4  ;;  %v6056_v55 = vpop.eup %4638  ;;  %v1861_v63 = vpack.c.bf16 %v6049_v35, %v6053_v4  ;;  %v6832_v4 = vld [vmem:[#allocation41_spill] sm:$0xff] }
 0x31f   :  { %6827 = vst [vmem:[#allocation157_spill] sm:$0xff] %v6056_v55  ;;  %v1862_v43 = vpack.c.bf16 %v6051_v37, %v6056_v55 }
 0x320   :  { %6821 = vst [vmem:[#allocation37_spill] sm:$0xff] %v6044_v11 }
 0x321   :  { %6823 = vst [vmem:[#allocation38_spill] sm:$0xff] %v6047_v19 }
 0x323   :  { %v2347_v53 = vpop.f32.mrf.mxu2  ;;  %v2172_v20 = vpop.f32.mrf.mxu0 }
 0x324   :  { %v2348_v16 = vadd.f32 %v2347_v53, %v5857_v44  ;;  %v2436_v58 = vpop.f32.mrf.mxu3  ;;  %v2173_v21 = vadd.f32 %v2172_v20, %v5835_v14  ;;  %v2261_v30 = vpop.f32.mrf.mxu1 }
 0x326   :  { %v6061_v59 = vadd.f32 %v2436_v58, %v2348_v16  ;;  %v6065_v6 = vadd.f32 %v2261_v30, %v2173_v21  ;;  %2211 = vmatmul.bf16.gmra.mxu0 %v1861_v63 }
 0x327   :  { %2300 = vmatmul.bf16.gmra.mxu1 %v1862_v43 }
 0x328   :  { %2389 = vmatmul.bf16.gmra.mxu2 %v1861_v63 }
 0x329   :  { %2478 = vmatmul.bf16.gmra.mxu3 %v1862_v43 }
 0x32b   :  { %v2350_v53 = vpop.f32.mrf.mxu2  ;;  %v2174_v20 = vpop.f32.mrf.mxu0 }
 0x32c   :  { %v2351_v19 = vadd.f32 %v2350_v53, %v5857_v44  ;;  %v2439_v11 = vpop.f32.mrf.mxu3  ;;  %v2175_v45 = vadd.f32 %v2174_v20, %v5835_v14  ;;  %v2263_v38 = vpop.f32.mrf.mxu1  ;;  %v6833_v20 = vld [vmem:[#allocation44_spill] sm:$0xff] }
 0x32e   :  { %v6069_v35 = vadd.f32 %v2439_v11, %v2351_v19  ;;  %v6071_v58 = vadd.f32 %v2263_v38, %v2175_v45 }
 0x330   :  { %6828 = vst [vmem:[#allocation158_spill] sm:$0xff] %v6069_v35  ;;  %v6838_v35 = vld [vmem:[#allocation47_spill] sm:$0xff] }
 0x331   :  { %6829 = vst [vmem:[#allocation159_spill] sm:$0xff] %v6071_v58 }
 0x333   :  { %v2352_v16 = vpop.f32.mrf.mxu2  ;;  %v2177_v37 = vpop.f32.mrf.mxu0 }
 0x334   :  { %v2353_v21 = vadd.f32 %v2352_v16, %v5857_v44  ;;  %v2441_v30 = vpop.f32.mrf.mxu3  ;;  %v2178_v63 = vadd.f32 %v2177_v37, %v5835_v14  ;;  %v2266_v43 = vpop.f32.mrf.mxu1 }
 0x336   :  { %v6075_v55 = vadd.f32 %v2441_v30, %v2353_v21  ;;  %v6077_v53 = vadd.f32 %v2266_v43, %v2178_v63  ;;  %2723 = vmatmul.bf16.vlgmr.msrb.gmra.mxu0 %v6832_v4 }
 0x337   :  { %2812 = vmatmul.bf16.vlgmr.msrb.gmra.mxu1 %v6833_v20 }
 0x338   :  { %6830 = vst [vmem:[#allocation160_spill] sm:$0xff] %v6075_v55  ;;  %2901 = vmatmul.bf16.vlgmr.msrb.gmra.mxu2 %v6832_v4 }
 0x339   :  { %6831 = vst [vmem:[#allocation161_spill] sm:$0xff] %v6077_v53  ;;  %2990 = vmatmul.bf16.vlgmr.msrb.gmra.mxu3 %v6833_v20 }
 0x33b   :  { %v2355_v38 = vpop.f32.mrf.mxu2  ;;  %v2179_v19 = vpop.f32.mrf.mxu0 }
 0x33c   :  { %v2356_v45 = vadd.f32 %v2355_v38, %v5857_v44  ;;  %v2444_v11 = vpop.f32.mrf.mxu3  ;;  %v2180_v37 = vadd.f32 %v2179_v19, %v5835_v14  ;;  %v2268_v16 = vpop.f32.mrf.mxu1  ;;  %v6839_v19 = vld [vmem:[#allocation50_spill] sm:$0xff] }
 0x33e   :  { %v6085_v21 = vadd.f32 %v2444_v11, %v2356_v45  ;;  %v6087_v30 = vadd.f32 %v2268_v16, %v2180_v37 }
 0x340   :  { %6834 = vst [vmem:[#allocation41_spill] sm:$0xff] %v6085_v21  ;;  %v6844_v21 = vld [vmem:[#allocation53_spill] sm:$0xff] }
 0x341   :  { %6835 = vst [vmem:[#allocation44_spill] sm:$0xff] %v6087_v30 }
 0x343   :  { %v2357_v63 = vpop.f32.mrf.mxu2  ;;  %v2182_v55 = vpop.f32.mrf.mxu0 }
 0x344   :  { %v2358_v43 = vadd.f32 %v2357_v63, %v5857_v44  ;;  %v2446_v53 = vpop.f32.mrf.mxu3  ;;  %v2183_v4 = vadd.f32 %v2182_v55, %v5835_v14  ;;  %v2271_v20 = vpop.f32.mrf.mxu1 }
 0x346   :  { %v6091_v58 = vadd.f32 %v2446_v53, %v2358_v43  ;;  %v6093_v38 = vadd.f32 %v2271_v20, %v2183_v4  ;;  %2728 = vmatmul.bf16.gmra.mxu0 %v6838_v35 }
 0x347   :  { %2817 = vmatmul.bf16.gmra.mxu1 %v6839_v19 }
 0x348   :  { %6836 = vst [vmem:[#allocation162_spill] sm:$0xff] %v6091_v58  ;;  %2906 = vmatmul.bf16.gmra.mxu2 %v6838_v35 }
 0x349   :  { %6837 = vst [vmem:[#allocation163_spill] sm:$0xff] %v6093_v38  ;;  %2995 = vmatmul.bf16.gmra.mxu3 %v6839_v19 }
 0x34b   :  { %v2360_v45 = vpop.f32.mrf.mxu2  ;;  %v2184_v16 = vpop.f32.mrf.mxu0 }
 0x34c   :  { %v2361_v11 = vadd.f32 %v2360_v45, %v5857_v44  ;;  %v2449_v37 = vpop.f32.mrf.mxu3  ;;  %v2185_v55 = vadd.f32 %v2184_v16, %v5835_v14  ;;  %v2273_v63 = vpop.f32.mrf.mxu1  ;;  %v6845_v16 = vld [vmem:[#allocation56_spill] sm:$0xff] }
 0x34e   :  { %v6101_v53 = vadd.f32 %v2449_v37, %v2361_v11  ;;  %v6103_v43 = vadd.f32 %v2273_v63, %v2185_v55 }
 0x350   :  { %6840 = vst [vmem:[#allocation47_spill] sm:$0xff] %v6101_v53  ;;  %v6850_v53 = vld [vmem:[#allocation59_spill] sm:$0xff] }
 0x351   :  { %6841 = vst [vmem:[#allocation50_spill] sm:$0xff] %v6103_v43 }
 0x353   :  { %v2362_v4 = vpop.f32.mrf.mxu2  ;;  %v2187_v58 = vpop.f32.mrf.mxu0 }
 0x354   :  { %v2363_v20 = vadd.f32 %v2362_v4, %v5857_v44  ;;  %v2451_v38 = vpop.f32.mrf.mxu3  ;;  %v2188_v35 = vadd.f32 %v2187_v58, %v5835_v14  ;;  %v2276_v19 = vpop.f32.mrf.mxu1 }
 0x356   :  { %v6107_v30 = vadd.f32 %v2451_v38, %v2363_v20  ;;  %v6109_v45 = vadd.f32 %v2276_v19, %v2188_v35  ;;  %2733 = vmatmul.bf16.gmra.mxu0 %v6844_v21 }
 0x357   :  { %2822 = vmatmul.bf16.gmra.mxu1 %v6845_v16 }
 0x358   :  { %6842 = vst [vmem:[#allocation164_spill] sm:$0xff] %v6107_v30  ;;  %2911 = vmatmul.bf16.gmra.mxu2 %v6844_v21 }
 0x359   :  { %6843 = vst [vmem:[#allocation165_spill] sm:$0xff] %v6109_v45  ;;  %3000 = vmatmul.bf16.gmra.mxu3 %v6845_v16 }
 0x35b   :  { %v2365_v11 = vpop.f32.mrf.mxu2  ;;  %v2189_v63 = vpop.f32.mrf.mxu0 }
 0x35c   :  { %v2366_v37 = vadd.f32 %v2365_v11, %v5857_v44  ;;  %v2454_v55 = vpop.f32.mrf.mxu3  ;;  %v2190_v58 = vadd.f32 %v2189_v63, %v5835_v14  ;;  %v2278_v4 = vpop.f32.mrf.mxu1  ;;  %v6851_v63 = vld [vmem:[#allocation62_spill] sm:$0xff] }
 0x35e   :  { %v6117_v38 = vadd.f32 %v2454_v55, %v2366_v37  ;;  %v6119_v20 = vadd.f32 %v2278_v4, %v2190_v58 }
 0x360   :  { %6846 = vst [vmem:[#allocation53_spill] sm:$0xff] %v6117_v38  ;;  %v6856_v38 = vld [vmem:[#allocation65_spill] sm:$0xff] }
 0x361   :  { %6847 = vst [vmem:[#allocation56_spill] sm:$0xff] %v6119_v20 }
 0x363   :  { %v2367_v35 = vpop.f32.mrf.mxu2  ;;  %v2192_v30 = vpop.f32.mrf.mxu0 }
 0x364   :  { %v2368_v19 = vadd.f32 %v2367_v35, %v5857_v44  ;;  %v2456_v45 = vpop.f32.mrf.mxu3  ;;  %v2193_v21 = vadd.f32 %v2192_v30, %v5835_v14  ;;  %v2281_v16 = vpop.f32.mrf.mxu1 }
 0x366   :  { %v6123_v43 = vadd.f32 %v2456_v45, %v2368_v19  ;;  %v6125_v11 = vadd.f32 %v2281_v16, %v2193_v21  ;;  %2738 = vmatmul.bf16.gmra.mxu0 %v6850_v53 }
 0x367   :  { %2827 = vmatmul.bf16.gmra.mxu1 %v6851_v63 }
 0x368   :  { %6848 = vst [vmem:[#allocation166_spill] sm:$0xff] %v6123_v43  ;;  %2916 = vmatmul.bf16.gmra.mxu2 %v6850_v53 }
 0x369   :  { %6849 = vst [vmem:[#allocation167_spill] sm:$0xff] %v6125_v11  ;;  %3005 = vmatmul.bf16.gmra.mxu3 %v6851_v63 }
 0x36b   :  { %v2370_v37 = vpop.f32.mrf.mxu2  ;;  %v2194_v4 = vpop.f32.mrf.mxu0 }
 0x36c   :  { %v2371_v55 = vadd.f32 %v2370_v37, %v5857_v44  ;;  %v2459_v58 = vpop.f32.mrf.mxu3  ;;  %v2195_v30 = vadd.f32 %v2194_v4, %v5835_v14  ;;  %v2283_v35 = vpop.f32.mrf.mxu1  ;;  %v6857_v4 = vld [vmem:[#allocation68_spill] sm:$0xff] }
 0x36e   :  { %v6133_v45 = vadd.f32 %v2459_v58, %v2371_v55  ;;  %v6135_v19 = vadd.f32 %v2283_v35, %v2195_v30 }
 0x370   :  { %6852 = vst [vmem:[#allocation59_spill] sm:$0xff] %v6133_v45  ;;  %v6861_v45 = vld [vmem:[#allocation71_spill] sm:$0xff] }
 0x371   :  { %6853 = vst [vmem:[#allocation62_spill] sm:$0xff] %v6135_v19 }
 0x373   :  { %v2372_v21 = vpop.f32.mrf.mxu2  ;;  %v2197_v43 = vpop.f32.mrf.mxu0 }
 0x374   :  { %v2373_v16 = vadd.f32 %v2372_v21, %v5857_v44  ;;  %v2461_v11 = vpop.f32.mrf.mxu3  ;;  %v2198_v53 = vadd.f32 %v2197_v43, %v5835_v14  ;;  %v2286_v63 = vpop.f32.mrf.mxu1 }
 0x376   :  { %v6139_v20 = vadd.f32 %v2461_v11, %v2373_v16  ;;  %v6141_v37 = vadd.f32 %v2286_v63, %v2198_v53  ;;  %2743 = vmatmul.bf16.gmra.mxu0 %v6856_v38 }
 0x377   :  { %2832 = vmatmul.bf16.gmra.mxu1 %v6857_v4 }
 0x378   :  { %6854 = vst [vmem:[#allocation168_spill] sm:$0xff] %v6139_v20  ;;  %2921 = vmatmul.bf16.gmra.mxu2 %v6856_v38 }
 0x379   :  { %6855 = vst [vmem:[#allocation169_spill] sm:$0xff] %v6141_v37  ;;  %3010 = vmatmul.bf16.gmra.mxu3 %v6857_v4 }
 0x37b   :  { %v2375_v55 = vpop.f32.mrf.mxu2  ;;  %v2199_v35 = vpop.f32.mrf.mxu0 }
 0x37c   :  { %v2376_v58 = vadd.f32 %v2375_v55, %v5857_v44  ;;  %v2464_v30 = vpop.f32.mrf.mxu3  ;;  %v2200_v43 = vadd.f32 %v2199_v35, %v5835_v14  ;;  %v2288_v21 = vpop.f32.mrf.mxu1  ;;  %v6862_v35 = vld [vmem:[#allocation74_spill] sm:$0xff] }
 0x37e   :  { %v6149_v11 = vadd.f32 %v2464_v30, %v2376_v58  ;;  %v6151_v16 = vadd.f32 %v2288_v21, %v2200_v43 }
 0x380   :  { %6858 = vst [vmem:[#allocation65_spill] sm:$0xff] %v6151_v16 }
 0x383   :  { %v2377_v53 = vpop.f32.mrf.mxu2  ;;  %v2202_v20 = vpop.f32.mrf.mxu0 }
 0x384   :  { %v2378_v63 = vadd.f32 %v2377_v53, %v5857_v44  ;;  %v2466_v37 = vpop.f32.mrf.mxu3  ;;  %v2203_v38 = vadd.f32 %v2202_v20, %v5835_v14  ;;  %v2291_v4 = vpop.f32.mrf.mxu1 }
 0x386   :  { %v6155_v19 = vadd.f32 %v2466_v37, %v2378_v63  ;;  %v6157_v55 = vadd.f32 %v2291_v4, %v2203_v38  ;;  %2748 = vmatmul.bf16.gmra.mxu0 %v6861_v45 }
 0x387   :  { %2837 = vmatmul.bf16.gmra.mxu1 %v6862_v35 }
 0x388   :  { %6859 = vst [vmem:[#allocation68_spill] sm:$0xff] %v6155_v19  ;;  %2926 = vmatmul.bf16.gmra.mxu2 %v6861_v45 }
 0x389   :  { %6860 = vst [vmem:[#allocation170_spill] sm:$0xff] %v6157_v55  ;;  %3015 = vmatmul.bf16.gmra.mxu3 %v6862_v35 }
 0x38b   :  { %v2380_v58 = vpop.f32.mrf.mxu2  ;;  %v2204_v21 = vpop.f32.mrf.mxu0 }
 0x38c   :  { %v2381_v30 = vadd.f32 %v2380_v58, %v5857_v44  ;;  %v2469_v43 = vpop.f32.mrf.mxu3  ;;  %v2205_v20 = vadd.f32 %v2204_v21, %v5835_v14  ;;  %v2293_v53 = vpop.f32.mrf.mxu1 }
 0x38e   :  { %v6165_v37 = vadd.f32 %v2469_v43, %v2381_v30  ;;  %v6167_v63 = vadd.f32 %v2293_v53, %v2205_v20 }
 0x393   :  { %v2382_v38 = vpop.f32.mrf.mxu2  ;;  %v2207_v19 = vpop.f32.mrf.mxu0 }
 0x394   :  { %v2383_v4 = vadd.f32 %v2382_v38, %v5857_v44  ;;  %v2471_v55 = vpop.f32.mrf.mxu3  ;;  %v2208_v45 = vadd.f32 %v2207_v19, %v5835_v14  ;;  %v2296_v35 = vpop.f32.mrf.mxu1 }
 0x396   :  { %v6171_v16 = vadd.f32 %v2471_v55, %v2383_v4  ;;  %v6173_v58 = vadd.f32 %v2296_v35, %v2208_v45  ;;  %2753 = vmatmul.bf16.gmra.mxu0 %v5531_v48 }
 0x397   :  { %2842 = vmatmul.bf16.gmra.mxu1 %v5545_v8 }
 0x398   :  { %6863 = vst [vmem:[#allocation71_spill] sm:$0xff] %v6171_v16  ;;  %2931 = vmatmul.bf16.gmra.mxu2 %v5531_v48 }
 0x399   :  { %6864 = vst [vmem:[#allocation74_spill] sm:$0xff] %v6173_v58  ;;  %3020 = vmatmul.bf16.gmra.mxu3 %v5545_v8 }
 0x39b   :  { %v2385_v30 = vpop.f32.mrf.mxu2  ;;  %v2209_v20 = vpop.f32.mrf.mxu0 }
 0x39c   :  { %v2386_v43 = vadd.f32 %v2385_v30, %v5857_v44  ;;  %v2474_v21 = vpop.f32.mrf.mxu3  ;;  %v2210_v19 = vadd.f32 %v2209_v20, %v5835_v14  ;;  %v2298_v53 = vpop.f32.mrf.mxu1 }
 0x39e   :  { %v6181_v55 = vadd.f32 %v2474_v21, %v2386_v43  ;;  %v6183_v38 = vadd.f32 %v2298_v53, %v2210_v19 }
 0x3a0   :  { %6865 = vst [vmem:[#allocation171_spill] sm:$0xff] %v6181_v55 }
 0x3a1   :  { %6866 = vst [vmem:[#allocation172_spill] sm:$0xff] %v6183_v38 }
 0x3a3   :  { %v2387_v4 = vpop.f32.mrf.mxu2  ;;  %v2212_v58 = vpop.f32.mrf.mxu0 }
 0x3a4   :  { %v2388_v45 = vadd.f32 %v2387_v4, %v5857_v44  ;;  %v2476_v35 = vpop.f32.mrf.mxu3  ;;  %v2213_v48 = vadd.f32 %v2212_v58, %v5835_v14  ;;  %v2301_v8 = vpop.f32.mrf.mxu1 }
 0x3a6   :  { %v6187_v16 = vadd.f32 %v2476_v35, %v2388_v45  ;;  %v6189_v30 = vadd.f32 %v2301_v8, %v2213_v48  ;;  %2758 = vmatmul.bf16.gmra.mxu0 %v5567_v60  ;;  %v2549_v45 = vld [vmem:[#allocation8 + $0x5] ss:$2 sm:$0x3] }
 0x3a7   :  { %2847 = vmatmul.bf16.gmra.mxu1 %v5581_v2  ;;  %v6201_v48 = vperm.slane %v2549_v45, 0 }
 0x3a8   :  { %6867 = vst [vmem:[#allocation173_spill] sm:$0xff] %v6187_v16  ;;  %2936 = vmatmul.bf16.gmra.mxu2 %v5567_v60 }
 0x3a9   :  { %6868 = vst [vmem:[#allocation174_spill] sm:$0xff] %v6189_v30  ;;  %3025 = vmatmul.bf16.gmra.mxu3 %v5581_v2 }
 0x3ab   :  { %v2390_v43 = vpop.f32.mrf.mxu2  ;;  %v2214_v19 = vpop.f32.mrf.mxu0 }
 0x3ac   :  { %v2391_v21 = vadd.f32 %v2390_v43, %v5857_v44  ;;  %v2479_v20 = vpop.f32.mrf.mxu3  ;;  %v2215_v58 = vadd.f32 %v2214_v19, %v5835_v14  ;;  %v2303_v53 = vpop.f32.mrf.mxu1  ;;  %v6211_v14 = vperm.slane %v2549_v45, 1  ;;  %v6869_v45 = vld [vmem:[#allocation39_spill] sm:$0xff] }
 0x3ae   :  { %v6197_v4 = vadd.f32 %v2479_v20, %v2391_v21  ;;  %v6199_v35 = vadd.f32 %v2303_v53, %v2215_v58  ;;  %v4641_v58 = vpop.eup %4640 }
 0x3b3   :  { %v2392_v8 = vpop.f32.mrf.mxu2  ;;  %v2724_v2 = vpop.f32.mrf.mxu0 }
 0x3b4   :  { %v2393_v60 = vadd.f32 %v2392_v8, %v5857_v44  ;;  %v2481_v30 = vpop.f32.mrf.mxu3  ;;  %v2725_v16 = vadd.f32 %v2724_v2, %v6201_v48  ;;  %v2813_v43 = vpop.f32.mrf.mxu1 }
 0x3b6   :  { %v6205_v38 = vadd.f32 %v2481_v30, %v2393_v60  ;;  %v2814_v55 = vadd.f32 %v2813_v43, %v2725_v16  ;;  %2763 = vmatmul.bf16.gmra.mxu0 %v5603_v23 }
 0x3b7   :  { %2852 = vmatmul.bf16.gmra.mxu1 %v5617_v49 }
 0x3b8   :  { %2941 = vmatmul.bf16.gmra.mxu2 %v5603_v23  ;;  %4642 = vtanh.f32 %v2814_v55  ;;  %v1703_v55 = vmul.f32 %v5551_v24, %v6869_v45 }
 0x3b9   :  { %3030 = vmatmul.bf16.gmra.mxu3 %v5617_v49  ;;  %4644 = vtanh.f32 %v5872_v40 }
 0x3ba   :  { %4646 = vtanh.f32 %v5875_v36 }
 0x3bb   :  { %v2902_v44 = vpop.f32.mrf.mxu2  ;;  %v2726_v30 = vpop.f32.mrf.mxu0 }
 0x3bc   :  { %v2903_v21 = vadd.f32 %v2902_v44, %v6211_v14  ;;  %v2991_v20 = vpop.f32.mrf.mxu3  ;;  %v2727_v16 = vadd.f32 %v2726_v30, %v6201_v48  ;;  %v2815_v19 = vpop.f32.mrf.mxu1 }
 0x3be   :  { %v2992_v46 = vadd.f32 %v2991_v20, %v2903_v21  ;;  %v4643_v53 = vpop.eup %4642  ;;  %v2816_v23 = vadd.f32 %v2815_v19, %v2727_v16  ;;  %v6870_v19 = vld [vmem:[#allocation42_spill] sm:$0xff] }
 0x3bf   :  { %v3135_v49 = vmul.f32 %v4643_v53, %v4641_v58  ;;  %v4645_v2 = vpop.eup %4644  ;;  %v1704_v58 = vmul.f32 %v5554_v50, %v6870_v19 }
 0x3c0   :  { %4648 = vtanh.f32 %v2992_v46  ;;  %v4647_v40 = vpop.eup %4646 }
 0x3c1   :  { %4650 = vtanh.f32 %v2816_v23  ;;  %v3199_v8 = vadd.f32 %v3135_v49, %v1703_v55  ;;  %v6871_v23 = vld [vmem:[#allocation40_spill] sm:$0xff] }
 0x3c2   :  { %v1705_v45 = vmul.f32 %v5547_v25, %v6871_v23 }
 0x3c3   :  { %v2904_v60 = vpop.f32.mrf.mxu2  ;;  %4652 = vtanh.f32 %v3199_v8  ;;  %v2729_v30 = vpop.f32.mrf.mxu0 }
 0x3c4   :  { %v2905_v43 = vadd.f32 %v2904_v60, %v6211_v14  ;;  %v2993_v44 = vpop.f32.mrf.mxu3  ;;  %v2730_v21 = vadd.f32 %v2729_v30, %v6201_v48  ;;  %v2818_v20 = vpop.f32.mrf.mxu1  ;;  %4654 = vtanh.f32 %v5893_v61 }
 0x3c5   :  { %4656 = vtanh.f32 %v5897_v32 }
 0x3c6   :  { %v4649_v36 = vpop.eup %4648  ;;  %v2994_v16 = vadd.f32 %v2993_v44, %v2905_v43  ;;  %v2819_v53 = vadd.f32 %v2818_v20, %v2730_v21  ;;  %2768 = vmatmul.bf16.gmra.mxu0 %v5639_v62  ;;  %v6872_v21 = vld [vmem:[#allocation43_spill] sm:$0xff] }
 0x3c7   :  { %v4651_v24 = vpop.eup %4650  ;;  %v3136_v46 = vmul.f32 %v4649_v36, %v4645_v2  ;;  %2857 = vmatmul.bf16.gmra.mxu1 %v5653_v3  ;;  %v1706_v20 = vmul.f32 %v5549_v57, %v6872_v21 }
 0x3c8   :  { %v3137_v55 = vmul.f32 %v4651_v24, %v4647_v40  ;;  %4658 = vtanh.f32 %v2994_v16  ;;  %2946 = vmatmul.bf16.gmra.mxu2 %v5639_v62  ;;  %v6873_v24 = vld [vmem:[#allocation45_spill] sm:$0xff] }
 0x3c9   :  { %v3200_v61 = vadd.f32 %v3136_v46, %v1704_v58  ;;  %4660 = vtanh.f32 %v2819_v53  ;;  %3035 = vmatmul.bf16.gmra.mxu3 %v5653_v3  ;;  %v4653_v50 = vpop.eup %4652  ;;  %v1707_v19 = vmul.f32 %v5587_v1, %v6873_v24 }
 0x3ca   :  { %v3201_v49 = vadd.f32 %v3137_v55, %v1705_v45  ;;  %3327 = vst [vmem:[#allocation10] sm:$0xff] %v4653_v50  ;;  %v4655_v8 = vpop.eup %4654 }
 0x3cb   :  { %4662 = vtanh.f32 %v3200_v61  ;;  %v2907_v32 = vpop.f32.mrf.mxu2  ;;  %v2731_v2 = vpop.f32.mrf.mxu0 }
 0x3cc   :  { %4664 = vtanh.f32 %v3201_v49  ;;  %v2908_v60 = vadd.f32 %v2907_v32, %v6211_v14  ;;  %v2996_v25 = vpop.f32.mrf.mxu3  ;;  %v4657_v43 = vpop.eup %4656  ;;  %v2732_v44 = vadd.f32 %v2731_v2, %v6201_v48 }
 0x3cd   :  { %v2820_v30 = vpop.f32.mrf.mxu1  ;;  %4666 = vtanh.f32 %v5904_v31 }
 0x3ce   :  { %v4659_v62 = vpop.eup %4658  ;;  %v2997_v40 = vadd.f32 %v2996_v25, %v2908_v60  ;;  %4668 = vtanh.f32 %v5907_v26  ;;  %v2821_v16 = vadd.f32 %v2820_v30, %v2732_v44  ;;  %v6874_v25 = vld [vmem:[#allocation48_spill] sm:$0xff]  ;;  %v6875_v30 = vld [vmem:[#allocation46_spill] sm:$0xff] }
 0x3cf   :  { %v4661_v3 = vpop.eup %4660  ;;  %v3138_v36 = vmul.f32 %v4659_v62, %v4655_v8  ;;  %v1708_v2 = vmul.f32 %v5590_v41, %v6874_v25  ;;  %v1709_v62 = vmul.f32 %v5583_v22, %v6875_v30  ;;  %v6878_v30 = vld [vmem:[#allocation54_spill] sm:$0xff] }
 0x3d0   :  { %v3139_v58 = vmul.f32 %v4661_v3, %v4657_v43  ;;  %4670 = vtanh.f32 %v2997_v40 }
 0x3d1   :  { %v4663_v46 = vpop.eup %4662  ;;  %v3202_v53 = vadd.f32 %v3138_v36, %v1706_v20  ;;  %4672 = vtanh.f32 %v2821_v16 }
 0x3d2   :  { %v4665_v23 = vpop.eup %4664  ;;  %3328 = vst [vmem:[#allocation10 + $0x8] sm:$0xff] %v4663_v46  ;;  %v3203_v31 = vadd.f32 %v3139_v58, %v1707_v19 }
 0x3d3   :  { %3329 = vst [vmem:[#allocation10 + $0x10] sm:$0xff] %v4665_v23  ;;  %4674 = vtanh.f32 %v3202_v53  ;;  %v2909_v45 = vpop.f32.mrf.mxu2  ;;  %v4667_v55 = vpop.eup %4666  ;;  %v6876_v53 = vld [vmem:[#allocation49_spill] sm:$0xff] }
 0x3d4   :  { %4676 = vtanh.f32 %v3203_v31  ;;  %v2910_v57 = vadd.f32 %v2909_v45, %v6211_v14  ;;  %v2998_v26 = vpop.f32.mrf.mxu3  ;;  %v2734_v61 = vpop.f32.mrf.mxu0  ;;  %v1710_v23 = vmul.f32 %v5585_v42, %v6876_v53 }
 0x3d5   :  { %v4669_v50 = vpop.eup %4668  ;;  %v2735_v1 = vadd.f32 %v2734_v61, %v6201_v48  ;;  %v2823_v49 = vpop.f32.mrf.mxu1  ;;  %4678 = vtanh.f32 %v5921_v29 }
 0x3d6   :  { %v4671_v32 = vpop.eup %4670  ;;  %v2999_v8 = vadd.f32 %v2998_v26, %v2910_v57  ;;  %4680 = vtanh.f32 %v5925_v5  ;;  %2773 = vmatmul.bf16.gmra.mxu0 %v5675_v51 }
 0x3d7   :  { %v4673_v60 = vpop.eup %4672  ;;  %v3140_v43 = vmul.f32 %v4671_v32, %v4667_v55  ;;  %v2824_v44 = vadd.f32 %v2823_v49, %v2735_v1  ;;  %2862 = vmatmul.bf16.gmra.mxu1 %v5689_v54  ;;  %v6877_v55 = vld [vmem:[#allocation51_spill] sm:$0xff] }
 0x3d8   :  { %v3141_v40 = vmul.f32 %v4673_v60, %v4669_v50  ;;  %4682 = vtanh.f32 %v2999_v8  ;;  %2951 = vmatmul.bf16.gmra.mxu2 %v5675_v51  ;;  %v1711_v57 = vmul.f32 %v5623_v9, %v6877_v55 }
 0x3d9   :  { %v4675_v29 = vpop.eup %4674  ;;  %v3204_v3 = vadd.f32 %v3140_v43, %v1708_v2  ;;  %4684 = vtanh.f32 %v2824_v44  ;;  %3040 = vmatmul.bf16.gmra.mxu3 %v5689_v54 }
 0x3da   :  { %v4677_v41 = vpop.eup %4676  ;;  %3330 = vst [vmem:[#allocation10 + $0x18] sm:$0xff] %v4675_v29  ;;  %v3205_v5 = vadd.f32 %v3141_v40, %v1709_v62  ;;  %v1712_v62 = vmul.f32 %v5626_v47, %v6878_v30  ;;  %v6884_v30 = vld [vmem:[#allocation58_spill] sm:$0xff] }
 0x3db   :  { %3331 = vst [vmem:[#allocation10 + $0x20] sm:$0xff] %v4677_v41  ;;  %4686 = vtanh.f32 %v3204_v3  ;;  %v2912_v21 = vpop.f32.mrf.mxu2  ;;  %v4679_v20 = vpop.eup %4678  ;;  %v6879_v3 = vld [vmem:[#allocation52_spill] sm:$0xff] }
 0x3dc   :  { %4688 = vtanh.f32 %v3205_v5  ;;  %v2913_v22 = vadd.f32 %v2912_v21, %v6211_v14  ;;  %v3001_v36 = vpop.f32.mrf.mxu3  ;;  %v2736_v16 = vpop.f32.mrf.mxu0  ;;  %v1713_v41 = vmul.f32 %v5619_v7, %v6879_v3 }
 0x3dd   :  { %v4681_v24 = vpop.eup %4680  ;;  %v2737_v51 = vadd.f32 %v2736_v16, %v6201_v48  ;;  %v2825_v19 = vpop.f32.mrf.mxu1  ;;  %4690 = vtanh.f32 %v5932_v13 }
 0x3de   :  { %v4683_v58 = vpop.eup %4682  ;;  %v3002_v54 = vadd.f32 %v3001_v36, %v2913_v22  ;;  %4692 = vtanh.f32 %v5935_v39 }
 0x3df   :  { %v4685_v46 = vpop.eup %4684  ;;  %v3142_v31 = vmul.f32 %v4683_v58, %v4679_v20  ;;  %v2826_v45 = vadd.f32 %v2825_v19, %v2737_v51 }
 0x3e0   :  { %v3143_v26 = vmul.f32 %v4685_v46, %v4681_v24  ;;  %4694 = vtanh.f32 %v3002_v54  ;;  %v6880_v54 = vld [vmem:[#allocation55_spill] sm:$0xff] }
 0x3e1   :  { %v4687_v61 = vpop.eup %4686  ;;  %v3206_v50 = vadd.f32 %v3142_v31, %v1710_v23  ;;  %4696 = vtanh.f32 %v2826_v45  ;;  %v6881_v46 = vld [vmem:[#allocation87_spill] sm:$0xff]  ;;  %v6882_v45 = vld [vmem:[#allocation57_spill] sm:$0xff] }
 0x3e2   :  { %v4689_v1 = vpop.eup %4688  ;;  %3332 = vst [vmem:[#allocation10 + $0x28] sm:$0xff] %v4687_v61  ;;  %v3207_v13 = vadd.f32 %v3143_v26, %v1711_v57  ;;  %v1714_v53 = vmul.f32 %v6881_v46, %v6880_v54  ;;  %v1715_v55 = vmul.f32 %v5659_v0, %v6882_v45  ;;  %v6891_v54 = vld [vmem:[#allocation100_spill] sm:$0xff] }
 0x3e3   :  { %3333 = vst [vmem:[#allocation10 + $0x30] sm:$0xff] %v4689_v1  ;;  %4698 = vtanh.f32 %v3206_v50  ;;  %v2914_v49 = vpop.f32.mrf.mxu2  ;;  %v4691_v32 = vpop.eup %4690 }
 0x3e4   :  { %4700 = vtanh.f32 %v3207_v13  ;;  %v2915_v42 = vadd.f32 %v2914_v49, %v6211_v14  ;;  %v3003_v39 = vpop.f32.mrf.mxu3  ;;  %v2739_v8 = vpop.f32.mrf.mxu0 }
 0x3e5   :  { %v4693_v60 = vpop.eup %4692  ;;  %v2740_v9 = vadd.f32 %v2739_v8, %v6201_v48  ;;  %v2828_v25 = vpop.f32.mrf.mxu1  ;;  %4702 = vtanh.f32 %v5949_v52 }
 0x3e6   :  { %v4695_v2 = vpop.eup %4694  ;;  %v3004_v43 = vadd.f32 %v3003_v39, %v2915_v42  ;;  %4704 = vtanh.f32 %v5953_v10  ;;  %2778 = vmatmul.bf16.gmra.mxu0 %v5711_v17 }
 0x3e7   :  { %v4697_v44 = vpop.eup %4696  ;;  %v3144_v40 = vmul.f32 %v4695_v2, %v4691_v32  ;;  %v2829_v29 = vadd.f32 %v2828_v25, %v2740_v9  ;;  %2867 = vmatmul.bf16.gmra.mxu1 %v5725_v12  ;;  %v6883_v25 = vld [vmem:[#allocation60_spill] sm:$0xff] }
 0x3e8   :  { %v3145_v5 = vmul.f32 %v4697_v44, %v4693_v60  ;;  %4706 = vtanh.f32 %v3004_v43  ;;  %2956 = vmatmul.bf16.gmra.mxu2 %v5711_v17  ;;  %v1716_v2 = vmul.f32 %v5662_v18, %v6883_v25 }
 0x3e9   :  { %v4699_v52 = vpop.eup %4698  ;;  %v3208_v21 = vadd.f32 %v3144_v40, %v1712_v62  ;;  %4708 = vtanh.f32 %v2829_v29  ;;  %3045 = vmatmul.bf16.gmra.mxu3 %v5725_v12  ;;  %v6885_v62 = vld [vmem:[#allocation92_spill] sm:$0xff] }
 0x3ea   :  { %v4701_v47 = vpop.eup %4700  ;;  %3334 = vst [vmem:[#allocation10 + $0x38] sm:$0xff] %v4699_v52  ;;  %v3209_v10 = vadd.f32 %v3145_v5, %v1713_v41  ;;  %v1717_v40 = vmul.f32 %v6885_v62, %v6884_v30  ;;  %v6898_v30 = vld [vmem:[#allocation98_spill] sm:$0xff] }
 0x3eb   :  { %3335 = vst [vmem:[#allocation10 + $0x40] sm:$0xff] %v4701_v47  ;;  %4710 = vtanh.f32 %v3208_v21  ;;  %v2917_v20 = vpop.f32.mrf.mxu2  ;;  %v4703_v22 = vpop.eup %4702 }
 0x3ec   :  { %4712 = vtanh.f32 %v3209_v10  ;;  %v2918_v7 = vadd.f32 %v2917_v20, %v6211_v14  ;;  %v3006_v36 = vpop.f32.mrf.mxu3  ;;  %v2741_v16 = vpop.f32.mrf.mxu0 }
 0x3ed   :  { %v4705_v24 = vpop.eup %4704  ;;  %v2742_v17 = vadd.f32 %v2741_v16, %v6201_v48  ;;  %v2830_v51 = vpop.f32.mrf.mxu1  ;;  %4714 = vtanh.f32 %v5960_v34  ;;  %v6887_v16 = vld [vmem:[#allocation61_spill] sm:$0xff] }
 0x3ee   :  { %v4707_v19 = vpop.eup %4706  ;;  %v3007_v12 = vadd.f32 %v3006_v36, %v2918_v7  ;;  %4716 = vtanh.f32 %v5963_v56  ;;  %v6886_v7 = vld [vmem:[#allocation29_spill] sm:$0xff] }
 0x3ef   :  { %v4709_v58 = vpop.eup %4708  ;;  %v3146_v23 = vmul.f32 %v4707_v19, %v4703_v22  ;;  %v2831_v31 = vadd.f32 %v2830_v51, %v2742_v17  ;;  %v6889_v51 = vld [vmem:[#allocation30_spill] sm:$0xff] }
 0x3f0   :  { %v3147_v57 = vmul.f32 %v4709_v58, %v4705_v24  ;;  %4718 = vtanh.f32 %v3007_v12  ;;  %v6888_v24 = vld [vmem:[#allocation93_spill] sm:$0xff]  ;;  %v6890_v58 = vld [vmem:[#allocation63_spill] sm:$0xff] }
 0x3f1   :  { %v4711_v26 = vpop.eup %4710  ;;  %v3210_v61 = vadd.f32 %v3146_v23, %v1714_v53  ;;  %4720 = vtanh.f32 %v2831_v31  ;;  %v1718_v17 = vmul.f32 %v6888_v24, %v6887_v16  ;;  %v1719_v46 = vmul.f32 %v6891_v54, %v6890_v58  ;;  %v6901_v16 = vld [vmem:[#allocation67_spill] sm:$0xff]  ;;  %v6904_v58 = vld [vmem:[#allocation69_spill] sm:$0xff]  ;;  %v6905_v54 = vld [vmem:[#allocation108_spill] sm:$0xff] }
 0x3f2   :  { %v4713_v50 = vpop.eup %4712  ;;  %3336 = vst [vmem:[#allocation10 + $0x48] sm:$0xff] %v4711_v26  ;;  %v3211_v34 = vadd.f32 %v3147_v57, %v1715_v55  ;;  %v6902_v24 = vld [vmem:[#allocation99_spill] sm:$0xff] }
 0x3f3   :  { %3337 = vst [vmem:[#allocation10 + $0x50] sm:$0xff] %v4713_v50  ;;  %4722 = vtanh.f32 %v3210_v61  ;;  %v2919_v1 = vpop.f32.mrf.mxu2  ;;  %v4715_v13 = vpop.eup %4714 }
 0x3f4   :  { %4724 = vtanh.f32 %v3211_v34  ;;  %v2920_v56 = vadd.f32 %v2919_v1, %v6211_v14  ;;  %v3008_v49 = vpop.f32.mrf.mxu3  ;;  %v2744_v32 = vpop.f32.mrf.mxu0 }
 0x3f5   :  { %v4717_v42 = vpop.eup %4716  ;;  %v2745_v0 = vadd.f32 %v2744_v32, %v6201_v48  ;;  %v2833_v39 = vpop.f32.mrf.mxu1  ;;  %4726 = vtanh.f32 %v5977_v27  ;;  %v6892_v32 = vld [vmem:[#allocation150_spill] sm:$0xff] }
 0x3f6   :  { %v4719_v8 = vpop.eup %4718  ;;  %v3009_v60 = vadd.f32 %v3008_v49, %v2920_v56  ;;  %4728 = vtanh.f32 %v5981_v28  ;;  %2783 = vmatmul.bf16.gmra.mxu0 %v5747_v33 }
 0x3f7   :  { %v4721_v9 = vpop.eup %4720  ;;  %v3148_v43 = vmul.f32 %v4719_v8, %v4715_v13  ;;  %v2834_v44 = vadd.f32 %v2833_v39, %v2745_v0  ;;  %2872 = vmatmul.bf16.gmra.mxu1 %v5761_v15  ;;  %v6893_v39 = vld [vmem:[#allocation66_spill] sm:$0xff]  ;;  %v6894_v8 = vld [vmem:[#allocation101_spill] sm:$0xff] }
 0x3f8   :  { %v3149_v29 = vmul.f32 %v4721_v9, %v4717_v42  ;;  %4730 = vtanh.f32 %v3009_v60  ;;  %2961 = vmatmul.bf16.gmra.mxu2 %v5747_v33  ;;  %v1720_v60 = vmul.f32 %v6894_v8, %v6893_v39  ;;  %v6895_v9 = vld [vmem:[#allocation151_spill] sm:$0xff]  ;;  %v6907_v39 = vld [vmem:[#allocation72_spill] sm:$0xff]  ;;  %v6908_v8 = vld [vmem:[#allocation109_spill] sm:$0xff] }
 0x3f9   :  { %v4723_v27 = vpop.eup %4722  ;;  %v3212_v3 = vadd.f32 %v3148_v43, %v1716_v2  ;;  %4732 = vtanh.f32 %v2834_v44  ;;  %3050 = vmatmul.bf16.gmra.mxu3 %v5761_v15  ;;  %v6896_v43 = vld [vmem:[#allocation120_spill] sm:$0xff] }
 0x3fa   :  { %v4725_v18 = vpop.eup %4724  ;;  %3338 = vst [vmem:[#allocation10 + $0x58] sm:$0xff] %v4723_v27  ;;  %v3213_v28 = vadd.f32 %v3149_v29, %v1717_v40  ;;  %v6897_v44 = vld [vmem:[#allocation64_spill] sm:$0xff]  ;;  %v6899_v29 = vld [vmem:[#allocation123_spill] sm:$0xff] }
 0x3fb   :  { %3339 = vst [vmem:[#allocation10 + $0x60] sm:$0xff] %v4725_v18  ;;  %4734 = vtanh.f32 %v3212_v3  ;;  %v2922_v41 = vpop.f32.mrf.mxu2  ;;  %v4727_v5 = vpop.eup %4726  ;;  %v1721_v62 = vmul.f32 %v6898_v30, %v6897_v44  ;;  %v6911_v44 = vld [vmem:[#allocation70_spill] sm:$0xff] }
 0x3fc   :  { %4736 = vtanh.f32 %v3213_v28  ;;  %v2923_v52 = vadd.f32 %v2922_v41, %v6211_v14  ;;  %v3011_v21 = vpop.f32.mrf.mxu3  ;;  %v2746_v47 = vpop.f32.mrf.mxu0  ;;  %v6912_v30 = vld [vmem:[#allocation106_spill] sm:$0xff] }
 0x3fd   :  { %v4729_v10 = vpop.eup %4728  ;;  %v2747_v33 = vadd.f32 %v2746_v47, %v6201_v48  ;;  %v2835_v20 = vpop.f32.mrf.mxu1  ;;  %4738 = vtanh.f32 %v6886_v7  ;;  %v6900_v7 = vld [vmem:[#allocation33_spill] sm:$0xff] }
 0x3fe   :  { %v4731_v22 = vpop.eup %4730  ;;  %v3012_v15 = vadd.f32 %v3011_v21, %v2923_v52  ;;  %4740 = vtanh.f32 %v6889_v51  ;;  %v6903_v51 = vld [vmem:[#allocation34_spill] sm:$0xff] }
 0x3ff   :  { %v4733_v36 = vpop.eup %4732  ;;  %v3150_v19 = vmul.f32 %v4731_v22, %v4727_v5  ;;  %v2836_v12 = vadd.f32 %v2835_v20, %v2747_v33 }
 0x400   :  { %v3151_v53 = vmul.f32 %v4733_v36, %v4729_v10  ;;  %4742 = vtanh.f32 %v3012_v15 }
 0x401   :  { %v4735_v23 = vpop.eup %4734  ;;  %v3214_v31 = vadd.f32 %v3150_v19, %v1718_v17  ;;  %4744 = vtanh.f32 %v2836_v12  ;;  %v1722_v17 = vmul.f32 %v6902_v24, %v6901_v16  ;;  %v6915_v16 = vld [vmem:[#allocation73_spill] sm:$0xff]  ;;  %v6916_v24 = vld [vmem:[#allocation107_spill] sm:$0xff] }
 0x402   :  { %v4737_v45 = vpop.eup %4736  ;;  %3340 = vst [vmem:[#allocation10 + $0x68] sm:$0xff] %v4735_v23  ;;  %v3215_v55 = vadd.f32 %v3151_v53, %v1719_v46  ;;  %v1723_v46 = vmul.f32 %v6905_v54, %v6904_v58  ;;  %v6918_v58 = vld [vmem:[#allocation75_spill] sm:$0xff]  ;;  %v6919_v54 = vld [vmem:[#allocation116_spill] sm:$0xff] }
 0x403   :  { %3341 = vst [vmem:[#allocation10 + $0x70] sm:$0xff] %v4737_v45  ;;  %4746 = vtanh.f32 %v3214_v31  ;;  %v2924_v57 = vpop.f32.mrf.mxu2  ;;  %v4739_v26 = vpop.eup %4738 }
 0x404   :  { %4748 = vtanh.f32 %v3215_v55  ;;  %v2925_v61 = vadd.f32 %v2924_v57, %v6211_v14  ;;  %v3013_v50 = vpop.f32.mrf.mxu3  ;;  %v2749_v34 = vpop.f32.mrf.mxu0 }
 0x405   :  { %v4741_v1 = vpop.eup %4740  ;;  %v2750_v13 = vadd.f32 %v2749_v34, %v6201_v48  ;;  %v2838_v56 = vpop.f32.mrf.mxu1  ;;  %4750 = vtanh.f32 %v6892_v32  ;;  %v6906_v32 = vld [vmem:[#allocation154_spill] sm:$0xff] }
 0x406   :  { %v4743_v49 = vpop.eup %4742  ;;  %v3014_v42 = vadd.f32 %v3013_v50, %v2925_v61  ;;  %4752 = vtanh.f32 %v6895_v9  ;;  %2788 = vmatmul.bf16.gmra.mxu0 %v6896_v43  ;;  %v6909_v9 = vld [vmem:[#allocation155_spill] sm:$0xff] }
 0x407   :  { %v4745_v0 = vpop.eup %4744  ;;  %v3152_v25 = vmul.f32 %v4743_v49, %v4739_v26  ;;  %v2839_v2 = vadd.f32 %v2838_v56, %v2750_v13  ;;  %2877 = vmatmul.bf16.gmra.mxu1 %v6899_v29 }
 0x408   :  { %v3153_v40 = vmul.f32 %v4745_v0, %v4741_v1  ;;  %4754 = vtanh.f32 %v3014_v42  ;;  %2966 = vmatmul.bf16.gmra.mxu2 %v6896_v43  ;;  %v6910_v43 = vld [vmem:[#allocation130_spill] sm:$0xff] }
 0x409   :  { %v4747_v27 = vpop.eup %4746  ;;  %v3216_v3 = vadd.f32 %v3152_v25, %v1720_v60  ;;  %4756 = vtanh.f32 %v2839_v2  ;;  %3055 = vmatmul.bf16.gmra.mxu3 %v6899_v29  ;;  %v1724_v60 = vmul.f32 %v6908_v8, %v6907_v39  ;;  %v6913_v29 = vld [vmem:[#allocation133_spill] sm:$0xff] }
 0x40a   :  { %v4749_v18 = vpop.eup %4748  ;;  %3342 = vst [vmem:[#allocation10 + $0x78] sm:$0xff] %v4747_v27  ;;  %v3217_v28 = vadd.f32 %v3153_v40, %v1721_v62  ;;  %v1725_v62 = vmul.f32 %v6912_v30, %v6911_v44  ;;  %v6921_v39 = vld [vmem:[#allocation117_spill] sm:$0xff] }
 0x40b   :  { %3343 = vst [vmem:[#allocation10 + $0x80] sm:$0xff] %v4749_v18  ;;  %4758 = vtanh.f32 %v3216_v3  ;;  %v2927_v41 = vpop.f32.mrf.mxu2  ;;  %v4751_v5 = vpop.eup %4750 }
 0x40c   :  { %4760 = vtanh.f32 %v3217_v28  ;;  %v2928_v52 = vadd.f32 %v2927_v41, %v6211_v14  ;;  %v3016_v21 = vpop.f32.mrf.mxu3  ;;  %v2751_v47 = vpop.f32.mrf.mxu0 }
 0x40d   :  { %v4753_v10 = vpop.eup %4752  ;;  %v2752_v33 = vadd.f32 %v2751_v47, %v6201_v48  ;;  %v2840_v20 = vpop.f32.mrf.mxu1  ;;  %4762 = vtanh.f32 %v6900_v7  ;;  %v6914_v7 = vld [vmem:[#allocation37_spill] sm:$0xff] }
 0x40e   :  { %v4755_v22 = vpop.eup %4754  ;;  %v3017_v15 = vadd.f32 %v3016_v21, %v2928_v52  ;;  %4764 = vtanh.f32 %v6903_v51  ;;  %v6917_v51 = vld [vmem:[#allocation38_spill] sm:$0xff] }
 0x40f   :  { %v4757_v36 = vpop.eup %4756  ;;  %v3154_v19 = vmul.f32 %v4755_v22, %v4751_v5  ;;  %v2841_v12 = vadd.f32 %v2840_v20, %v2752_v33 }
 0x410   :  { %v3155_v53 = vmul.f32 %v4757_v36, %v4753_v10  ;;  %4766 = vtanh.f32 %v3017_v15 }
 0x411   :  { %v4759_v23 = vpop.eup %4758  ;;  %v3218_v31 = vadd.f32 %v3154_v19, %v1722_v17  ;;  %4768 = vtanh.f32 %v2841_v12  ;;  %v1726_v17 = vmul.f32 %v6916_v24, %v6915_v16 }
 0x412   :  { %v4761_v45 = vpop.eup %4760  ;;  %3344 = vst [vmem:[#allocation10 + $0x88] sm:$0xff] %v4759_v23  ;;  %v3219_v55 = vadd.f32 %v3155_v53, %v1723_v46  ;;  %v1727_v46 = vmul.f32 %v6919_v54, %v6918_v58 }
 0x413   :  { %3345 = vst [vmem:[#allocation10 + $0x90] sm:$0xff] %v4761_v45  ;;  %4770 = vtanh.f32 %v3218_v31  ;;  %v2929_v57 = vpop.f32.mrf.mxu2  ;;  %v4763_v26 = vpop.eup %4762 }
 0x414   :  { %4772 = vtanh.f32 %v3219_v55  ;;  %v2930_v61 = vadd.f32 %v2929_v57, %v6211_v14  ;;  %v3018_v50 = vpop.f32.mrf.mxu3  ;;  %v2754_v34 = vpop.f32.mrf.mxu0 }
 0x415   :  { %v4765_v1 = vpop.eup %4764  ;;  %v2755_v13 = vadd.f32 %v2754_v34, %v6201_v48  ;;  %v2843_v56 = vpop.f32.mrf.mxu1  ;;  %4774 = vtanh.f32 %v6906_v32 }
 0x416   :  { %v4767_v49 = vpop.eup %4766  ;;  %v3019_v42 = vadd.f32 %v3018_v50, %v2930_v61  ;;  %4776 = vtanh.f32 %v6909_v9  ;;  %2793 = vmatmul.bf16.gmra.mxu0 %v6910_v43 }
 0x417   :  { %v4769_v0 = vpop.eup %4768  ;;  %v3156_v25 = vmul.f32 %v4767_v49, %v4763_v26  ;;  %v2844_v2 = vadd.f32 %v2843_v56, %v2755_v13  ;;  %2882 = vmatmul.bf16.gmra.mxu1 %v6913_v29 }
 0x418   :  { %v3157_v40 = vmul.f32 %v4769_v0, %v4765_v1  ;;  %4778 = vtanh.f32 %v3019_v42  ;;  %2971 = vmatmul.bf16.gmra.mxu2 %v6910_v43  ;;  %v6920_v0 = vld [vmem:[#allocation77_spill] sm:$0xff]  ;;  %v6924_v43 = vld [vmem:[#allocation114_spill] sm:$0xff] }
 0x419   :  { %v4771_v27 = vpop.eup %4770  ;;  %v3220_v3 = vadd.f32 %v3156_v25, %v1724_v60  ;;  %4780 = vtanh.f32 %v2844_v2  ;;  %3060 = vmatmul.bf16.gmra.mxu3 %v6913_v29  ;;  %v1728_v8 = vmul.f32 %v6921_v39, %v6920_v0  ;;  %v6922_v25 = vld [vmem:[#allocation140_spill] sm:$0xff]  ;;  %v6935_v0 = vld [vmem:[#allocation161_spill] sm:$0xff] }
 0x41a   :  { %v4773_v18 = vpop.eup %4772  ;;  %3346 = vst [vmem:[#allocation10 + $0x98] sm:$0xff] %v4771_v27  ;;  %v3221_v28 = vadd.f32 %v3157_v40, %v1725_v62  ;;  %v6923_v2 = vld [vmem:[#allocation76_spill] sm:$0xff]  ;;  %v6925_v62 = vld [vmem:[#allocation143_spill] sm:$0xff] }
 0x41b   :  { %3347 = vst [vmem:[#allocation10 + $0xa0] sm:$0xff] %v4773_v18  ;;  %4782 = vtanh.f32 %v3220_v3  ;;  %v2932_v41 = vpop.f32.mrf.mxu2  ;;  %v4775_v5 = vpop.eup %4774  ;;  %v1729_v44 = vmul.f32 %v6924_v43, %v6923_v2 }
 0x41c   :  { %4784 = vtanh.f32 %v3221_v28  ;;  %v2933_v52 = vadd.f32 %v2932_v41, %v6211_v14  ;;  %v3021_v21 = vpop.f32.mrf.mxu3  ;;  %v2756_v47 = vpop.f32.mrf.mxu0 }
 0x41d   :  { %v4777_v10 = vpop.eup %4776  ;;  %v2757_v33 = vadd.f32 %v2756_v47, %v6201_v48  ;;  %v2845_v20 = vpop.f32.mrf.mxu1  ;;  %4786 = vtanh.f32 %v6914_v7  ;;  %v6928_v7 = vld [vmem:[#allocation115_spill] sm:$0xff] }
 0x41e   :  { %v4779_v22 = vpop.eup %4778  ;;  %v3022_v15 = vadd.f32 %v3021_v21, %v2933_v52  ;;  %4788 = vtanh.f32 %v6917_v51  ;;  %v6931_v51 = vld [vmem:[#allocation126_spill] sm:$0xff] }
 0x41f   :  { %v4781_v36 = vpop.eup %4780  ;;  %v3158_v19 = vmul.f32 %v4779_v22, %v4775_v5  ;;  %v2846_v12 = vadd.f32 %v2845_v20, %v2757_v33  ;;  %v6927_v22 = vld [vmem:[#allocation78_spill] sm:$0xff] }
 0x420   :  { %v3159_v53 = vmul.f32 %v4781_v36, %v4777_v10  ;;  %4790 = vtanh.f32 %v3022_v15  ;;  %v6926_v10 = vld [vmem:[#allocation158_spill] sm:$0xff]  ;;  %v1730_v15 = vmul.f32 %v6928_v7, %v6927_v22  ;;  %v6929_v36 = vld [vmem:[#allocation159_spill] sm:$0xff] }
 0x421   :  { %v4783_v23 = vpop.eup %4782  ;;  %v3222_v31 = vadd.f32 %v3158_v19, %v1726_v17  ;;  %4792 = vtanh.f32 %v2846_v12  ;;  %v6930_v17 = vld [vmem:[#allocation79_spill] sm:$0xff] }
 0x422   :  { %v4785_v45 = vpop.eup %4784  ;;  %3348 = vst [vmem:[#allocation10 + $0xa8] sm:$0xff] %v4783_v23  ;;  %v3223_v55 = vadd.f32 %v3159_v53, %v1727_v46  ;;  %v1731_v19 = vmul.f32 %v6931_v51, %v6930_v17 }
 0x423   :  { %3349 = vst [vmem:[#allocation10 + $0xb0] sm:$0xff] %v4785_v45  ;;  %4794 = vtanh.f32 %v3222_v31  ;;  %v2934_v57 = vpop.f32.mrf.mxu2  ;;  %v4787_v26 = vpop.eup %4786 }
 0x424   :  { %4796 = vtanh.f32 %v3223_v55  ;;  %v2935_v61 = vadd.f32 %v2934_v57, %v6211_v14  ;;  %v3023_v50 = vpop.f32.mrf.mxu3  ;;  %v2759_v34 = vpop.f32.mrf.mxu0 }
 0x425   :  { %v4789_v1 = vpop.eup %4788  ;;  %v2760_v13 = vadd.f32 %v2759_v34, %v6201_v48  ;;  %v2848_v56 = vpop.f32.mrf.mxu1  ;;  %4798 = vtanh.f32 %v6061_v59 }
 0x426   :  { %v4791_v49 = vpop.eup %4790  ;;  %v3024_v32 = vadd.f32 %v3023_v50, %v2935_v61  ;;  %4800 = vtanh.f32 %v6065_v6  ;;  %2798 = vmatmul.bf16.gmra.mxu0 %v6922_v25 }
 0x427   :  { %v4793_v42 = vpop.eup %4792  ;;  %v3160_v60 = vmul.f32 %v4791_v49, %v4787_v26  ;;  %v2849_v9 = vadd.f32 %v2848_v56, %v2760_v13  ;;  %2887 = vmatmul.bf16.gmra.mxu1 %v6925_v62  ;;  %v6933_v49 = vld [vmem:[#allocation81_spill] sm:$0xff] }
 0x428   :  { %v3161_v30 = vmul.f32 %v4793_v42, %v4789_v1  ;;  %4802 = vtanh.f32 %v3024_v32  ;;  %2976 = vmatmul.bf16.gmra.mxu2 %v6922_v25  ;;  %v6932_v1 = vld [vmem:[#allocation160_spill] sm:$0xff]  ;;  %v6934_v32 = vld [vmem:[#allocation127_spill] sm:$0xff] }
 0x429   :  { %v4795_v59 = vpop.eup %4794  ;;  %v3224_v40 = vadd.f32 %v3160_v60, %v1728_v8  ;;  %4804 = vtanh.f32 %v2849_v9  ;;  %3065 = vmatmul.bf16.gmra.mxu3 %v6925_v62  ;;  %v1732_v42 = vmul.f32 %v6934_v32, %v6933_v49  ;;  %v6936_v60 = vld [vmem:[#allocation80_spill] sm:$0xff] }
 0x42a   :  { %v4797_v29 = vpop.eup %4796  ;;  %3350 = vst [vmem:[#allocation10 + $0xb8] sm:$0xff] %v4795_v59  ;;  %v3225_v6 = vadd.f32 %v3161_v30, %v1729_v44  ;;  %v6937_v9 = vld [vmem:[#allocation124_spill] sm:$0xff] }
 0x42b   :  { %3351 = vst [vmem:[#allocation10 + $0xc0] sm:$0xff] %v4797_v29  ;;  %4806 = vtanh.f32 %v3224_v40  ;;  %v2937_v27 = vpop.f32.mrf.mxu2  ;;  %v4799_v3 = vpop.eup %4798  ;;  %v1733_v25 = vmul.f32 %v6937_v9, %v6936_v60 }
 0x42c   :  { %4808 = vtanh.f32 %v3225_v6  ;;  %v2938_v18 = vadd.f32 %v2937_v27, %v6211_v14  ;;  %v3026_v28 = vpop.f32.mrf.mxu3  ;;  %v2761_v41 = vpop.f32.mrf.mxu0 }
 0x42d   :  { %v4801_v5 = vpop.eup %4800  ;;  %v2762_v52 = vadd.f32 %v2761_v41, %v6201_v48  ;;  %v2850_v21 = vpop.f32.mrf.mxu1  ;;  %4810 = vtanh.f32 %v6926_v10  ;;  %v6940_v10 = vld [vmem:[#allocation125_spill] sm:$0xff] }
 0x42e   :  { %v4803_v47 = vpop.eup %4802  ;;  %v3027_v33 = vadd.f32 %v3026_v28, %v2938_v18  ;;  %4812 = vtanh.f32 %v6929_v36  ;;  %v6943_v36 = vld [vmem:[#allocation136_spill] sm:$0xff] }
 0x42f   :  { %v4805_v20 = vpop.eup %4804  ;;  %v3162_v16 = vmul.f32 %v4803_v47, %v4799_v3  ;;  %v2851_v24 = vadd.f32 %v2850_v21, %v2762_v52  ;;  %v6939_v47 = vld [vmem:[#allocation82_spill] sm:$0xff] }
 0x430   :  { %v3163_v12 = vmul.f32 %v4805_v20, %v4801_v5  ;;  %4814 = vtanh.f32 %v3027_v33  ;;  %v6938_v5 = vld [vmem:[#allocation41_spill] sm:$0xff]  ;;  %v1734_v33 = vmul.f32 %v6940_v10, %v6939_v47  ;;  %v6941_v20 = vld [vmem:[#allocation44_spill] sm:$0xff] }
 0x431   :  { %v4807_v58 = vpop.eup %4806  ;;  %v3226_v54 = vadd.f32 %v3162_v16, %v1730_v15  ;;  %4816 = vtanh.f32 %v2851_v24  ;;  %v6942_v15 = vld [vmem:[#allocation83_spill] sm:$0xff] }
 0x432   :  { %v4809_v46 = vpop.eup %4808  ;;  %3352 = vst [vmem:[#allocation10 + $0xc8] sm:$0xff] %v4807_v58  ;;  %v3227_v53 = vadd.f32 %v3163_v12, %v1731_v19  ;;  %v1735_v16 = vmul.f32 %v6943_v36, %v6942_v15 }
 0x433   :  { %3353 = vst [vmem:[#allocation10 + $0xd0] sm:$0xff] %v4809_v46  ;;  %4818 = vtanh.f32 %v3226_v54  ;;  %v2939_v23 = vpop.f32.mrf.mxu2  ;;  %v4811_v31 = vpop.eup %4810 }
 0x434   :  { %4820 = vtanh.f32 %v3227_v53  ;;  %v2940_v45 = vadd.f32 %v2939_v23, %v6211_v14  ;;  %v3028_v55 = vpop.f32.mrf.mxu3  ;;  %v2764_v57 = vpop.f32.mrf.mxu0 }
 0x435   :  { %v4813_v26 = vpop.eup %4812  ;;  %v2765_v61 = vadd.f32 %v2764_v57, %v6201_v48  ;;  %v2853_v50 = vpop.f32.mrf.mxu1  ;;  %4822 = vtanh.f32 %v6932_v1  ;;  %v6946_v1 = vld [vmem:[#allocation137_spill] sm:$0xff] }
 0x436   :  { %v4815_v34 = vpop.eup %4814  ;;  %v3029_v13 = vadd.f32 %v3028_v55, %v2940_v45  ;;  %4824 = vtanh.f32 %v6935_v0  ;;  %v6949_v0 = vld [vmem:[#allocation134_spill] sm:$0xff] }
 0x437   :  { %v4817_v56 = vpop.eup %4816  ;;  %v3164_v39 = vmul.f32 %v4815_v34, %v4811_v31  ;;  %v2854_v8 = vadd.f32 %v2853_v50, %v2765_v61  ;;  %v6945_v34 = vld [vmem:[#allocation85_spill] sm:$0xff] }
 0x438   :  { %v3165_v2 = vmul.f32 %v4817_v56, %v4813_v26  ;;  %4826 = vtanh.f32 %v3029_v13  ;;  %v6944_v26 = vld [vmem:[#allocation162_spill] sm:$0xff]  ;;  %v1736_v13 = vmul.f32 %v6946_v1, %v6945_v34  ;;  %v6947_v56 = vld [vmem:[#allocation163_spill] sm:$0xff] }
 0x439   :  { %v4819_v43 = vpop.eup %4818  ;;  %v3228_v44 = vadd.f32 %v3164_v39, %v1732_v42  ;;  %4828 = vtanh.f32 %v2854_v8  ;;  %v6948_v42 = vld [vmem:[#allocation84_spill] sm:$0xff] }
 0x43a   :  { %v4821_v30 = vpop.eup %4820  ;;  %3354 = vst [vmem:[#allocation10 + $0xd8] sm:$0xff] %v4819_v43  ;;  %v3229_v62 = vadd.f32 %v3165_v2, %v1733_v25  ;;  %v1737_v39 = vmul.f32 %v6949_v0, %v6948_v42 }
 0x43b   :  { %3355 = vst [vmem:[#allocation10 + $0xe0] sm:$0xff] %v4821_v30  ;;  %4830 = vtanh.f32 %v3228_v44  ;;  %v2942_v59 = vpop.f32.mrf.mxu2  ;;  %v4823_v40 = vpop.eup %4822 }
 0x43c   :  { %4832 = vtanh.f32 %v3229_v62  ;;  %v2943_v29 = vadd.f32 %v2942_v59, %v6211_v14  ;;  %v3031_v6 = vpop.f32.mrf.mxu3  ;;  %v2766_v27 = vpop.f32.mrf.mxu0 }
 0x43d   :  { %v4825_v3 = vpop.eup %4824  ;;  %v2767_v18 = vadd.f32 %v2766_v27, %v6201_v48  ;;  %v2855_v28 = vpop.f32.mrf.mxu1  ;;  %4834 = vtanh.f32 %v6938_v5  ;;  %v6952_v5 = vld [vmem:[#allocation135_spill] sm:$0xff] }
 0x43e   :  { %v4827_v41 = vpop.eup %4826  ;;  %v3032_v52 = vadd.f32 %v3031_v6, %v2943_v29  ;;  %4836 = vtanh.f32 %v6941_v20  ;;  %v6955_v20 = vld [vmem:[#allocation146_spill] sm:$0xff] }
 0x43f   :  { %v4829_v21 = vpop.eup %4828  ;;  %v3166_v22 = vmul.f32 %v4827_v41, %v4823_v40  ;;  %v2856_v7 = vadd.f32 %v2855_v28, %v2767_v18  ;;  %v6951_v41 = vld [vmem:[#allocation86_spill] sm:$0xff] }
 0x440   :  { %v3167_v24 = vmul.f32 %v4829_v21, %v4825_v3  ;;  %4838 = vtanh.f32 %v3032_v52  ;;  %v6950_v3 = vld [vmem:[#allocation47_spill] sm:$0xff]  ;;  %v1738_v52 = vmul.f32 %v6952_v5, %v6951_v41  ;;  %v6953_v21 = vld [vmem:[#allocation50_spill] sm:$0xff] }
 0x441   :  { %v4831_v17 = vpop.eup %4830  ;;  %v3230_v51 = vadd.f32 %v3166_v22, %v1734_v33  ;;  %4840 = vtanh.f32 %v2856_v7  ;;  %v6954_v33 = vld [vmem:[#allocation88_spill] sm:$0xff] }
 0x442   :  { %v4833_v19 = vpop.eup %4832  ;;  %3356 = vst [vmem:[#allocation10 + $0xe8] sm:$0xff] %v4831_v17  ;;  %v3231_v12 = vadd.f32 %v3167_v24, %v1735_v16  ;;  %v1739_v22 = vmul.f32 %v6955_v20, %v6954_v33 }
 0x443   :  { %3357 = vst [vmem:[#allocation10 + $0xf0] sm:$0xff] %v4833_v19  ;;  %4842 = vtanh.f32 %v3230_v51  ;;  %v2944_v58 = vpop.f32.mrf.mxu2  ;;  %v4835_v54 = vpop.eup %4834 }
 0x444   :  { %4844 = vtanh.f32 %v3231_v12  ;;  %v2945_v46 = vadd.f32 %v2944_v58, %v6211_v14  ;;  %v3033_v53 = vpop.f32.mrf.mxu3  ;;  %v2769_v23 = vpop.f32.mrf.mxu0 }
 0x445   :  { %v4837_v31 = vpop.eup %4836  ;;  %v2770_v45 = vadd.f32 %v2769_v23, %v6201_v48  ;;  %v2858_v55 = vpop.f32.mrf.mxu1  ;;  %4846 = vtanh.f32 %v6944_v26  ;;  %v6958_v26 = vld [vmem:[#allocation147_spill] sm:$0xff] }
 0x446   :  { %v4839_v57 = vpop.eup %4838  ;;  %v3034_v61 = vadd.f32 %v3033_v53, %v2945_v46  ;;  %4848 = vtanh.f32 %v6947_v56  ;;  %v6961_v56 = vld [vmem:[#allocation144_spill] sm:$0xff] }
 0x447   :  { %v4841_v50 = vpop.eup %4840  ;;  %v3168_v49 = vmul.f32 %v4839_v57, %v4835_v54  ;;  %v2859_v32 = vadd.f32 %v2858_v55, %v2770_v45  ;;  %v6957_v57 = vld [vmem:[#allocation90_spill] sm:$0xff] }
 0x448   :  { %v3169_v8 = vmul.f32 %v4841_v50, %v4837_v31  ;;  %4850 = vtanh.f32 %v3034_v61  ;;  %v6956_v31 = vld [vmem:[#allocation164_spill] sm:$0xff]  ;;  %v1740_v61 = vmul.f32 %v6958_v26, %v6957_v57  ;;  %v6959_v50 = vld [vmem:[#allocation165_spill] sm:$0xff] }
 0x449   :  { %v4843_v60 = vpop.eup %4842  ;;  %v3232_v9 = vadd.f32 %v3168_v49, %v1736_v13  ;;  %4852 = vtanh.f32 %v2859_v32  ;;  %v6960_v13 = vld [vmem:[#allocation89_spill] sm:$0xff] }
 0x44a   :  { %v4845_v25 = vpop.eup %4844  ;;  %3358 = vst [vmem:[#allocation10 + $0xf8] sm:$0xff] %v4843_v60  ;;  %v3233_v2 = vadd.f32 %v3169_v8, %v1737_v39  ;;  %v1741_v49 = vmul.f32 %v6961_v56, %v6960_v13 }
 0x44b   :  { %3359 = vst [vmem:[#allocation10 + $0x100] sm:$0xff] %v4845_v25  ;;  %4854 = vtanh.f32 %v3232_v9  ;;  %v2947_v43 = vpop.f32.mrf.mxu2  ;;  %v4847_v44 = vpop.eup %4846 }
 0x44c   :  { %4856 = vtanh.f32 %v3233_v2  ;;  %v2948_v30 = vadd.f32 %v2947_v43, %v6211_v14  ;;  %v3036_v62 = vpop.f32.mrf.mxu3  ;;  %v2771_v59 = vpop.f32.mrf.mxu0 }
 0x44d   :  { %v4849_v40 = vpop.eup %4848  ;;  %v2772_v29 = vadd.f32 %v2771_v59, %v6201_v48  ;;  %v2860_v6 = vpop.f32.mrf.mxu1  ;;  %4858 = vtanh.f32 %v6950_v3  ;;  %v6964_v3 = vld [vmem:[#allocation145_spill] sm:$0xff] }
 0x44e   :  { %v4851_v27 = vpop.eup %4850  ;;  %v3037_v18 = vadd.f32 %v3036_v62, %v2948_v30  ;;  %4860 = vtanh.f32 %v6953_v21  ;;  %v6967_v21 = vld [vmem:[#allocation15_spill] sm:$0xff] }
 0x44f   :  { %v4853_v28 = vpop.eup %4852  ;;  %v3170_v47 = vmul.f32 %v4851_v27, %v4847_v44  ;;  %v2861_v10 = vadd.f32 %v2860_v6, %v2772_v29  ;;  %v6963_v27 = vld [vmem:[#allocation91_spill] sm:$0xff] }
 0x450   :  { %v3171_v7 = vmul.f32 %v4853_v28, %v4849_v40  ;;  %4862 = vtanh.f32 %v3037_v18  ;;  %v6962_v40 = vld [vmem:[#allocation53_spill] sm:$0xff]  ;;  %v1742_v18 = vmul.f32 %v6964_v3, %v6963_v27  ;;  %v6965_v28 = vld [vmem:[#allocation56_spill] sm:$0xff] }
 0x451   :  { %v4855_v15 = vpop.eup %4854  ;;  %v3234_v36 = vadd.f32 %v3170_v47, %v1738_v52  ;;  %4864 = vtanh.f32 %v2861_v10  ;;  %v6966_v52 = vld [vmem:[#allocation94_spill] sm:$0xff] }
 0x452   :  { %v4857_v16 = vpop.eup %4856  ;;  %3360 = vst [vmem:[#allocation10 + $0x108] sm:$0xff] %v4855_v15  ;;  %v3235_v24 = vadd.f32 %v3171_v7, %v1739_v22  ;;  %v1743_v47 = vmul.f32 %v6967_v21, %v6966_v52 }
 0x453   :  { %3361 = vst [vmem:[#allocation10 + $0x110] sm:$0xff] %v4857_v16  ;;  %4866 = vtanh.f32 %v3234_v36  ;;  %v2949_v17 = vpop.f32.mrf.mxu2  ;;  %v4859_v51 = vpop.eup %4858 }
 0x454   :  { %4868 = vtanh.f32 %v3235_v24  ;;  %v2950_v19 = vadd.f32 %v2949_v17, %v6211_v14  ;;  %v3038_v12 = vpop.f32.mrf.mxu3  ;;  %v2774_v58 = vpop.f32.mrf.mxu0 }
 0x455   :  { %v4861_v54 = vpop.eup %4860  ;;  %v2775_v46 = vadd.f32 %v2774_v58, %v6201_v48  ;;  %v2863_v53 = vpop.f32.mrf.mxu1  ;;  %4870 = vtanh.f32 %v6956_v31  ;;  %v6970_v31 = vld [vmem:[#allocation16_spill] sm:$0xff] }
 0x456   :  { %v4863_v23 = vpop.eup %4862  ;;  %v3039_v45 = vadd.f32 %v3038_v12, %v2950_v19  ;;  %4872 = vtanh.f32 %v6959_v50  ;;  %v6973_v50 = vld [vmem:[#allocation17_spill] sm:$0xff] }
 0x457   :  { %v4865_v55 = vpop.eup %4864  ;;  %v3172_v34 = vmul.f32 %v4863_v23, %v4859_v51  ;;  %v2864_v1 = vadd.f32 %v2863_v53, %v2775_v46  ;;  %v6969_v23 = vld [vmem:[#allocation96_spill] sm:$0xff] }
 0x458   :  { %v3173_v32 = vmul.f32 %v4865_v55, %v4861_v54  ;;  %4874 = vtanh.f32 %v3039_v45  ;;  %v6968_v54 = vld [vmem:[#allocation166_spill] sm:$0xff]  ;;  %v1744_v45 = vmul.f32 %v6970_v31, %v6969_v23  ;;  %v6971_v55 = vld [vmem:[#allocation167_spill] sm:$0xff] }
 0x459   :  { %v4867_v42 = vpop.eup %4866  ;;  %v3236_v0 = vadd.f32 %v3172_v34, %v1740_v61  ;;  %4876 = vtanh.f32 %v2864_v1  ;;  %v6972_v61 = vld [vmem:[#allocation95_spill] sm:$0xff] }
 0x45a   :  { %v4869_v39 = vpop.eup %4868  ;;  %3362 = vst [vmem:[#allocation10 + $0x118] sm:$0xff] %v4867_v42  ;;  %v3237_v8 = vadd.f32 %v3173_v32, %v1741_v49  ;;  %v1745_v34 = vmul.f32 %v6973_v50, %v6972_v61 }
 0x45b   :  { %3363 = vst [vmem:[#allocation10 + $0x120] sm:$0xff] %v4869_v39  ;;  %4878 = vtanh.f32 %v3236_v0  ;;  %v2952_v60 = vpop.f32.mrf.mxu2  ;;  %v4871_v9 = vpop.eup %4870 }
 0x45c   :  { %4880 = vtanh.f32 %v3237_v8  ;;  %v2953_v25 = vadd.f32 %v2952_v60, %v6211_v14  ;;  %v3041_v2 = vpop.f32.mrf.mxu3  ;;  %v2776_v43 = vpop.f32.mrf.mxu0 }
 0x45d   :  { %v4873_v44 = vpop.eup %4872  ;;  %v2777_v30 = vadd.f32 %v2776_v43, %v6201_v48  ;;  %v2865_v62 = vpop.f32.mrf.mxu1  ;;  %4882 = vtanh.f32 %v6962_v40  ;;  %v6976_v40 = vld [vmem:[#allocation18_spill] sm:$0xff] }
 0x45e   :  { %v4875_v59 = vpop.eup %4874  ;;  %v3042_v29 = vadd.f32 %v3041_v2, %v2953_v25  ;;  %4884 = vtanh.f32 %v6965_v28  ;;  %v6979_v28 = vld [vmem:[#allocation19_spill] sm:$0xff] }
 0x45f   :  { %v4877_v6 = vpop.eup %4876  ;;  %v3174_v41 = vmul.f32 %v4875_v59, %v4871_v9  ;;  %v2866_v5 = vadd.f32 %v2865_v62, %v2777_v30  ;;  %v6975_v59 = vld [vmem:[#allocation97_spill] sm:$0xff] }
 0x460   :  { %v3175_v10 = vmul.f32 %v4877_v6, %v4873_v44  ;;  %4886 = vtanh.f32 %v3042_v29  ;;  %v6974_v44 = vld [vmem:[#allocation59_spill] sm:$0xff]  ;;  %v1746_v29 = vmul.f32 %v6976_v40, %v6975_v59  ;;  %v6977_v6 = vld [vmem:[#allocation62_spill] sm:$0xff] }
 0x461   :  { %v4879_v33 = vpop.eup %4878  ;;  %v3238_v20 = vadd.f32 %v3174_v41, %v1742_v18  ;;  %4888 = vtanh.f32 %v2866_v5  ;;  %v6978_v18 = vld [vmem:[#allocation102_spill] sm:$0xff] }
 0x462   :  { %v4881_v22 = vpop.eup %4880  ;;  %3364 = vst [vmem:[#allocation10 + $0x128] sm:$0xff] %v4879_v33  ;;  %v3239_v7 = vadd.f32 %v3175_v10, %v1743_v47  ;;  %v1747_v41 = vmul.f32 %v6979_v28, %v6978_v18  ;;  %v6989_v40 = vld [vmem:[#allocation110_spill] sm:$0xff] }
 0x463   :  { %3365 = vst [vmem:[#allocation10 + $0x130] sm:$0xff] %v4881_v22  ;;  %4890 = vtanh.f32 %v3238_v20  ;;  %v2954_v15 = vpop.f32.mrf.mxu2  ;;  %v4883_v36 = vpop.eup %4882 }
 0x464   :  { %4892 = vtanh.f32 %v3239_v7  ;;  %v2955_v16 = vadd.f32 %v2954_v15, %v6211_v14  ;;  %v3043_v24 = vpop.f32.mrf.mxu3  ;;  %v2779_v17 = vpop.f32.mrf.mxu0 }
 0x465   :  { %v4885_v51 = vpop.eup %4884  ;;  %v2780_v19 = vadd.f32 %v2779_v17, %v6201_v48  ;;  %v2868_v12 = vpop.f32.mrf.mxu1  ;;  %4894 = vtanh.f32 %v6968_v54  ;;  %v6982_v54 = vld [vmem:[#allocation20_spill] sm:$0xff] }
 0x466   :  { %v4887_v58 = vpop.eup %4886  ;;  %v3044_v46 = vadd.f32 %v3043_v24, %v2955_v16  ;;  %4896 = vtanh.f32 %v6971_v55  ;;  %v6985_v55 = vld [vmem:[#allocation21_spill] sm:$0xff] }
 0x467   :  { %v4889_v53 = vpop.eup %4888  ;;  %v3176_v57 = vmul.f32 %v4887_v58, %v4883_v36  ;;  %v2869_v26 = vadd.f32 %v2868_v12, %v2780_v19  ;;  %v6981_v58 = vld [vmem:[#allocation104_spill] sm:$0xff] }
 0x468   :  { %v3177_v1 = vmul.f32 %v4889_v53, %v4885_v51  ;;  %4898 = vtanh.f32 %v3044_v46  ;;  %v6980_v51 = vld [vmem:[#allocation168_spill] sm:$0xff]  ;;  %v1748_v46 = vmul.f32 %v6982_v54, %v6981_v58  ;;  %v6983_v53 = vld [vmem:[#allocation169_spill] sm:$0xff]  ;;  %v6995_v58 = vld [vmem:[#allocation111_spill] sm:$0xff] }
 0x469   :  { %v4891_v13 = vpop.eup %4890  ;;  %v3240_v56 = vadd.f32 %v3176_v57, %v1744_v45  ;;  %4900 = vtanh.f32 %v2869_v26  ;;  %v6984_v45 = vld [vmem:[#allocation103_spill] sm:$0xff]  ;;  %v6996_v54 = vld [vmem:[#allocation25_spill] sm:$0xff] }
 0x46a   :  { %v4893_v49 = vpop.eup %4892  ;;  %3366 = vst [vmem:[#allocation10 + $0x138] sm:$0xff] %v4891_v13  ;;  %v3241_v32 = vadd.f32 %v3177_v1, %v1745_v34  ;;  %v1749_v57 = vmul.f32 %v6985_v55, %v6984_v45 }
 0x46b   :  { %3367 = vst [vmem:[#allocation10 + $0x140] sm:$0xff] %v4893_v49  ;;  %4902 = vtanh.f32 %v3240_v56  ;;  %v2957_v42 = vpop.f32.mrf.mxu2  ;;  %v4895_v0 = vpop.eup %4894 }
 0x46c   :  { %4904 = vtanh.f32 %v3241_v32  ;;  %v2958_v39 = vadd.f32 %v2957_v42, %v6211_v14  ;;  %v3046_v8 = vpop.f32.mrf.mxu3  ;;  %v2781_v60 = vpop.f32.mrf.mxu0 }
 0x46d   :  { %v4897_v9 = vpop.eup %4896  ;;  %v2782_v25 = vadd.f32 %v2781_v60, %v6201_v48  ;;  %v2870_v2 = vpop.f32.mrf.mxu1  ;;  %4906 = vtanh.f32 %v6974_v44 }
 0x46e   :  { %v4899_v43 = vpop.eup %4898  ;;  %v3047_v30 = vadd.f32 %v3046_v8, %v2958_v39  ;;  %4908 = vtanh.f32 %v6977_v6 }
 0x46f   :  { %v4901_v62 = vpop.eup %4900  ;;  %v3178_v27 = vmul.f32 %v4899_v43, %v4895_v0  ;;  %v2871_v3 = vadd.f32 %v2870_v2, %v2782_v25  ;;  %v6986_v2 = vld [vmem:[#allocation105_spill] sm:$0xff]  ;;  %v6987_v43 = vld [vmem:[#allocation22_spill] sm:$0xff] }
 0x470   :  { %v3179_v5 = vmul.f32 %v4901_v62, %v4897_v9  ;;  %4910 = vtanh.f32 %v3047_v30  ;;  %v1750_v44 = vmul.f32 %v6987_v43, %v6986_v2  ;;  %v6988_v30 = vld [vmem:[#allocation65_spill] sm:$0xff]  ;;  %v7000_v2 = vld [vmem:[#allocation148_spill] sm:$0xff] }
 0x471   :  { %v4903_v52 = vpop.eup %4902  ;;  %v3242_v21 = vadd.f32 %v3178_v27, %v1746_v29  ;;  %4912 = vtanh.f32 %v2871_v3  ;;  %v6990_v29 = vld [vmem:[#allocation23_spill] sm:$0xff] }
 0x472   :  { %v4905_v47 = vpop.eup %4904  ;;  %3368 = vst [vmem:[#allocation10 + $0x148] sm:$0xff] %v4903_v52  ;;  %v3243_v10 = vadd.f32 %v3179_v5, %v1747_v41  ;;  %v1751_v6 = vmul.f32 %v6990_v29, %v6989_v40 }
 0x473   :  { %3369 = vst [vmem:[#allocation10 + $0x150] sm:$0xff] %v4905_v47  ;;  %4914 = vtanh.f32 %v3242_v21  ;;  %v2959_v33 = vpop.f32.mrf.mxu2  ;;  %v4907_v20 = vpop.eup %4906 }
 0x474   :  { %4916 = vtanh.f32 %v3243_v10  ;;  %v2960_v22 = vadd.f32 %v2959_v33, %v6211_v14  ;;  %v3048_v7 = vpop.f32.mrf.mxu3  ;;  %v2784_v15 = vpop.f32.mrf.mxu0 }
 0x475   :  { %v4909_v36 = vpop.eup %4908  ;;  %v2785_v16 = vadd.f32 %v2784_v15, %v6201_v48  ;;  %v2873_v24 = vpop.f32.mrf.mxu1  ;;  %4918 = vtanh.f32 %v6980_v51  ;;  %v6994_v51 = vld [vmem:[#allocation170_spill] sm:$0xff] }
 0x476   :  { %v4911_v17 = vpop.eup %4910  ;;  %v3049_v19 = vadd.f32 %v3048_v7, %v2960_v22  ;;  %4920 = vtanh.f32 %v6983_v53  ;;  %v6991_v7 = vld [vmem:[#allocation68_spill] sm:$0xff] }
 0x477   :  { %v4913_v12 = vpop.eup %4912  ;;  %v3180_v23 = vmul.f32 %v4911_v17, %v4907_v20  ;;  %v2874_v31 = vadd.f32 %v2873_v24, %v2785_v16  ;;  %v6992_v16 = vld [vmem:[#allocation112_spill] sm:$0xff] }
 0x478   :  { %v3181_v26 = vmul.f32 %v4913_v12, %v4909_v36  ;;  %4922 = vtanh.f32 %v3049_v19  ;;  %v6993_v24 = vld [vmem:[#allocation24_spill] sm:$0xff] }
 0x479   :  { %v4915_v61 = vpop.eup %4914  ;;  %v3244_v50 = vadd.f32 %v3180_v23, %v1748_v46  ;;  %4924 = vtanh.f32 %v2874_v31  ;;  %v1752_v17 = vmul.f32 %v6993_v24, %v6992_v16  ;;  %v1753_v46 = vmul.f32 %v6996_v54, %v6995_v58 }
 0x47a   :  { %v4917_v34 = vpop.eup %4916  ;;  %3370 = vst [vmem:[#allocation10 + $0x158] sm:$0xff] %v4915_v61  ;;  %v3245_v1 = vadd.f32 %v3181_v26, %v1749_v57 }
 0x47b   :  { %3371 = vst [vmem:[#allocation10 + $0x160] sm:$0xff] %v4917_v34  ;;  %4926 = vtanh.f32 %v3244_v50  ;;  %v2962_v13 = vpop.f32.mrf.mxu2  ;;  %v4919_v56 = vpop.eup %4918 }
 0x47c   :  { %4928 = vtanh.f32 %v3245_v1  ;;  %v2963_v49 = vadd.f32 %v2962_v13, %v6211_v14  ;;  %v3051_v32 = vpop.f32.mrf.mxu3  ;;  %v2786_v42 = vpop.f32.mrf.mxu0 }
 0x47d   :  { %v4921_v0 = vpop.eup %4920  ;;  %v2787_v39 = vadd.f32 %v2786_v42, %v6201_v48  ;;  %v2875_v8 = vpop.f32.mrf.mxu1  ;;  %4930 = vtanh.f32 %v6149_v11 }
 0x47e   :  { %v4923_v60 = vpop.eup %4922  ;;  %v3052_v9 = vadd.f32 %v3051_v32, %v2963_v49  ;;  %4932 = vtanh.f32 %v6988_v30 }
 0x47f   :  { %v4925_v25 = vpop.eup %4924  ;;  %v3182_v62 = vmul.f32 %v4923_v60, %v4919_v56  ;;  %v2876_v59 = vadd.f32 %v2875_v8, %v2787_v39  ;;  %v6998_v39 = vld [vmem:[#allocation26_spill] sm:$0xff] }
 0x480   :  { %v3183_v27 = vmul.f32 %v4925_v25, %v4921_v0  ;;  %4934 = vtanh.f32 %v3052_v9  ;;  %v6997_v0 = vld [vmem:[#allocation113_spill] sm:$0xff]  ;;  %v6999_v25 = vld [vmem:[#allocation118_spill] sm:$0xff] }
 0x481   :  { %v4927_v3 = vpop.eup %4926  ;;  %v3246_v18 = vadd.f32 %v3182_v62, %v1750_v44  ;;  %4936 = vtanh.f32 %v2876_v59  ;;  %v1754_v8 = vmul.f32 %v6998_v39, %v6997_v0  ;;  %v1755_v43 = vmul.f32 %v7000_v2, %v6999_v25 }
 0x482   :  { %v4929_v28 = vpop.eup %4928  ;;  %3372 = vst [vmem:[#allocation10 + $0x168] sm:$0xff] %v4927_v3  ;;  %v3247_v11 = vadd.f32 %v3183_v27, %v1751_v6 }
 0x483   :  { %3373 = vst [vmem:[#allocation10 + $0x170] sm:$0xff] %v4929_v28  ;;  %4938 = vtanh.f32 %v3246_v18  ;;  %v2964_v41 = vpop.f32.mrf.mxu2  ;;  %v4931_v5 = vpop.eup %4930 }
 0x484   :  { %4940 = vtanh.f32 %v3247_v11  ;;  %v2965_v52 = vadd.f32 %v2964_v41, %v6211_v14  ;;  %v3053_v21 = vpop.f32.mrf.mxu3  ;;  %v2789_v47 = vpop.f32.mrf.mxu0  ;;  %v7001_v41 = vld [vmem:[#allocation71_spill] sm:$0xff] }
 0x485   :  { %v4933_v10 = vpop.eup %4932  ;;  %v2790_v33 = vadd.f32 %v2789_v47, %v6201_v48  ;;  %v2878_v20 = vpop.f32.mrf.mxu1  ;;  %4942 = vtanh.f32 %v6991_v7  ;;  %v7003_v47 = vld [vmem:[#allocation149_spill] sm:$0xff]  ;;  %v7005_v7 = vld [vmem:[#allocation119_spill] sm:$0xff] }
 0x486   :  { %v4935_v22 = vpop.eup %4934  ;;  %v3054_v15 = vadd.f32 %v3053_v21, %v2965_v52  ;;  %4944 = vtanh.f32 %v6994_v51  ;;  %v7002_v21 = vld [vmem:[#allocation121_spill] sm:$0xff] }
 0x487   :  { %v4937_v36 = vpop.eup %4936  ;;  %v3184_v19 = vmul.f32 %v4935_v22, %v4931_v5  ;;  %v2879_v12 = vadd.f32 %v2878_v20, %v2790_v33  ;;  %v7004_v33 = vld [vmem:[#allocation74_spill] sm:$0xff] }
 0x488   :  { %v3185_v53 = vmul.f32 %v4937_v36, %v4933_v10  ;;  %4946 = vtanh.f32 %v3054_v15  ;;  %v1756_v10 = vmul.f32 %v7003_v47, %v7002_v21  ;;  %v7006_v15 = vld [vmem:[#allocation27_spill] sm:$0xff] }
 0x489   :  { %v4939_v23 = vpop.eup %4938  ;;  %v3248_v31 = vadd.f32 %v3184_v19, %v1752_v17  ;;  %4948 = vtanh.f32 %v2879_v12  ;;  %v1757_v36 = vmul.f32 %v7006_v15, %v7005_v7  ;;  %v7018_v21 = vld [vmem:[#allocation31_spill] sm:$0xff] }
 0x48a   :  { %v4941_v45 = vpop.eup %4940  ;;  %3374 = vst [vmem:[#allocation10 + $0x178] sm:$0xff] %v4939_v23  ;;  %v3249_v55 = vadd.f32 %v3185_v53, %v1753_v46 }
 0x48b   :  { %3375 = vst [vmem:[#allocation10 + $0x180] sm:$0xff] %v4941_v45  ;;  %4950 = vtanh.f32 %v3248_v31  ;;  %v2967_v57 = vpop.f32.mrf.mxu2  ;;  %v4943_v26 = vpop.eup %4942 }
 0x48c   :  { %4952 = vtanh.f32 %v3249_v55  ;;  %v2968_v61 = vadd.f32 %v2967_v57, %v6211_v14  ;;  %v3056_v50 = vpop.f32.mrf.mxu3  ;;  %v2791_v34 = vpop.f32.mrf.mxu0  ;;  %v7007_v57 = vld [vmem:[#allocation171_spill] sm:$0xff] }
 0x48d   :  { %v4945_v1 = vpop.eup %4944  ;;  %v2792_v13 = vadd.f32 %v2791_v34, %v6201_v48  ;;  %v2880_v56 = vpop.f32.mrf.mxu1  ;;  %4954 = vtanh.f32 %v6165_v37  ;;  %v7009_v34 = vld [vmem:[#allocation28_spill] sm:$0xff] }
 0x48e   :  { %v4947_v49 = vpop.eup %4946  ;;  %v3057_v32 = vadd.f32 %v3056_v50, %v2968_v61  ;;  %4956 = vtanh.f32 %v6167_v63  ;;  %v7008_v50 = vld [vmem:[#allocation122_spill] sm:$0xff] }
 0x48f   :  { %v4949_v42 = vpop.eup %4948  ;;  %v3186_v60 = vmul.f32 %v4947_v49, %v4943_v26  ;;  %v2881_v9 = vadd.f32 %v2880_v56, %v2792_v13  ;;  %v7010_v13 = vld [vmem:[#allocation172_spill] sm:$0xff] }
 0x490   :  { %v3187_v44 = vmul.f32 %v4949_v42, %v4945_v1  ;;  %4958 = vtanh.f32 %v3057_v32  ;;  %v1758_v1 = vmul.f32 %v7009_v34, %v7008_v50  ;;  %v7011_v32 = vld [vmem:[#allocation128_spill] sm:$0xff] }
 0x491   :  { %v4951_v30 = vpop.eup %4950  ;;  %v3250_v62 = vadd.f32 %v3186_v60, %v1754_v8  ;;  %4960 = vtanh.f32 %v2881_v9  ;;  %v7012_v42 = vld [vmem:[#allocation152_spill] sm:$0xff] }
 0x492   :  { %v4953_v59 = vpop.eup %4952  ;;  %3376 = vst [vmem:[#allocation10 + $0x188] sm:$0xff] %v4951_v30  ;;  %v3251_v37 = vadd.f32 %v3187_v44, %v1755_v43  ;;  %v1759_v0 = vmul.f32 %v7012_v42, %v7011_v32 }
 0x493   :  { %3377 = vst [vmem:[#allocation10 + $0x190] sm:$0xff] %v4953_v59  ;;  %4962 = vtanh.f32 %v3250_v62  ;;  %v2969_v40 = vpop.f32.mrf.mxu2  ;;  %v4955_v29 = vpop.eup %4954 }
 0x494   :  { %4964 = vtanh.f32 %v3251_v37  ;;  %v2970_v63 = vadd.f32 %v2969_v40, %v6211_v14  ;;  %v3058_v6 = vpop.f32.mrf.mxu3  ;;  %v2794_v27 = vpop.f32.mrf.mxu0 }
 0x495   :  { %v4957_v3 = vpop.eup %4956  ;;  %v2795_v18 = vadd.f32 %v2794_v27, %v6201_v48  ;;  %v2883_v28 = vpop.f32.mrf.mxu1  ;;  %4966 = vtanh.f32 %v7001_v41 }
 0x496   :  { %v4959_v11 = vpop.eup %4958  ;;  %v3059_v5 = vadd.f32 %v3058_v6, %v2970_v63  ;;  %4968 = vtanh.f32 %v7004_v33  ;;  %v7013_v63 = vld [vmem:[#allocation173_spill] sm:$0xff] }
 0x497   :  { %v4961_v52 = vpop.eup %4960  ;;  %v3188_v20 = vmul.f32 %v4959_v11, %v4955_v29  ;;  %v2884_v22 = vadd.f32 %v2883_v28, %v2795_v18  ;;  %v7015_v18 = vld [vmem:[#allocation153_spill] sm:$0xff]  ;;  %v7016_v11 = vld [vmem:[#allocation174_spill] sm:$0xff] }
 0x498   :  { %v3189_v16 = vmul.f32 %v4961_v52, %v4957_v3  ;;  %4970 = vtanh.f32 %v3059_v5  ;;  %v7014_v3 = vld [vmem:[#allocation131_spill] sm:$0xff]  ;;  %v7017_v52 = vld [vmem:[#allocation129_spill] sm:$0xff] }
 0x499   :  { %v4963_v24 = vpop.eup %4962  ;;  %v3252_v17 = vadd.f32 %v3188_v20, %v1756_v10  ;;  %4972 = vtanh.f32 %v2884_v22  ;;  %v1760_v28 = vmul.f32 %v7015_v18, %v7014_v3  ;;  %v1761_v47 = vmul.f32 %v7018_v21, %v7017_v52 }
 0x49a   :  { %v4965_v51 = vpop.eup %4964  ;;  %3378 = vst [vmem:[#allocation10 + $0x198] sm:$0xff] %v4963_v24  ;;  %v3253_v19 = vadd.f32 %v3189_v16, %v1757_v36 }
 0x49b   :  { %3379 = vst [vmem:[#allocation10 + $0x1a0] sm:$0xff] %v4965_v51  ;;  %4974 = vtanh.f32 %v3252_v17  ;;  %v2972_v12 = vpop.f32.mrf.mxu2  ;;  %v4967_v58 = vpop.eup %4966 }
 0x49c   :  { %4976 = vtanh.f32 %v3253_v19  ;;  %v2973_v54 = vadd.f32 %v2972_v12, %v6211_v14  ;;  %v3061_v46 = vpop.f32.mrf.mxu3  ;;  %v2796_v53 = vpop.f32.mrf.mxu0 }
 0x49d   :  { %v4969_v23 = vpop.eup %4968  ;;  %v2797_v31 = vadd.f32 %v2796_v53, %v6201_v48  ;;  %v2885_v45 = vpop.f32.mrf.mxu1  ;;  %4978 = vtanh.f32 %v7007_v57  ;;  %v7019_v53 = vld [vmem:[#allocation132_spill] sm:$0xff]  ;;  %v7021_v57 = vld [vmem:[#allocation138_spill] sm:$0xff] }
 0x49e   :  { %v4971_v55 = vpop.eup %4970  ;;  %v3062_v26 = vadd.f32 %v3061_v46, %v2973_v54  ;;  %4980 = vtanh.f32 %v7010_v13 }
 0x49f   :  { %v4973_v61 = vpop.eup %4972  ;;  %v3190_v56 = vmul.f32 %v4971_v55, %v4967_v58  ;;  %v2886_v49 = vadd.f32 %v2885_v45, %v2797_v31 }
 0x4a0   :  { %v3191_v39 = vmul.f32 %v4973_v61, %v4969_v23  ;;  %4982 = vtanh.f32 %v3062_v26  ;;  %v7020_v23 = vld [vmem:[#allocation32_spill] sm:$0xff] }
 0x4a1   :  { %v4975_v8 = vpop.eup %4974  ;;  %v3254_v60 = vadd.f32 %v3190_v56, %v1758_v1  ;;  %4984 = vtanh.f32 %v2886_v49  ;;  %v1762_v31 = vmul.f32 %v7020_v23, %v7019_v53  ;;  %v7022_v26 = vld [vmem:[#allocation156_spill] sm:$0xff] }
 0x4a2   :  { %v4977_v9 = vpop.eup %4976  ;;  %3380 = vst [vmem:[#allocation10 + $0x1a8] sm:$0xff] %v4975_v8  ;;  %v3255_v25 = vadd.f32 %v3191_v39, %v1759_v0  ;;  %v1763_v61 = vmul.f32 %v7022_v26, %v7021_v57  ;;  %v7023_v8 = vld [vmem:[#allocation141_spill] sm:$0xff] }
 0x4a3   :  { %3381 = vst [vmem:[#allocation10 + $0x1b0] sm:$0xff] %v4977_v9  ;;  %4986 = vtanh.f32 %v3254_v60  ;;  %v2974_v2 = vpop.f32.mrf.mxu2  ;;  %v4979_v43 = vpop.eup %4978  ;;  %v7024_v60 = vld [vmem:[#allocation157_spill] sm:$0xff] }
 0x4a4   :  { %4988 = vtanh.f32 %v3255_v25  ;;  %v2975_v44 = vadd.f32 %v2974_v2, %v6211_v14  ;;  %v3063_v30 = vpop.f32.mrf.mxu3  ;;  %v2799_v62 = vpop.f32.mrf.mxu0  ;;  %v1764_v9 = vmul.f32 %v7024_v60, %v7023_v8  ;;  %v7025_v2 = vld [vmem:[#allocation139_spill] sm:$0xff] }
 0x4a5   :  { %v4981_v59 = vpop.eup %4980  ;;  %v2800_v37 = vadd.f32 %v2799_v62, %v6201_v48  ;;  %v2888_v40 = vpop.f32.mrf.mxu1  ;;  %4990 = vtanh.f32 %v7013_v63  ;;  %v7027_v63 = vld [vmem:[#allocation142_spill] sm:$0xff] }
 0x4a6   :  { %v4983_v29 = vpop.eup %4982  ;;  %v3064_v6 = vadd.f32 %v3063_v30, %v2975_v44  ;;  %4992 = vtanh.f32 %v7016_v11 }
 0x4a7   :  { %v4985_v27 = vpop.eup %4984  ;;  %v3192_v41 = vmul.f32 %v4983_v29, %v4979_v43  ;;  %v2889_v5 = vadd.f32 %v2888_v40, %v2800_v37  ;;  %v7026_v43 = vld [vmem:[#allocation35_spill] sm:$0xff] }
 0x4a8   :  { %v3193_v10 = vmul.f32 %v4985_v27, %v4981_v59  ;;  %4994 = vtanh.f32 %v3064_v6  ;;  %v1765_v44 = vmul.f32 %v7026_v43, %v7025_v2  ;;  %v7028_v6 = vld [vmem:[#allocation36_spill] sm:$0xff] }
 0x4a9   :  { %v4987_v33 = vpop.eup %4986  ;;  %v3256_v20 = vadd.f32 %v3192_v41, %v1760_v28  ;;  %4996 = vtanh.f32 %v2889_v5  ;;  %v1766_v27 = vmul.f32 %v7028_v6, %v7027_v63 }
 0x4aa   :  { %v4989_v22 = vpop.eup %4988  ;;  %3382 = vst [vmem:[#allocation10 + $0x1b8] sm:$0xff] %v4987_v33  ;;  %v3257_v7 = vadd.f32 %v3193_v10, %v1761_v47 }
 0x4ab   :  { %3383 = vst [vmem:[#allocation10 + $0x1c0] sm:$0xff] %v4989_v22  ;;  %4998 = vtanh.f32 %v3256_v20  ;;  %v2977_v15 = vpop.f32.mrf.mxu2  ;;  %v4991_v36 = vpop.eup %4990 }
 0x4ac   :  { %5000 = vtanh.f32 %v3257_v7  ;;  %v2978_v16 = vadd.f32 %v2977_v15, %v6211_v14  ;;  %v3066_v24 = vpop.f32.mrf.mxu3  ;;  %v2801_v17 = vpop.f32.mrf.mxu0 }
 0x4ad   :  { %v4993_v51 = vpop.eup %4992  ;;  %v2802_v19 = vadd.f32 %v2801_v17, %v6201_v48  ;;  %5002 = vtanh.f32 %v6197_v4  ;;  %v2890_v54 = vpop.f32.mrf.mxu1 }
 0x4ae   :  { %v4995_v12 = vpop.eup %4994  ;;  %v3067_v58 = vadd.f32 %v3066_v24, %v2978_v16  ;;  %5004 = vtanh.f32 %v6199_v35 }
 0x4af   :  { %v4997_v46 = vpop.eup %4996  ;;  %v3194_v45 = vmul.f32 %v4995_v12, %v4991_v36  ;;  %v2891_v55 = vadd.f32 %v2890_v54, %v2802_v19 }
 0x4b0   :  { %v3195_v50 = vmul.f32 %v4997_v46, %v4993_v51  ;;  %5006 = vtanh.f32 %v3067_v58 }
 0x4b1   :  { %v4999_v34 = vpop.eup %4998  ;;  %v3258_v48 = vadd.f32 %v3194_v45, %v1762_v31  ;;  %5008 = vtanh.f32 %v2891_v55 }
 0x4b2   :  { %v5001_v1 = vpop.eup %5000  ;;  %3384 = vst [vmem:[#allocation10 + $0x1c8] sm:$0xff] %v4999_v34  ;;  %v3259_v4 = vadd.f32 %v3195_v50, %v1763_v61 }
 0x4b3   :  { %3385 = vst [vmem:[#allocation10 + $0x1d0] sm:$0xff] %v5001_v1  ;;  %5010 = vtanh.f32 %v3258_v48  ;;  %v2979_v13 = vpop.f32.mrf.mxu2  ;;  %v5003_v56 = vpop.eup %5002 }
 0x4b4   :  { %5012 = vtanh.f32 %v3259_v4  ;;  %v2980_v35 = vadd.f32 %v2979_v13, %v6211_v14  ;;  %v5005_v49 = vpop.eup %5004  ;;  %v3068_v32 = vpop.f32.mrf.mxu3 }
 0x4b5   :  { %5014 = vtanh.f32 %v6205_v38 }
 0x4b6   :  { %v5007_v42 = vpop.eup %5006  ;;  %v3069_v0 = vadd.f32 %v3068_v32, %v2980_v35 }
 0x4b7   :  { %v5009_v39 = vpop.eup %5008  ;;  %v3196_v25 = vmul.f32 %v5007_v42, %v5003_v56 }
 0x4b8   :  { %v3197_v30 = vmul.f32 %v5009_v39, %v5005_v49  ;;  %5016 = vtanh.f32 %v3069_v0 }
 0x4b9   :  { %v5011_v62 = vpop.eup %5010  ;;  %v3260_v59 = vadd.f32 %v3196_v25, %v1764_v9 }
 0x4ba   :  { %v5013_v37 = vpop.eup %5012  ;;  %3386 = vst [vmem:[#allocation10 + $0x1d8] sm:$0xff] %v5011_v62  ;;  %v3261_v14 = vadd.f32 %v3197_v30, %v1765_v44 }
 0x4bb   :  { %3387 = vst [vmem:[#allocation10 + $0x1e0] sm:$0xff] %v5013_v37  ;;  %5018 = vtanh.f32 %v3260_v59  ;;  %v5015_v40 = vpop.eup %5014 }
 0x4bc   :  { %5020 = vtanh.f32 %v3261_v14 }
 0x4be   :  { %v5017_v29 = vpop.eup %5016 }
 0x4bf   :  { %v3198_v38 = vmul.f32 %v5017_v29, %v5015_v40 }
 0x4c1   :  { %v5019_v3 = vpop.eup %5018  ;;  %v3262_v18 = vadd.f32 %v3198_v38, %v1766_v27 }
 0x4c2   :  { %v5021_v28 = vpop.eup %5020  ;;  %3388 = vst [vmem:[#allocation10 + $0x1e8] sm:$0xff] %v5019_v3 }
 0x4c3   :  { %3389 = vst [vmem:[#allocation10 + $0x1f0] sm:$0xff] %v5021_v28  ;;  %5022 = vtanh.f32 %v3262_v18 }
 0x4c9   :  { %v5023_v11 = vpop.eup %5022 }
 0x4ca   :  { %3390 = vst [vmem:[#allocation10 + $0x1f8] sm:$0xff] %v5023_v11 }
 0x4cb   :  { %3403 = dma.vmem_to_hbm [thread:$0]  %s3396_s3, 8192, %s3398_s13, [#allocation4], %s5161_s14, %s5161_s14, %s5162_s15  }
 0x4cc   :  { %5150 = dma.done.wait [#allocation4], 8192  }
 0x4cd   :  { %5151 = vsyncadd [#allocation4], 4294959104 }
 0x4ce   :  { %3408 = vsyncpa [#allocation3], 1 }
 0x4cf   :  { %3409 = vsyncpa [#allocation6], 1 }
 0x4d0   :  { %3410 = vsyncpa [#allocation9], 1 }
 0x4d1   :  { %3411 = vsyncpa [#allocation4], 1 }

</bundles_post_ra>
